<compile_context>
chip_gen: v5e
topology: v5e:2x2
jax: 0.10.0
libtpu: 0.0.40
codegen_flags: <defaults>
</compile_context>

<pallas_src>
import numpy as np
import jax
import jax.numpy as jnp
from jax.experimental import pallas as pl
from jax.experimental.pallas import tpu as pltpu

_BN_EPS = 1e-5
_VMEM_LIMIT = 32 * 1024 * 1024  # scoped-VMEM safe on v5e / v6e / v7x


def _round_up(x, m):
    return (x + m - 1) // m * m


# ---------------------------------------------------------------------------
# Fused Pallas kernel
# ---------------------------------------------------------------------------
def feature_flat_kernel(x_ref, w1_ref, t1_ref, w2_ref, t2_ref, wl_ref, bl_ref,
                        o_ref):
    """conv1x1+BN+ReLU -> conv1x1+BN+ReLU -> Flatten -> Linear, one batch tile.

    x_ref : (P, TB, C_pad)  bf16  pixel-major activations for this batch tile
    w1    : (C_pad, 256)    bf16  (BN1 scale folded)   t1 : (1, 256)   f32
    w2    : (256, 128)      bf16  (BN2 scale folded)   t2 : (1, 128)   f32
    wl    : (P, 128, O_pad) bf16  per-pixel Linear     bl : (1, O_pad) f32
    o_ref : (TB, O_pad)     f32
    """
    p_dim, tb, c_pad = x_ref.shape

    # (P, TB, C) -> (P*TB, C).  TB is a multiple of 16 (bf16 sublane packing),
    # so this leading-dim merge is tile-aligned and costs nothing.
    x = x_ref[...].reshape(p_dim * tb, c_pad)

    h = jnp.dot(x, w1_ref[...], preferred_element_type=jnp.float32)
    h = jnp.maximum(h + t1_ref[...], 0.0)                        # (P*TB, 256) f32
    h = jnp.dot(h.astype(jnp.bfloat16), w2_ref[...],
                preferred_element_type=jnp.float32)
    h = jnp.maximum(h + t2_ref[...], 0.0).astype(jnp.bfloat16)   # (P*TB, 128)

    # Linear over the flattened (pixel, channel) features: pixel p owns the
    # (128, O_pad) weight slice wl[p]; its activations are rows
    # [p*TB, (p+1)*TB) of h (vreg-aligned slices), so the whole contraction is
    # a sum of plain 2-D MXU matmuls -- no in-kernel relayout.
    out = jnp.zeros(o_ref.shape, jnp.float32)
    for p in range(p_dim):                     # static unroll, P = H*W (e.g. 49)
        out = out + jnp.dot(h[p * tb:(p + 1) * tb, :], wl_ref[p],
                            preferred_element_type=jnp.float32)
    o_ref[...] = out + bl_ref[...]


# ---------------------------------------------------------------------------
# Tiling heuristic + pallas_call wrapper
# ---------------------------------------------------------------------------
def _batch_tile(b_pad, p, c_pad, c_mid, c2, o_pad):
    """Batch tile: multiple of 16, >=2 grid tiles when the batch allows
    (megacore / pipelining), and sized so the double-buffered x tiles, the f32
    hidden activations and the resident weights stay inside scoped VMEM on
    every generation (v7x is tightest: 64 MiB physical / 32 MiB scoped)."""
    weight_bytes = 2 * (2 * (c_pad * c_mid + c_mid * c2 + p * c2 * o_pad)
                        + 4 * (c_mid + c2 + o_pad))       # double-buffered
    budget = max(4 * 1024 * 1024, 16 * 1024 * 1024 - weight_bytes)
    per_row = (p * (2 * 2 * c_pad            # bf16 x rows, double-buffered
                    + 4 * c_mid              # f32 hidden h1
                    + (4 + 2) * c2)          # f32 + bf16 copies of h2
               + 2 * 4 * o_pad)              # f32 output rows, double-buffered
    cap = max(16, (budget // per_row) // 16 * 16)
    if b_pad <= 16:
        return 16
    tile = max(16, _round_up(pl.cdiv(b_pad, 2), 16))      # >= 2 tiles
    return int(min(tile, cap, 512))


def feature_flat_forward(frames, params):
    """frames: (B, C, H, W) float32 (NCHW, like the PyTorch module)."""
    b, c, h, w = frames.shape
    p = h * w
    assert c == params["c_in"]
    c_pad = params["w1"].shape[0]
    c_mid = params["w1"].shape[1]
    c2p = params["w2"].shape[1]          # 128 (64 real channels + zero pad)
    o_pad = params["wl"].shape[2]

    b_pad0 = max(_round_up(b, 16), 16)
    tile_b = _batch_tile(b_pad0, p, c_pad, c_mid, c2p, o_pad)
    b_pad = _round_up(b_pad0, tile_b)

    # NCHW -> (P, B_pad, C_pad) pixel-major, zero-padded, bf16.  One fused XLA
    # transpose+pad+cast pass over the frames (the only non-Pallas work left).
    x = jnp.transpose(frames, (2, 3, 0, 1)).reshape(p, b, c)
    x = jnp.pad(x, ((0, 0), (0, b_pad - b), (0, c_pad - c))).astype(jnp.bfloat16)

    out = pl.pallas_call(
        feature_flat_kernel,
        out_shape=jax.ShapeDtypeStruct((b_pad, o_pad), jnp.float32),
        grid=(b_pad // tile_b,),
        in_specs=[
            pl.BlockSpec((p, tile_b, c_pad), lambda i: (0, i, 0)),  # streamed x
            pl.BlockSpec((c_pad, c_mid), lambda i: (0, 0)),         # resident
            pl.BlockSpec((1, c_mid), lambda i: (0, 0)),
            pl.BlockSpec((c_mid, c2p), lambda i: (0, 0)),
            pl.BlockSpec((1, c2p), lambda i: (0, 0)),
            pl.BlockSpec((p, c2p, o_pad), lambda i: (0, 0, 0)),     # resident
            pl.BlockSpec((1, o_pad), lambda i: (0, 0)),
        ],
        out_specs=pl.BlockSpec((tile_b, o_pad), lambda i: (i, 0)),
        compiler_params=pltpu.CompilerParams(
            dimension_semantics=("parallel",),
            vmem_limit_bytes=_VMEM_LIMIT),
    )(x, params["w1"], params["t1"], params["w2"], params["t2"],
      params["wl"], params["bl"])

    return out[:b, :params["out_dim"]]


# ---------------------------------------------------------------------------
# Parameters: raw torch-style params + offline prep (BN fold, pad, permute)
# ---------------------------------------------------------------------------
def make_raw_params(key, c_in, h, w, output_size):
    """Torch-layout parameters: conv weights (C_out, C_in), Linear (out, F)."""
    channels = [256, 64]
    ks = jax.random.split(key, 14)

    def conv_bn(k0, k1, k2, k3, k4, k5, cin, cout):
        w_ = jax.random.normal(k0, (cout, cin), jnp.float32) * 0.05
        b_ = jax.random.normal(k1, (cout,), jnp.float32) * 0.05
        g_ = 1.0 + 0.1 * jax.random.normal(k2, (cout,), jnp.float32)
        be = 0.1 * jax.random.normal(k3, (cout,), jnp.float32)
        m_ = 0.1 * jax.random.normal(k4, (cout,), jnp.float32)
        v_ = 1.0 + 0.1 * jax.random.uniform(k5, (cout,), jnp.float32)
        return w_, b_, g_, be, m_, v_

    w1, b1, g1, be1, m1, v1 = conv_bn(*ks[0:6], c_in, channels[0])
    w2, b2, g2, be2, m2, v2 = conv_bn(*ks[6:12], channels[0], channels[1])

    flat = channels[1] * h * w
    wl = jax.random.normal(ks[12], (output_size, flat), jnp.float32) * 0.02
    bl = jax.random.normal(ks[13], (output_size,), jnp.float32) * 0.02

    return dict(w1=w1, b1=b1, g1=g1, be1=be1, m1=m1, v1=v1,
                w2=w2, b2=b2, g2=g2, be2=be2, m2=m2, v2=v2,
                wl=wl, bl=bl)


def prepare_params(raw, h, w):
    """Fold eval-mode BN, pad to lane-dense shapes, permute/cast the weights."""
    c_in = raw["w1"].shape[1]
    c_mid = raw["w1"].shape[0]                 # 256
    c2 = raw["w2"].shape[0]                    # 64
    out_dim = raw["wl"].shape[0]
    c_pad = _round_up(c_in, 128)
    c2_pad = _round_up(c2, 128)                # 128
    o_pad = _round_up(out_dim, 128)

    def fold(w_oc, b, g, beta, mean, var):
        s = g / jnp.sqrt(var + _BN_EPS)        # per-channel BN scale
        w_eff = w_oc.T * s[None, :]            # (C_in, C_out), scale folded
        t = (b - mean) * s + beta              # per-channel shift
        return w_eff, t[None, :]

    w1e, t1 = fold(raw["w1"], raw["b1"], raw["g1"], raw["be1"], raw["m1"], raw["v1"])
    w2e, t2 = fold(raw["w2"], raw["b2"], raw["g2"], raw["be2"], raw["m2"], raw["v2"])

    # Lane-dense padding: zero input-channel rows, zero extra output channels
    # (zero shift -> ReLU(0)=0 so padded channels stay exactly zero).
    w1e = jnp.pad(w1e, ((0, c_pad - c_in), (0, 0)))
    w2e = jnp.pad(w2e, ((0, 0), (0, c2_pad - c2)))
    t2 = jnp.pad(t2, ((0, 0), (0, c2_pad - c2)))

    # torch Flatten order is (C, H, W); re-slice the Linear weight per pixel to
    # (H*W, C, out), pad channels/outputs with zeros.
    wl = raw["wl"].T.reshape(c2, h, w, out_dim).transpose(1, 2, 0, 3)
    wl = wl.reshape(h * w, c2, out_dim)
    wl = jnp.pad(wl, ((0, 0), (0, c2_pad - c2), (0, o_pad - out_dim)))
    bl = jnp.pad(raw["bl"][None, :], ((0, 0), (0, o_pad - out_dim)))

    return dict(
        w1=w1e.astype(jnp.bfloat16), t1=t1.astype(jnp.float32),
        w2=w2e.astype(jnp.bfloat16), t2=t2.astype(jnp.float32),
        wl=wl.astype(jnp.bfloat16), bl=bl.astype(jnp.float32),
        c_in=c_in, out_dim=out_dim)


# ---------------------------------------------------------------------------
# Pure-JAX reference with literal PyTorch (eval-mode) semantics, all f32.
# ---------------------------------------------------------------------------
def reference_forward(frames, raw):
    b = frames.shape[0]

    def conv_bn_relu(x, w_, b_, g_, beta, mean, var):
        y = jnp.einsum('oc,bchw->bohw', w_, x) + b_[None, :, None, None]
        y = ((y - mean[None, :, None, None])
             / jnp.sqrt(var[None, :, None, None] + _BN_EPS)
             * g_[None, :, None, None] + beta[None, :, None, None])
        return jnp.maximum(y, 0.0)

    h = conv_bn_relu(frames, raw["w1"], raw["b1"], raw["g1"], raw["be1"],
                     raw["m1"], raw["v1"])
    h = conv_bn_relu(h, raw["w2"], raw["b2"], raw["g2"], raw["be2"],
                     raw["m2"], raw["v2"])
    flat = h.reshape(b, -1)                     # torch: x.view(x.size(0), -1)
    return flat @ raw["wl"].T + raw["bl"]


if __name__ == "__main__":
    # Small shapes consistent with the module (ResNet-ish 7x7 feature map).
    B, C_IN, H, W = 2, 4, 7, 7
    OUTPUT_SIZE = 32

    key = jax.random.PRNGKey(0)
    k_x, k_p = jax.random.split(key)
    frames = jax.random.normal(k_x, (B, C_IN, H, W), jnp.float32)

    raw = make_raw_params(k_p, C_IN, H, W, OUTPUT_SIZE)
    params = prepare_params(raw, H, W)

    fwd = jax.jit(lambda f: feature_flat_forward(f, params))
    out = jax.block_until_ready(fwd(frames))

    ref = reference_forward(frames, raw)
    # bf16 streaming (per review): loosen tolerance vs the f32 reference.
    np.testing.assert_allclose(np.asarray(out), np.asarray(ref),
                               rtol=2e-2, atol=2e-2)
    assert out.shape == (B, OUTPUT_SIZE)
    print("KERNEL_OK")
</pallas_src>

<mosaic_0001>
module attributes {stable_mosaic.version = 11 : i64} {
  func.func @feature_flat_kernel(%arg0: i32, %arg1: memref<49x16x128xbf16, #tpu.memory_space<vmem>>, %arg2: memref<128x256xbf16, #tpu.memory_space<vmem>>, %arg3: memref<1x256xf32, #tpu.memory_space<vmem>>, %arg4: memref<256x128xbf16, #tpu.memory_space<vmem>>, %arg5: memref<1x128xf32, #tpu.memory_space<vmem>>, %arg6: memref<49x128x128xbf16, #tpu.memory_space<vmem>>, %arg7: memref<1x128xf32, #tpu.memory_space<vmem>>, %arg8: memref<16x128xf32, #tpu.memory_space<vmem>>) attributes {dimension_semantics = [#tpu.dimension_semantics<parallel>], iteration_bounds = array<i64: 1>, scalar_prefetch = 0 : i64, scratch_operands = 0 : i64, tpu.core_type = #tpu.core_type<tc>, window_params = [{transform_indices = @transform_0, window_bounds = array<i64: 49, 16, 128>}, {pipeline_mode = #tpu.pipeline_mode<synchronous>, transform_indices = @transform_1, window_bounds = array<i64: 128, 256>}, {pipeline_mode = #tpu.pipeline_mode<synchronous>, transform_indices = @transform_2, window_bounds = array<i64: 1, 256>}, {pipeline_mode = #tpu.pipeline_mode<synchronous>, transform_indices = @transform_3, window_bounds = array<i64: 256, 128>}, {pipeline_mode = #tpu.pipeline_mode<synchronous>, transform_indices = @transform_4, window_bounds = array<i64: 1, 128>}, {pipeline_mode = #tpu.pipeline_mode<synchronous>, transform_indices = @transform_5, window_bounds = array<i64: 49, 128, 128>}, {pipeline_mode = #tpu.pipeline_mode<synchronous>, transform_indices = @transform_6, window_bounds = array<i64: 1, 128>}, {transform_indices = @transform_7, window_bounds = array<i64: 16, 128>}]} {
    %c0 = arith.constant 0 : index
    %c0_0 = arith.constant 0 : index
    %c0_1 = arith.constant 0 : index
    %0 = vector.load %arg1[%c0, %c0_0, %c0_1] : memref<49x16x128xbf16, #tpu.memory_space<vmem>>, vector<49x16x128xbf16>
    %1 = vector.shape_cast %0 : vector<49x16x128xbf16> to vector<784x128xbf16>
    %c0_2 = arith.constant 0 : index
    %c0_3 = arith.constant 0 : index
    %2 = vector.load %arg2[%c0_2, %c0_3] : memref<128x256xbf16, #tpu.memory_space<vmem>>, vector<128x256xbf16>
    %cst = arith.constant dense<0.000000e+00> : vector<784x256xf32>
    %3 = tpu.matmul %1, %2, %cst {dimension_numbers = #tpu.dot_dimension_numbers<[1], [0], [0], [1], [0, 0, 1, 1], [], []>} : vector<784x128xbf16>, vector<128x256xbf16>, vector<784x256xf32> -> vector<784x256xf32>
    %c0_4 = arith.constant 0 : index
    %c0_5 = arith.constant 0 : index
    %4 = vector.load %arg3[%c0_4, %c0_5] : memref<1x256xf32, #tpu.memory_space<vmem>>, vector<1x256xf32>
    %5 = vector.broadcast %4 : vector<1x256xf32> to vector<784x256xf32>
    %6 = arith.addf %3, %5 : vector<784x256xf32>
    %cst_6 = arith.constant 0.000000e+00 : f32
    %7 = vector.broadcast %cst_6 : f32 to vector<784x256xf32>
    %8 = arith.maximumf %6, %7 : vector<784x256xf32>
    %9 = arith.truncf %8 : vector<784x256xf32> to vector<784x256xbf16>
    %c0_7 = arith.constant 0 : index
    %c0_8 = arith.constant 0 : index
    %10 = vector.load %arg4[%c0_7, %c0_8] : memref<256x128xbf16, #tpu.memory_space<vmem>>, vector<256x128xbf16>
    %cst_9 = arith.constant dense<0.000000e+00> : vector<784x128xf32>
    %11 = tpu.matmul %9, %10, %cst_9 {dimension_numbers = #tpu.dot_dimension_numbers<[1], [0], [0], [1], [0, 0, 1, 1], [], []>} : vector<784x256xbf16>, vector<256x128xbf16>, vector<784x128xf32> -> vector<784x128xf32>
    %c0_10 = arith.constant 0 : index
    %c0_11 = arith.constant 0 : index
    %12 = vector.load %arg5[%c0_10, %c0_11] : memref<1x128xf32, #tpu.memory_space<vmem>>, vector<1x128xf32>
    %13 = vector.broadcast %12 : vector<1x128xf32> to vector<784x128xf32>
    %14 = arith.addf %11, %13 : vector<784x128xf32>
    %cst_12 = arith.constant 0.000000e+00 : f32
    %15 = vector.broadcast %cst_12 : f32 to vector<784x128xf32>
    %16 = arith.maximumf %14, %15 : vector<784x128xf32>
    %17 = arith.truncf %16 : vector<784x128xf32> to vector<784x128xbf16>
    %cst_13 = arith.constant 0.000000e+00 : f32
    %18 = vector.broadcast %cst_13 : f32 to vector<16x128xf32>
    %19 = vector.extract_strided_slice %17 {offsets = [0, 0], sizes = [16, 128], strides = [1, 1]} : vector<784x128xbf16> to vector<16x128xbf16>
    %c0_14 = arith.constant 0 : index
    %c0_15 = arith.constant 0 : index
    %c0_16 = arith.constant 0 : index
    %20 = vector.load %arg6[%c0_14, %c0_15, %c0_16] : memref<49x128x128xbf16, #tpu.memory_space<vmem>>, vector<1x128x128xbf16>
    %21 = vector.shape_cast %20 : vector<1x128x128xbf16> to vector<128x128xbf16>
    %cst_17 = arith.constant dense<0.000000e+00> : vector<16x128xf32>
    %22 = tpu.matmul %19, %21, %cst_17 {dimension_numbers = #tpu.dot_dimension_numbers<[1], [0], [0], [1], [0, 0, 1, 1], [], []>} : vector<16x128xbf16>, vector<128x128xbf16>, vector<16x128xf32> -> vector<16x128xf32>
    %23 = arith.addf %18, %22 : vector<16x128xf32>
    %24 = vector.extract_strided_slice %17 {offsets = [16, 0], sizes = [16, 128], strides = [1, 1]} : vector<784x128xbf16> to vector<16x128xbf16>
    %c1 = arith.constant 1 : index
    %c0_18 = arith.constant 0 : index
    %c0_19 = arith.constant 0 : index
    %25 = vector.load %arg6[%c1, %c0_18, %c0_19] : memref<49x128x128xbf16, #tpu.memory_space<vmem>>, vector<1x128x128xbf16>
    %26 = vector.shape_cast %25 : vector<1x128x128xbf16> to vector<128x128xbf16>
    %cst_20 = arith.constant dense<0.000000e+00> : vector<16x128xf32>
    %27 = tpu.matmul %24, %26, %cst_20 {dimension_numbers = #tpu.dot_dimension_numbers<[1], [0], [0], [1], [0, 0, 1, 1], [], []>} : vector<16x128xbf16>, vector<128x128xbf16>, vector<16x128xf32> -> vector<16x128xf32>
    %28 = arith.addf %23, %27 : vector<16x128xf32>
    %29 = vector.extract_strided_slice %17 {offsets = [32, 0], sizes = [16, 128], strides = [1, 1]} : vector<784x128xbf16> to vector<16x128xbf16>
    %c2 = arith.constant 2 : index
    %c0_21 = arith.constant 0 : index
    %c0_22 = arith.constant 0 : index
    %30 = vector.load %arg6[%c2, %c0_21, %c0_22] : memref<49x128x128xbf16, #tpu.memory_space<vmem>>, vector<1x128x128xbf16>
    %31 = vector.shape_cast %30 : vector<1x128x128xbf16> to vector<128x128xbf16>
    %cst_23 = arith.constant dense<0.000000e+00> : vector<16x128xf32>
    %32 = tpu.matmul %29, %31, %cst_23 {dimension_numbers = #tpu.dot_dimension_numbers<[1], [0], [0], [1], [0, 0, 1, 1], [], []>} : vector<16x128xbf16>, vector<128x128xbf16>, vector<16x128xf32> -> vector<16x128xf32>
    %33 = arith.addf %28, %32 : vector<16x128xf32>
    %34 = vector.extract_strided_slice %17 {offsets = [48, 0], sizes = [16, 128], strides = [1, 1]} : vector<784x128xbf16> to vector<16x128xbf16>
    %c3 = arith.constant 3 : index
    %c0_24 = arith.constant 0 : index
    %c0_25 = arith.constant 0 : index
    %35 = vector.load %arg6[%c3, %c0_24, %c0_25] : memref<49x128x128xbf16, #tpu.memory_space<vmem>>, vector<1x128x128xbf16>
    %36 = vector.shape_cast %35 : vector<1x128x128xbf16> to vector<128x128xbf16>
    %cst_26 = arith.constant dense<0.000000e+00> : vector<16x128xf32>
    %37 = tpu.matmul %34, %36, %cst_26 {dimension_numbers = #tpu.dot_dimension_numbers<[1], [0], [0], [1], [0, 0, 1, 1], [], []>} : vector<16x128xbf16>, vector<128x128xbf16>, vector<16x128xf32> -> vector<16x128xf32>
    %38 = arith.addf %33, %37 : vector<16x128xf32>
    %39 = vector.extract_strided_slice %17 {offsets = [64, 0], sizes = [16, 128], strides = [1, 1]} : vector<784x128xbf16> to vector<16x128xbf16>
    %c4 = arith.constant 4 : index
    %c0_27 = arith.constant 0 : index
    %c0_28 = arith.constant 0 : index
    %40 = vector.load %arg6[%c4, %c0_27, %c0_28] : memref<49x128x128xbf16, #tpu.memory_space<vmem>>, vector<1x128x128xbf16>
    %41 = vector.shape_cast %40 : vector<1x128x128xbf16> to vector<128x128xbf16>
    %cst_29 = arith.constant dense<0.000000e+00> : vector<16x128xf32>
    %42 = tpu.matmul %39, %41, %cst_29 {dimension_numbers = #tpu.dot_dimension_numbers<[1], [0], [0], [1], [0, 0, 1, 1], [], []>} : vector<16x128xbf16>, vector<128x128xbf16>, vector<16x128xf32> -> vector<16x128xf32>
    %43 = arith.addf %38, %42 : vector<16x128xf32>
    %44 = vector.extract_strided_slice %17 {offsets = [80, 0], sizes = [16, 128], strides = [1, 1]} : vector<784x128xbf16> to vector<16x128xbf16>
    %c5 = arith.constant 5 : index
    %c0_30 = arith.constant 0 : index
    %c0_31 = arith.constant 0 : index
    %45 = vector.load %arg6[%c5, %c0_30, %c0_31] : memref<49x128x128xbf16, #tpu.memory_space<vmem>>, vector<1x128x128xbf16>
    %46 = vector.shape_cast %45 : vector<1x128x128xbf16> to vector<128x128xbf16>
    %cst_32 = arith.constant dense<0.000000e+00> : vector<16x128xf32>
    %47 = tpu.matmul %44, %46, %cst_32 {dimension_numbers = #tpu.dot_dimension_numbers<[1], [0], [0], [1], [0, 0, 1, 1], [], []>} : vector<16x128xbf16>, vector<128x128xbf16>, vector<16x128xf32> -> vector<16x128xf32>
    %48 = arith.addf %43, %47 : vector<16x128xf32>
    %49 = vector.extract_strided_slice %17 {offsets = [96, 0], sizes = [16, 128], strides = [1, 1]} : vector<784x128xbf16> to vector<16x128xbf16>
    %c6 = arith.constant 6 : index
    %c0_33 = arith.constant 0 : index
    %c0_34 = arith.constant 0 : index
    %50 = vector.load %arg6[%c6, %c0_33, %c0_34] : memref<49x128x128xbf16, #tpu.memory_space<vmem>>, vector<1x128x128xbf16>
    %51 = vector.shape_cast %50 : vector<1x128x128xbf16> to vector<128x128xbf16>
    %cst_35 = arith.constant dense<0.000000e+00> : vector<16x128xf32>
    %52 = tpu.matmul %49, %51, %cst_35 {dimension_numbers = #tpu.dot_dimension_numbers<[1], [0], [0], [1], [0, 0, 1, 1], [], []>} : vector<16x128xbf16>, vector<128x128xbf16>, vector<16x128xf32> -> vector<16x128xf32>
    %53 = arith.addf %48, %52 : vector<16x128xf32>
    %54 = vector.extract_strided_slice %17 {offsets = [112, 0], sizes = [16, 128], strides = [1, 1]} : vector<784x128xbf16> to vector<16x128xbf16>
    %c7 = arith.constant 7 : index
    %c0_36 = arith.constant 0 : index
    %c0_37 = arith.constant 0 : index
    %55 = vector.load %arg6[%c7, %c0_36, %c0_37] : memref<49x128x128xbf16, #tpu.memory_space<vmem>>, vector<1x128x128xbf16>
    %56 = vector.shape_cast %55 : vector<1x128x128xbf16> to vector<128x128xbf16>
    %cst_38 = arith.constant dense<0.000000e+00> : vector<16x128xf32>
    %57 = tpu.matmul %54, %56, %cst_38 {dimension_numbers = #tpu.dot_dimension_numbers<[1], [0], [0], [1], [0, 0, 1, 1], [], []>} : vector<16x128xbf16>, vector<128x128xbf16>, vector<16x128xf32> -> vector<16x128xf32>
    %58 = arith.addf %53, %57 : vector<16x128xf32>
    %59 = vector.extract_strided_slice %17 {offsets = [128, 0], sizes = [16, 128], strides = [1, 1]} : vector<784x128xbf16> to vector<16x128xbf16>
    %c8 = arith.constant 8 : index
    %c0_39 = arith.constant 0 : index
    %c0_40 = arith.constant 0 : index
    %60 = vector.load %arg6[%c8, %c0_39, %c0_40] : memref<49x128x128xbf16, #tpu.memory_space<vmem>>, vector<1x128x128xbf16>
    %61 = vector.shape_cast %60 : vector<1x128x128xbf16> to vector<128x128xbf16>
    %cst_41 = arith.constant dense<0.000000e+00> : vector<16x128xf32>
    %62 = tpu.matmul %59, %61, %cst_41 {dimension_numbers = #tpu.dot_dimension_numbers<[1], [0], [0], [1], [0, 0, 1, 1], [], []>} : vector<16x128xbf16>, vector<128x128xbf16>, vector<16x128xf32> -> vector<16x128xf32>
    %63 = arith.addf %58, %62 : vector<16x128xf32>
    %64 = vector.extract_strided_slice %17 {offsets = [144, 0], sizes = [16, 128], strides = [1, 1]} : vector<784x128xbf16> to vector<16x128xbf16>
    %c9 = arith.constant 9 : index
    %c0_42 = arith.constant 0 : index
    %c0_43 = arith.constant 0 : index
    %65 = vector.load %arg6[%c9, %c0_42, %c0_43] : memref<49x128x128xbf16, #tpu.memory_space<vmem>>, vector<1x128x128xbf16>
    %66 = vector.shape_cast %65 : vector<1x128x128xbf16> to vector<128x128xbf16>
    %cst_44 = arith.constant dense<0.000000e+00> : vector<16x128xf32>
    %67 = tpu.matmul %64, %66, %cst_44 {dimension_numbers = #tpu.dot_dimension_numbers<[1], [0], [0], [1], [0, 0, 1, 1], [], []>} : vector<16x128xbf16>, vector<128x128xbf16>, vector<16x128xf32> -> vector<16x128xf32>
    %68 = arith.addf %63, %67 : vector<16x128xf32>
    %69 = vector.extract_strided_slice %17 {offsets = [160, 0], sizes = [16, 128], strides = [1, 1]} : vector<784x128xbf16> to vector<16x128xbf16>
    %c10 = arith.constant 10 : index
    %c0_45 = arith.constant 0 : index
    %c0_46 = arith.constant 0 : index
    %70 = vector.load %arg6[%c10, %c0_45, %c0_46] : memref<49x128x128xbf16, #tpu.memory_space<vmem>>, vector<1x128x128xbf16>
    %71 = vector.shape_cast %70 : vector<1x128x128xbf16> to vector<128x128xbf16>
    %cst_47 = arith.constant dense<0.000000e+00> : vector<16x128xf32>
    %72 = tpu.matmul %69, %71, %cst_47 {dimension_numbers = #tpu.dot_dimension_numbers<[1], [0], [0], [1], [0, 0, 1, 1], [], []>} : vector<16x128xbf16>, vector<128x128xbf16>, vector<16x128xf32> -> vector<16x128xf32>
    %73 = arith.addf %68, %72 : vector<16x128xf32>
    %74 = vector.extract_strided_slice %17 {offsets = [176, 0], sizes = [16, 128], strides = [1, 1]} : vector<784x128xbf16> to vector<16x128xbf16>
    %c11 = arith.constant 11 : index
    %c0_48 = arith.constant 0 : index
    %c0_49 = arith.constant 0 : index
    %75 = vector.load %arg6[%c11, %c0_48, %c0_49] : memref<49x128x128xbf16, #tpu.memory_space<vmem>>, vector<1x128x128xbf16>
    %76 = vector.shape_cast %75 : vector<1x128x128xbf16> to vector<128x128xbf16>
    %cst_50 = arith.constant dense<0.000000e+00> : vector<16x128xf32>
    %77 = tpu.matmul %74, %76, %cst_50 {dimension_numbers = #tpu.dot_dimension_numbers<[1], [0], [0], [1], [0, 0, 1, 1], [], []>} : vector<16x128xbf16>, vector<128x128xbf16>, vector<16x128xf32> -> vector<16x128xf32>
    %78 = arith.addf %73, %77 : vector<16x128xf32>
    %79 = vector.extract_strided_slice %17 {offsets = [192, 0], sizes = [16, 128], strides = [1, 1]} : vector<784x128xbf16> to vector<16x128xbf16>
    %c12 = arith.constant 12 : index
    %c0_51 = arith.constant 0 : index
    %c0_52 = arith.constant 0 : index
    %80 = vector.load %arg6[%c12, %c0_51, %c0_52] : memref<49x128x128xbf16, #tpu.memory_space<vmem>>, vector<1x128x128xbf16>
    %81 = vector.shape_cast %80 : vector<1x128x128xbf16> to vector<128x128xbf16>
    %cst_53 = arith.constant dense<0.000000e+00> : vector<16x128xf32>
    %82 = tpu.matmul %79, %81, %cst_53 {dimension_numbers = #tpu.dot_dimension_numbers<[1], [0], [0], [1], [0, 0, 1, 1], [], []>} : vector<16x128xbf16>, vector<128x128xbf16>, vector<16x128xf32> -> vector<16x128xf32>
    %83 = arith.addf %78, %82 : vector<16x128xf32>
    %84 = vector.extract_strided_slice %17 {offsets = [208, 0], sizes = [16, 128], strides = [1, 1]} : vector<784x128xbf16> to vector<16x128xbf16>
    %c13 = arith.constant 13 : index
    %c0_54 = arith.constant 0 : index
    %c0_55 = arith.constant 0 : index
    %85 = vector.load %arg6[%c13, %c0_54, %c0_55] : memref<49x128x128xbf16, #tpu.memory_space<vmem>>, vector<1x128x128xbf16>
    %86 = vector.shape_cast %85 : vector<1x128x128xbf16> to vector<128x128xbf16>
    %cst_56 = arith.constant dense<0.000000e+00> : vector<16x128xf32>
    %87 = tpu.matmul %84, %86, %cst_56 {dimension_numbers = #tpu.dot_dimension_numbers<[1], [0], [0], [1], [0, 0, 1, 1], [], []>} : vector<16x128xbf16>, vector<128x128xbf16>, vector<16x128xf32> -> vector<16x128xf32>
    %88 = arith.addf %83, %87 : vector<16x128xf32>
    %89 = vector.extract_strided_slice %17 {offsets = [224, 0], sizes = [16, 128], strides = [1, 1]} : vector<784x128xbf16> to vector<16x128xbf16>
    %c14 = arith.constant 14 : index
    %c0_57 = arith.constant 0 : index
    %c0_58 = arith.constant 0 : index
    %90 = vector.load %arg6[%c14, %c0_57, %c0_58] : memref<49x128x128xbf16, #tpu.memory_space<vmem>>, vector<1x128x128xbf16>
    %91 = vector.shape_cast %90 : vector<1x128x128xbf16> to vector<128x128xbf16>
    %cst_59 = arith.constant dense<0.000000e+00> : vector<16x128xf32>
    %92 = tpu.matmul %89, %91, %cst_59 {dimension_numbers = #tpu.dot_dimension_numbers<[1], [0], [0], [1], [0, 0, 1, 1], [], []>} : vector<16x128xbf16>, vector<128x128xbf16>, vector<16x128xf32> -> vector<16x128xf32>
    %93 = arith.addf %88, %92 : vector<16x128xf32>
    %94 = vector.extract_strided_slice %17 {offsets = [240, 0], sizes = [16, 128], strides = [1, 1]} : vector<784x128xbf16> to vector<16x128xbf16>
    %c15 = arith.constant 15 : index
    %c0_60 = arith.constant 0 : index
    %c0_61 = arith.constant 0 : index
    %95 = vector.load %arg6[%c15, %c0_60, %c0_61] : memref<49x128x128xbf16, #tpu.memory_space<vmem>>, vector<1x128x128xbf16>
    %96 = vector.shape_cast %95 : vector<1x128x128xbf16> to vector<128x128xbf16>
    %cst_62 = arith.constant dense<0.000000e+00> : vector<16x128xf32>
    %97 = tpu.matmul %94, %96, %cst_62 {dimension_numbers = #tpu.dot_dimension_numbers<[1], [0], [0], [1], [0, 0, 1, 1], [], []>} : vector<16x128xbf16>, vector<128x128xbf16>, vector<16x128xf32> -> vector<16x128xf32>
    %98 = arith.addf %93, %97 : vector<16x128xf32>
    %99 = vector.extract_strided_slice %17 {offsets = [256, 0], sizes = [16, 128], strides = [1, 1]} : vector<784x128xbf16> to vector<16x128xbf16>
    %c16 = arith.constant 16 : index
    %c0_63 = arith.constant 0 : index
    %c0_64 = arith.constant 0 : index
    %100 = vector.load %arg6[%c16, %c0_63, %c0_64] : memref<49x128x128xbf16, #tpu.memory_space<vmem>>, vector<1x128x128xbf16>
    %101 = vector.shape_cast %100 : vector<1x128x128xbf16> to vector<128x128xbf16>
    %cst_65 = arith.constant dense<0.000000e+00> : vector<16x128xf32>
    %102 = tpu.matmul %99, %101, %cst_65 {dimension_numbers = #tpu.dot_dimension_numbers<[1], [0], [0], [1], [0, 0, 1, 1], [], []>} : vector<16x128xbf16>, vector<128x128xbf16>, vector<16x128xf32> -> vector<16x128xf32>
    %103 = arith.addf %98, %102 : vector<16x128xf32>
    %104 = vector.extract_strided_slice %17 {offsets = [272, 0], sizes = [16, 128], strides = [1, 1]} : vector<784x128xbf16> to vector<16x128xbf16>
    %c17 = arith.constant 17 : index
    %c0_66 = arith.constant 0 : index
    %c0_67 = arith.constant 0 : index
    %105 = vector.load %arg6[%c17, %c0_66, %c0_67] : memref<49x128x128xbf16, #tpu.memory_space<vmem>>, vector<1x128x128xbf16>
    %106 = vector.shape_cast %105 : vector<1x128x128xbf16> to vector<128x128xbf16>
    %cst_68 = arith.constant dense<0.000000e+00> : vector<16x128xf32>
    %107 = tpu.matmul %104, %106, %cst_68 {dimension_numbers = #tpu.dot_dimension_numbers<[1], [0], [0], [1], [0, 0, 1, 1], [], []>} : vector<16x128xbf16>, vector<128x128xbf16>, vector<16x128xf32> -> vector<16x128xf32>
    %108 = arith.addf %103, %107 : vector<16x128xf32>
    %109 = vector.extract_strided_slice %17 {offsets = [288, 0], sizes = [16, 128], strides = [1, 1]} : vector<784x128xbf16> to vector<16x128xbf16>
    %c18 = arith.constant 18 : index
    %c0_69 = arith.constant 0 : index
    %c0_70 = arith.constant 0 : index
    %110 = vector.load %arg6[%c18, %c0_69, %c0_70] : memref<49x128x128xbf16, #tpu.memory_space<vmem>>, vector<1x128x128xbf16>
    %111 = vector.shape_cast %110 : vector<1x128x128xbf16> to vector<128x128xbf16>
    %cst_71 = arith.constant dense<0.000000e+00> : vector<16x128xf32>
    %112 = tpu.matmul %109, %111, %cst_71 {dimension_numbers = #tpu.dot_dimension_numbers<[1], [0], [0], [1], [0, 0, 1, 1], [], []>} : vector<16x128xbf16>, vector<128x128xbf16>, vector<16x128xf32> -> vector<16x128xf32>
    %113 = arith.addf %108, %112 : vector<16x128xf32>
    %114 = vector.extract_strided_slice %17 {offsets = [304, 0], sizes = [16, 128], strides = [1, 1]} : vector<784x128xbf16> to vector<16x128xbf16>
    %c19 = arith.constant 19 : index
    %c0_72 = arith.constant 0 : index
    %c0_73 = arith.constant 0 : index
    %115 = vector.load %arg6[%c19, %c0_72, %c0_73] : memref<49x128x128xbf16, #tpu.memory_space<vmem>>, vector<1x128x128xbf16>
    %116 = vector.shape_cast %115 : vector<1x128x128xbf16> to vector<128x128xbf16>
    %cst_74 = arith.constant dense<0.000000e+00> : vector<16x128xf32>
    %117 = tpu.matmul %114, %116, %cst_74 {dimension_numbers = #tpu.dot_dimension_numbers<[1], [0], [0], [1], [0, 0, 1, 1], [], []>} : vector<16x128xbf16>, vector<128x128xbf16>, vector<16x128xf32> -> vector<16x128xf32>
    %118 = arith.addf %113, %117 : vector<16x128xf32>
    %119 = vector.extract_strided_slice %17 {offsets = [320, 0], sizes = [16, 128], strides = [1, 1]} : vector<784x128xbf16> to vector<16x128xbf16>
    %c20 = arith.constant 20 : index
    %c0_75 = arith.constant 0 : index
    %c0_76 = arith.constant 0 : index
    %120 = vector.load %arg6[%c20, %c0_75, %c0_76] : memref<49x128x128xbf16, #tpu.memory_space<vmem>>, vector<1x128x128xbf16>
    %121 = vector.shape_cast %120 : vector<1x128x128xbf16> to vector<128x128xbf16>
    %cst_77 = arith.constant dense<0.000000e+00> : vector<16x128xf32>
    %122 = tpu.matmul %119, %121, %cst_77 {dimension_numbers = #tpu.dot_dimension_numbers<[1], [0], [0], [1], [0, 0, 1, 1], [], []>} : vector<16x128xbf16>, vector<128x128xbf16>, vector<16x128xf32> -> vector<16x128xf32>
    %123 = arith.addf %118, %122 : vector<16x128xf32>
    %124 = vector.extract_strided_slice %17 {offsets = [336, 0], sizes = [16, 128], strides = [1, 1]} : vector<784x128xbf16> to vector<16x128xbf16>
    %c21 = arith.constant 21 : index
    %c0_78 = arith.constant 0 : index
    %c0_79 = arith.constant 0 : index
    %125 = vector.load %arg6[%c21, %c0_78, %c0_79] : memref<49x128x128xbf16, #tpu.memory_space<vmem>>, vector<1x128x128xbf16>
    %126 = vector.shape_cast %125 : vector<1x128x128xbf16> to vector<128x128xbf16>
    %cst_80 = arith.constant dense<0.000000e+00> : vector<16x128xf32>
    %127 = tpu.matmul %124, %126, %cst_80 {dimension_numbers = #tpu.dot_dimension_numbers<[1], [0], [0], [1], [0, 0, 1, 1], [], []>} : vector<16x128xbf16>, vector<128x128xbf16>, vector<16x128xf32> -> vector<16x128xf32>
    %128 = arith.addf %123, %127 : vector<16x128xf32>
    %129 = vector.extract_strided_slice %17 {offsets = [352, 0], sizes = [16, 128], strides = [1, 1]} : vector<784x128xbf16> to vector<16x128xbf16>
    %c22 = arith.constant 22 : index
    %c0_81 = arith.constant 0 : index
    %c0_82 = arith.constant 0 : index
    %130 = vector.load %arg6[%c22, %c0_81, %c0_82] : memref<49x128x128xbf16, #tpu.memory_space<vmem>>, vector<1x128x128xbf16>
    %131 = vector.shape_cast %130 : vector<1x128x128xbf16> to vector<128x128xbf16>
    %cst_83 = arith.constant dense<0.000000e+00> : vector<16x128xf32>
    %132 = tpu.matmul %129, %131, %cst_83 {dimension_numbers = #tpu.dot_dimension_numbers<[1], [0], [0], [1], [0, 0, 1, 1], [], []>} : vector<16x128xbf16>, vector<128x128xbf16>, vector<16x128xf32> -> vector<16x128xf32>
    %133 = arith.addf %128, %132 : vector<16x128xf32>
    %134 = vector.extract_strided_slice %17 {offsets = [368, 0], sizes = [16, 128], strides = [1, 1]} : vector<784x128xbf16> to vector<16x128xbf16>
    %c23 = arith.constant 23 : index
    %c0_84 = arith.constant 0 : index
    %c0_85 = arith.constant 0 : index
    %135 = vector.load %arg6[%c23, %c0_84, %c0_85] : memref<49x128x128xbf16, #tpu.memory_space<vmem>>, vector<1x128x128xbf16>
    %136 = vector.shape_cast %135 : vector<1x128x128xbf16> to vector<128x128xbf16>
    %cst_86 = arith.constant dense<0.000000e+00> : vector<16x128xf32>
    %137 = tpu.matmul %134, %136, %cst_86 {dimension_numbers = #tpu.dot_dimension_numbers<[1], [0], [0], [1], [0, 0, 1, 1], [], []>} : vector<16x128xbf16>, vector<128x128xbf16>, vector<16x128xf32> -> vector<16x128xf32>
    %138 = arith.addf %133, %137 : vector<16x128xf32>
    %139 = vector.extract_strided_slice %17 {offsets = [384, 0], sizes = [16, 128], strides = [1, 1]} : vector<784x128xbf16> to vector<16x128xbf16>
    %c24 = arith.constant 24 : index
    %c0_87 = arith.constant 0 : index
    %c0_88 = arith.constant 0 : index
    %140 = vector.load %arg6[%c24, %c0_87, %c0_88] : memref<49x128x128xbf16, #tpu.memory_space<vmem>>, vector<1x128x128xbf16>
    %141 = vector.shape_cast %140 : vector<1x128x128xbf16> to vector<128x128xbf16>
    %cst_89 = arith.constant dense<0.000000e+00> : vector<16x128xf32>
    %142 = tpu.matmul %139, %141, %cst_89 {dimension_numbers = #tpu.dot_dimension_numbers<[1], [0], [0], [1], [0, 0, 1, 1], [], []>} : vector<16x128xbf16>, vector<128x128xbf16>, vector<16x128xf32> -> vector<16x128xf32>
    %143 = arith.addf %138, %142 : vector<16x128xf32>
    %144 = vector.extract_strided_slice %17 {offsets = [400, 0], sizes = [16, 128], strides = [1, 1]} : vector<784x128xbf16> to vector<16x128xbf16>
    %c25 = arith.constant 25 : index
    %c0_90 = arith.constant 0 : index
    %c0_91 = arith.constant 0 : index
    %145 = vector.load %arg6[%c25, %c0_90, %c0_91] : memref<49x128x128xbf16, #tpu.memory_space<vmem>>, vector<1x128x128xbf16>
    %146 = vector.shape_cast %145 : vector<1x128x128xbf16> to vector<128x128xbf16>
    %cst_92 = arith.constant dense<0.000000e+00> : vector<16x128xf32>
    %147 = tpu.matmul %144, %146, %cst_92 {dimension_numbers = #tpu.dot_dimension_numbers<[1], [0], [0], [1], [0, 0, 1, 1], [], []>} : vector<16x128xbf16>, vector<128x128xbf16>, vector<16x128xf32> -> vector<16x128xf32>
    %148 = arith.addf %143, %147 : vector<16x128xf32>
    %149 = vector.extract_strided_slice %17 {offsets = [416, 0], sizes = [16, 128], strides = [1, 1]} : vector<784x128xbf16> to vector<16x128xbf16>
    %c26 = arith.constant 26 : index
    %c0_93 = arith.constant 0 : index
    %c0_94 = arith.constant 0 : index
    %150 = vector.load %arg6[%c26, %c0_93, %c0_94] : memref<49x128x128xbf16, #tpu.memory_space<vmem>>, vector<1x128x128xbf16>
    %151 = vector.shape_cast %150 : vector<1x128x128xbf16> to vector<128x128xbf16>
    %cst_95 = arith.constant dense<0.000000e+00> : vector<16x128xf32>
    %152 = tpu.matmul %149, %151, %cst_95 {dimension_numbers = #tpu.dot_dimension_numbers<[1], [0], [0], [1], [0, 0, 1, 1], [], []>} : vector<16x128xbf16>, vector<128x128xbf16>, vector<16x128xf32> -> vector<16x128xf32>
    %153 = arith.addf %148, %152 : vector<16x128xf32>
    %154 = vector.extract_strided_slice %17 {offsets = [432, 0], sizes = [16, 128], strides = [1, 1]} : vector<784x128xbf16> to vector<16x128xbf16>
    %c27 = arith.constant 27 : index
    %c0_96 = arith.constant 0 : index
    %c0_97 = arith.constant 0 : index
    %155 = vector.load %arg6[%c27, %c0_96, %c0_97] : memref<49x128x128xbf16, #tpu.memory_space<vmem>>, vector<1x128x128xbf16>
    %156 = vector.shape_cast %155 : vector<1x128x128xbf16> to vector<128x128xbf16>
    %cst_98 = arith.constant dense<0.000000e+00> : vector<16x128xf32>
    %157 = tpu.matmul %154, %156, %cst_98 {dimension_numbers = #tpu.dot_dimension_numbers<[1], [0], [0], [1], [0, 0, 1, 1], [], []>} : vector<16x128xbf16>, vector<128x128xbf16>, vector<16x128xf32> -> vector<16x128xf32>
    %158 = arith.addf %153, %157 : vector<16x128xf32>
    %159 = vector.extract_strided_slice %17 {offsets = [448, 0], sizes = [16, 128], strides = [1, 1]} : vector<784x128xbf16> to vector<16x128xbf16>
    %c28 = arith.constant 28 : index
    %c0_99 = arith.constant 0 : index
    %c0_100 = arith.constant 0 : index
    %160 = vector.load %arg6[%c28, %c0_99, %c0_100] : memref<49x128x128xbf16, #tpu.memory_space<vmem>>, vector<1x128x128xbf16>
    %161 = vector.shape_cast %160 : vector<1x128x128xbf16> to vector<128x128xbf16>
    %cst_101 = arith.constant dense<0.000000e+00> : vector<16x128xf32>
    %162 = tpu.matmul %159, %161, %cst_101 {dimension_numbers = #tpu.dot_dimension_numbers<[1], [0], [0], [1], [0, 0, 1, 1], [], []>} : vector<16x128xbf16>, vector<128x128xbf16>, vector<16x128xf32> -> vector<16x128xf32>
    %163 = arith.addf %158, %162 : vector<16x128xf32>
    %164 = vector.extract_strided_slice %17 {offsets = [464, 0], sizes = [16, 128], strides = [1, 1]} : vector<784x128xbf16> to vector<16x128xbf16>
    %c29 = arith.constant 29 : index
    %c0_102 = arith.constant 0 : index
    %c0_103 = arith.constant 0 : index
    %165 = vector.load %arg6[%c29, %c0_102, %c0_103] : memref<49x128x128xbf16, #tpu.memory_space<vmem>>, vector<1x128x128xbf16>
    %166 = vector.shape_cast %165 : vector<1x128x128xbf16> to vector<128x128xbf16>
    %cst_104 = arith.constant dense<0.000000e+00> : vector<16x128xf32>
    %167 = tpu.matmul %164, %166, %cst_104 {dimension_numbers = #tpu.dot_dimension_numbers<[1], [0], [0], [1], [0, 0, 1, 1], [], []>} : vector<16x128xbf16>, vector<128x128xbf16>, vector<16x128xf32> -> vector<16x128xf32>
    %168 = arith.addf %163, %167 : vector<16x128xf32>
    %169 = vector.extract_strided_slice %17 {offsets = [480, 0], sizes = [16, 128], strides = [1, 1]} : vector<784x128xbf16> to vector<16x128xbf16>
    %c30 = arith.constant 30 : index
    %c0_105 = arith.constant 0 : index
    %c0_106 = arith.constant 0 : index
    %170 = vector.load %arg6[%c30, %c0_105, %c0_106] : memref<49x128x128xbf16, #tpu.memory_space<vmem>>, vector<1x128x128xbf16>
    %171 = vector.shape_cast %170 : vector<1x128x128xbf16> to vector<128x128xbf16>
    %cst_107 = arith.constant dense<0.000000e+00> : vector<16x128xf32>
    %172 = tpu.matmul %169, %171, %cst_107 {dimension_numbers = #tpu.dot_dimension_numbers<[1], [0], [0], [1], [0, 0, 1, 1], [], []>} : vector<16x128xbf16>, vector<128x128xbf16>, vector<16x128xf32> -> vector<16x128xf32>
    %173 = arith.addf %168, %172 : vector<16x128xf32>
    %174 = vector.extract_strided_slice %17 {offsets = [496, 0], sizes = [16, 128], strides = [1, 1]} : vector<784x128xbf16> to vector<16x128xbf16>
    %c31 = arith.constant 31 : index
    %c0_108 = arith.constant 0 : index
    %c0_109 = arith.constant 0 : index
    %175 = vector.load %arg6[%c31, %c0_108, %c0_109] : memref<49x128x128xbf16, #tpu.memory_space<vmem>>, vector<1x128x128xbf16>
    %176 = vector.shape_cast %175 : vector<1x128x128xbf16> to vector<128x128xbf16>
    %cst_110 = arith.constant dense<0.000000e+00> : vector<16x128xf32>
    %177 = tpu.matmul %174, %176, %cst_110 {dimension_numbers = #tpu.dot_dimension_numbers<[1], [0], [0], [1], [0, 0, 1, 1], [], []>} : vector<16x128xbf16>, vector<128x128xbf16>, vector<16x128xf32> -> vector<16x128xf32>
    %178 = arith.addf %173, %177 : vector<16x128xf32>
    %179 = vector.extract_strided_slice %17 {offsets = [512, 0], sizes = [16, 128], strides = [1, 1]} : vector<784x128xbf16> to vector<16x128xbf16>
    %c32 = arith.constant 32 : index
    %c0_111 = arith.constant 0 : index
    %c0_112 = arith.constant 0 : index
    %180 = vector.load %arg6[%c32, %c0_111, %c0_112] : memref<49x128x128xbf16, #tpu.memory_space<vmem>>, vector<1x128x128xbf16>
    %181 = vector.shape_cast %180 : vector<1x128x128xbf16> to vector<128x128xbf16>
    %cst_113 = arith.constant dense<0.000000e+00> : vector<16x128xf32>
    %182 = tpu.matmul %179, %181, %cst_113 {dimension_numbers = #tpu.dot_dimension_numbers<[1], [0], [0], [1], [0, 0, 1, 1], [], []>} : vector<16x128xbf16>, vector<128x128xbf16>, vector<16x128xf32> -> vector<16x128xf32>
    %183 = arith.addf %178, %182 : vector<16x128xf32>
    %184 = vector.extract_strided_slice %17 {offsets = [528, 0], sizes = [16, 128], strides = [1, 1]} : vector<784x128xbf16> to vector<16x128xbf16>
    %c33 = arith.constant 33 : index
    %c0_114 = arith.constant 0 : index
    %c0_115 = arith.constant 0 : index
    %185 = vector.load %arg6[%c33, %c0_114, %c0_115] : memref<49x128x128xbf16, #tpu.memory_space<vmem>>, vector<1x128x128xbf16>
    %186 = vector.shape_cast %185 : vector<1x128x128xbf16> to vector<128x128xbf16>
    %cst_116 = arith.constant dense<0.000000e+00> : vector<16x128xf32>
    %187 = tpu.matmul %184, %186, %cst_116 {dimension_numbers = #tpu.dot_dimension_numbers<[1], [0], [0], [1], [0, 0, 1, 1], [], []>} : vector<16x128xbf16>, vector<128x128xbf16>, vector<16x128xf32> -> vector<16x128xf32>
    %188 = arith.addf %183, %187 : vector<16x128xf32>
    %189 = vector.extract_strided_slice %17 {offsets = [544, 0], sizes = [16, 128], strides = [1, 1]} : vector<784x128xbf16> to vector<16x128xbf16>
    %c34 = arith.constant 34 : index
    %c0_117 = arith.constant 0 : index
    %c0_118 = arith.constant 0 : index
    %190 = vector.load %arg6[%c34, %c0_117, %c0_118] : memref<49x128x128xbf16, #tpu.memory_space<vmem>>, vector<1x128x128xbf16>
    %191 = vector.shape_cast %190 : vector<1x128x128xbf16> to vector<128x128xbf16>
    %cst_119 = arith.constant dense<0.000000e+00> : vector<16x128xf32>
    %192 = tpu.matmul %189, %191, %cst_119 {dimension_numbers = #tpu.dot_dimension_numbers<[1], [0], [0], [1], [0, 0, 1, 1], [], []>} : vector<16x128xbf16>, vector<128x128xbf16>, vector<16x128xf32> -> vector<16x128xf32>
    %193 = arith.addf %188, %192 : vector<16x128xf32>
    %194 = vector.extract_strided_slice %17 {offsets = [560, 0], sizes = [16, 128], strides = [1, 1]} : vector<784x128xbf16> to vector<16x128xbf16>
    %c35 = arith.constant 35 : index
    %c0_120 = arith.constant 0 : index
    %c0_121 = arith.constant 0 : index
    %195 = vector.load %arg6[%c35, %c0_120, %c0_121] : memref<49x128x128xbf16, #tpu.memory_space<vmem>>, vector<1x128x128xbf16>
    %196 = vector.shape_cast %195 : vector<1x128x128xbf16> to vector<128x128xbf16>
    %cst_122 = arith.constant dense<0.000000e+00> : vector<16x128xf32>
    %197 = tpu.matmul %194, %196, %cst_122 {dimension_numbers = #tpu.dot_dimension_numbers<[1], [0], [0], [1], [0, 0, 1, 1], [], []>} : vector<16x128xbf16>, vector<128x128xbf16>, vector<16x128xf32> -> vector<16x128xf32>
    %198 = arith.addf %193, %197 : vector<16x128xf32>
    %199 = vector.extract_strided_slice %17 {offsets = [576, 0], sizes = [16, 128], strides = [1, 1]} : vector<784x128xbf16> to vector<16x128xbf16>
    %c36 = arith.constant 36 : index
    %c0_123 = arith.constant 0 : index
    %c0_124 = arith.constant 0 : index
    %200 = vector.load %arg6[%c36, %c0_123, %c0_124] : memref<49x128x128xbf16, #tpu.memory_space<vmem>>, vector<1x128x128xbf16>
    %201 = vector.shape_cast %200 : vector<1x128x128xbf16> to vector<128x128xbf16>
    %cst_125 = arith.constant dense<0.000000e+00> : vector<16x128xf32>
    %202 = tpu.matmul %199, %201, %cst_125 {dimension_numbers = #tpu.dot_dimension_numbers<[1], [0], [0], [1], [0, 0, 1, 1], [], []>} : vector<16x128xbf16>, vector<128x128xbf16>, vector<16x128xf32> -> vector<16x128xf32>
    %203 = arith.addf %198, %202 : vector<16x128xf32>
    %204 = vector.extract_strided_slice %17 {offsets = [592, 0], sizes = [16, 128], strides = [1, 1]} : vector<784x128xbf16> to vector<16x128xbf16>
    %c37 = arith.constant 37 : index
    %c0_126 = arith.constant 0 : index
    %c0_127 = arith.constant 0 : index
    %205 = vector.load %arg6[%c37, %c0_126, %c0_127] : memref<49x128x128xbf16, #tpu.memory_space<vmem>>, vector<1x128x128xbf16>
    %206 = vector.shape_cast %205 : vector<1x128x128xbf16> to vector<128x128xbf16>
    %cst_128 = arith.constant dense<0.000000e+00> : vector<16x128xf32>
    %207 = tpu.matmul %204, %206, %cst_128 {dimension_numbers = #tpu.dot_dimension_numbers<[1], [0], [0], [1], [0, 0, 1, 1], [], []>} : vector<16x128xbf16>, vector<128x128xbf16>, vector<16x128xf32> -> vector<16x128xf32>
    %208 = arith.addf %203, %207 : vector<16x128xf32>
    %209 = vector.extract_strided_slice %17 {offsets = [608, 0], sizes = [16, 128], strides = [1, 1]} : vector<784x128xbf16> to vector<16x128xbf16>
    %c38 = arith.constant 38 : index
    %c0_129 = arith.constant 0 : index
    %c0_130 = arith.constant 0 : index
    %210 = vector.load %arg6[%c38, %c0_129, %c0_130] : memref<49x128x128xbf16, #tpu.memory_space<vmem>>, vector<1x128x128xbf16>
    %211 = vector.shape_cast %210 : vector<1x128x128xbf16> to vector<128x128xbf16>
    %cst_131 = arith.constant dense<0.000000e+00> : vector<16x128xf32>
    %212 = tpu.matmul %209, %211, %cst_131 {dimension_numbers = #tpu.dot_dimension_numbers<[1], [0], [0], [1], [0, 0, 1, 1], [], []>} : vector<16x128xbf16>, vector<128x128xbf16>, vector<16x128xf32> -> vector<16x128xf32>
    %213 = arith.addf %208, %212 : vector<16x128xf32>
    %214 = vector.extract_strided_slice %17 {offsets = [624, 0], sizes = [16, 128], strides = [1, 1]} : vector<784x128xbf16> to vector<16x128xbf16>
    %c39 = arith.constant 39 : index
    %c0_132 = arith.constant 0 : index
    %c0_133 = arith.constant 0 : index
    %215 = vector.load %arg6[%c39, %c0_132, %c0_133] : memref<49x128x128xbf16, #tpu.memory_space<vmem>>, vector<1x128x128xbf16>
    %216 = vector.shape_cast %215 : vector<1x128x128xbf16> to vector<128x128xbf16>
    %cst_134 = arith.constant dense<0.000000e+00> : vector<16x128xf32>
    %217 = tpu.matmul %214, %216, %cst_134 {dimension_numbers = #tpu.dot_dimension_numbers<[1], [0], [0], [1], [0, 0, 1, 1], [], []>} : vector<16x128xbf16>, vector<128x128xbf16>, vector<16x128xf32> -> vector<16x128xf32>
    %218 = arith.addf %213, %217 : vector<16x128xf32>
    %219 = vector.extract_strided_slice %17 {offsets = [640, 0], sizes = [16, 128], strides = [1, 1]} : vector<784x128xbf16> to vector<16x128xbf16>
    %c40 = arith.constant 40 : index
    %c0_135 = arith.constant 0 : index
    %c0_136 = arith.constant 0 : index
    %220 = vector.load %arg6[%c40, %c0_135, %c0_136] : memref<49x128x128xbf16, #tpu.memory_space<vmem>>, vector<1x128x128xbf16>
    %221 = vector.shape_cast %220 : vector<1x128x128xbf16> to vector<128x128xbf16>
    %cst_137 = arith.constant dense<0.000000e+00> : vector<16x128xf32>
    %222 = tpu.matmul %219, %221, %cst_137 {dimension_numbers = #tpu.dot_dimension_numbers<[1], [0], [0], [1], [0, 0, 1, 1], [], []>} : vector<16x128xbf16>, vector<128x128xbf16>, vector<16x128xf32> -> vector<16x128xf32>
    %223 = arith.addf %218, %222 : vector<16x128xf32>
    %224 = vector.extract_strided_slice %17 {offsets = [656, 0], sizes = [16, 128], strides = [1, 1]} : vector<784x128xbf16> to vector<16x128xbf16>
    %c41 = arith.constant 41 : index
    %c0_138 = arith.constant 0 : index
    %c0_139 = arith.constant 0 : index
    %225 = vector.load %arg6[%c41, %c0_138, %c0_139] : memref<49x128x128xbf16, #tpu.memory_space<vmem>>, vector<1x128x128xbf16>
    %226 = vector.shape_cast %225 : vector<1x128x128xbf16> to vector<128x128xbf16>
    %cst_140 = arith.constant dense<0.000000e+00> : vector<16x128xf32>
    %227 = tpu.matmul %224, %226, %cst_140 {dimension_numbers = #tpu.dot_dimension_numbers<[1], [0], [0], [1], [0, 0, 1, 1], [], []>} : vector<16x128xbf16>, vector<128x128xbf16>, vector<16x128xf32> -> vector<16x128xf32>
    %228 = arith.addf %223, %227 : vector<16x128xf32>
    %229 = vector.extract_strided_slice %17 {offsets = [672, 0], sizes = [16, 128], strides = [1, 1]} : vector<784x128xbf16> to vector<16x128xbf16>
    %c42 = arith.constant 42 : index
    %c0_141 = arith.constant 0 : index
    %c0_142 = arith.constant 0 : index
    %230 = vector.load %arg6[%c42, %c0_141, %c0_142] : memref<49x128x128xbf16, #tpu.memory_space<vmem>>, vector<1x128x128xbf16>
    %231 = vector.shape_cast %230 : vector<1x128x128xbf16> to vector<128x128xbf16>
    %cst_143 = arith.constant dense<0.000000e+00> : vector<16x128xf32>
    %232 = tpu.matmul %229, %231, %cst_143 {dimension_numbers = #tpu.dot_dimension_numbers<[1], [0], [0], [1], [0, 0, 1, 1], [], []>} : vector<16x128xbf16>, vector<128x128xbf16>, vector<16x128xf32> -> vector<16x128xf32>
    %233 = arith.addf %228, %232 : vector<16x128xf32>
    %234 = vector.extract_strided_slice %17 {offsets = [688, 0], sizes = [16, 128], strides = [1, 1]} : vector<784x128xbf16> to vector<16x128xbf16>
    %c43 = arith.constant 43 : index
    %c0_144 = arith.constant 0 : index
    %c0_145 = arith.constant 0 : index
    %235 = vector.load %arg6[%c43, %c0_144, %c0_145] : memref<49x128x128xbf16, #tpu.memory_space<vmem>>, vector<1x128x128xbf16>
    %236 = vector.shape_cast %235 : vector<1x128x128xbf16> to vector<128x128xbf16>
    %cst_146 = arith.constant dense<0.000000e+00> : vector<16x128xf32>
    %237 = tpu.matmul %234, %236, %cst_146 {dimension_numbers = #tpu.dot_dimension_numbers<[1], [0], [0], [1], [0, 0, 1, 1], [], []>} : vector<16x128xbf16>, vector<128x128xbf16>, vector<16x128xf32> -> vector<16x128xf32>
    %238 = arith.addf %233, %237 : vector<16x128xf32>
    %239 = vector.extract_strided_slice %17 {offsets = [704, 0], sizes = [16, 128], strides = [1, 1]} : vector<784x128xbf16> to vector<16x128xbf16>
    %c44 = arith.constant 44 : index
    %c0_147 = arith.constant 0 : index
    %c0_148 = arith.constant 0 : index
    %240 = vector.load %arg6[%c44, %c0_147, %c0_148] : memref<49x128x128xbf16, #tpu.memory_space<vmem>>, vector<1x128x128xbf16>
    %241 = vector.shape_cast %240 : vector<1x128x128xbf16> to vector<128x128xbf16>
    %cst_149 = arith.constant dense<0.000000e+00> : vector<16x128xf32>
    %242 = tpu.matmul %239, %241, %cst_149 {dimension_numbers = #tpu.dot_dimension_numbers<[1], [0], [0], [1], [0, 0, 1, 1], [], []>} : vector<16x128xbf16>, vector<128x128xbf16>, vector<16x128xf32> -> vector<16x128xf32>
    %243 = arith.addf %238, %242 : vector<16x128xf32>
    %244 = vector.extract_strided_slice %17 {offsets = [720, 0], sizes = [16, 128], strides = [1, 1]} : vector<784x128xbf16> to vector<16x128xbf16>
    %c45 = arith.constant 45 : index
    %c0_150 = arith.constant 0 : index
    %c0_151 = arith.constant 0 : index
    %245 = vector.load %arg6[%c45, %c0_150, %c0_151] : memref<49x128x128xbf16, #tpu.memory_space<vmem>>, vector<1x128x128xbf16>
    %246 = vector.shape_cast %245 : vector<1x128x128xbf16> to vector<128x128xbf16>
    %cst_152 = arith.constant dense<0.000000e+00> : vector<16x128xf32>
    %247 = tpu.matmul %244, %246, %cst_152 {dimension_numbers = #tpu.dot_dimension_numbers<[1], [0], [0], [1], [0, 0, 1, 1], [], []>} : vector<16x128xbf16>, vector<128x128xbf16>, vector<16x128xf32> -> vector<16x128xf32>
    %248 = arith.addf %243, %247 : vector<16x128xf32>
    %249 = vector.extract_strided_slice %17 {offsets = [736, 0], sizes = [16, 128], strides = [1, 1]} : vector<784x128xbf16> to vector<16x128xbf16>
    %c46 = arith.constant 46 : index
    %c0_153 = arith.constant 0 : index
    %c0_154 = arith.constant 0 : index
    %250 = vector.load %arg6[%c46, %c0_153, %c0_154] : memref<49x128x128xbf16, #tpu.memory_space<vmem>>, vector<1x128x128xbf16>
    %251 = vector.shape_cast %250 : vector<1x128x128xbf16> to vector<128x128xbf16>
    %cst_155 = arith.constant dense<0.000000e+00> : vector<16x128xf32>
    %252 = tpu.matmul %249, %251, %cst_155 {dimension_numbers = #tpu.dot_dimension_numbers<[1], [0], [0], [1], [0, 0, 1, 1], [], []>} : vector<16x128xbf16>, vector<128x128xbf16>, vector<16x128xf32> -> vector<16x128xf32>
    %253 = arith.addf %248, %252 : vector<16x128xf32>
    %254 = vector.extract_strided_slice %17 {offsets = [752, 0], sizes = [16, 128], strides = [1, 1]} : vector<784x128xbf16> to vector<16x128xbf16>
    %c47 = arith.constant 47 : index
    %c0_156 = arith.constant 0 : index
    %c0_157 = arith.constant 0 : index
    %255 = vector.load %arg6[%c47, %c0_156, %c0_157] : memref<49x128x128xbf16, #tpu.memory_space<vmem>>, vector<1x128x128xbf16>
    %256 = vector.shape_cast %255 : vector<1x128x128xbf16> to vector<128x128xbf16>
    %cst_158 = arith.constant dense<0.000000e+00> : vector<16x128xf32>
    %257 = tpu.matmul %254, %256, %cst_158 {dimension_numbers = #tpu.dot_dimension_numbers<[1], [0], [0], [1], [0, 0, 1, 1], [], []>} : vector<16x128xbf16>, vector<128x128xbf16>, vector<16x128xf32> -> vector<16x128xf32>
    %258 = arith.addf %253, %257 : vector<16x128xf32>
    %259 = vector.extract_strided_slice %17 {offsets = [768, 0], sizes = [16, 128], strides = [1, 1]} : vector<784x128xbf16> to vector<16x128xbf16>
    %c48 = arith.constant 48 : index
    %c0_159 = arith.constant 0 : index
    %c0_160 = arith.constant 0 : index
    %260 = vector.load %arg6[%c48, %c0_159, %c0_160] : memref<49x128x128xbf16, #tpu.memory_space<vmem>>, vector<1x128x128xbf16>
    %261 = vector.shape_cast %260 : vector<1x128x128xbf16> to vector<128x128xbf16>
    %cst_161 = arith.constant dense<0.000000e+00> : vector<16x128xf32>
    %262 = tpu.matmul %259, %261, %cst_161 {dimension_numbers = #tpu.dot_dimension_numbers<[1], [0], [0], [1], [0, 0, 1, 1], [], []>} : vector<16x128xbf16>, vector<128x128xbf16>, vector<16x128xf32> -> vector<16x128xf32>
    %263 = arith.addf %258, %262 : vector<16x128xf32>
    %c0_162 = arith.constant 0 : index
    %c0_163 = arith.constant 0 : index
    %264 = vector.load %arg7[%c0_162, %c0_163] : memref<1x128xf32, #tpu.memory_space<vmem>>, vector<1x128xf32>
    %265 = vector.broadcast %264 : vector<1x128xf32> to vector<16x128xf32>
    %266 = arith.addf %263, %265 : vector<16x128xf32>
    %c0_164 = arith.constant 0 : index
    %c0_165 = arith.constant 0 : index
    %267 = vector.load %arg8[%c0_164, %c0_165] : memref<16x128xf32, #tpu.memory_space<vmem>>, vector<16x128xf32>
    tpu.vector_store %arg8[%c0_164, %c0_165], %266 {strides = array<i32>} : memref<16x128xf32, #tpu.memory_space<vmem>>, vector<16x128xf32>,
    return
  }
  func.func @transform_0(%arg0: i32) -> (i32, i32, i32) {
    %c0_i32 = arith.constant 0 : i32
    %c0_i32_0 = arith.constant 0 : i32
    %c0_i32_1 = arith.constant 0 : i32
    return %c0_i32, %arg0, %c0_i32_0 : i32, i32, i32
  }
  func.func @transform_1(%arg0: i32) -> (i32, i32) {
    %c0_i32 = arith.constant 0 : i32
    %c0_i32_0 = arith.constant 0 : i32
    %c0_i32_1 = arith.constant 0 : i32
    return %c0_i32, %c0_i32_0 : i32, i32
  }
  func.func @transform_2(%arg0: i32) -> (i32, i32) {
    %c0_i32 = arith.constant 0 : i32
    %c0_i32_0 = arith.constant 0 : i32
    %c0_i32_1 = arith.constant 0 : i32
    return %c0_i32, %c0_i32_0 : i32, i32
  }
  func.func @transform_3(%arg0: i32) -> (i32, i32) {
    %c0_i32 = arith.constant 0 : i32
    %c0_i32_0 = arith.constant 0 : i32
    %c0_i32_1 = arith.constant 0 : i32
    return %c0_i32, %c0_i32_0 : i32, i32
  }
  func.func @transform_4(%arg0: i32) -> (i32, i32) {
    %c0_i32 = arith.constant 0 : i32
    %c0_i32_0 = arith.constant 0 : i32
    %c0_i32_1 = arith.constant 0 : i32
    return %c0_i32, %c0_i32_0 : i32, i32
  }
  func.func @transform_5(%arg0: i32) -> (i32, i32, i32) {
    %c0_i32 = arith.constant 0 : i32
    %c0_i32_0 = arith.constant 0 : i32
    %c0_i32_1 = arith.constant 0 : i32
    %c0_i32_2 = arith.constant 0 : i32
    return %c0_i32, %c0_i32_0, %c0_i32_1 : i32, i32, i32
  }
  func.func @transform_6(%arg0: i32) -> (i32, i32) {
    %c0_i32 = arith.constant 0 : i32
    %c0_i32_0 = arith.constant 0 : i32
    %c0_i32_1 = arith.constant 0 : i32
    return %c0_i32, %c0_i32_0 : i32, i32
  }
  func.func @transform_7(%arg0: i32) -> (i32, i32) {
    %c0_i32 = arith.constant 0 : i32
    %c0_i32_0 = arith.constant 0 : i32
    return %arg0, %c0_i32 : i32, i32
  }
}

</mosaic_0001>

<bundles_post_ra>
// kernel: _lambda_.1
= control target key start
LH: loop header
LB: loop body
LE: loop exit
PB: predicated region body
PF: predicated region fallthrough
CT: control target
= control target key end

     0   :  { %12 = vsyncpa [#allocation3], 0  ;;  %s9810_s0 = inlined_call_operand.vmem [shape: bf16[49,16,128], index: 0, kind: input, shape index: {}]   ;;  %s9811_s1 = inlined_call_operand.hbm [shape: bf16[128,256], index: 1, kind: input, shape index: {}]   ;;  %s9812_s2 = inlined_call_operand.hbm [shape: f32[1,256], index: 2, kind: input, shape index: {}]   ;;  %s9813_s3 = inlined_call_operand.hbm [shape: bf16[256,128], index: 3, kind: input, shape index: {}]   ;;  %s9814_s4 = inlined_call_operand.hbm [shape: f32[1,128], index: 4, kind: input, shape index: {}]   ;;  %s9815_s5 = inlined_call_operand.hbm [shape: bf16[49,128,128], index: 5, kind: input, shape index: {}]   ;;  %s9816_s6 = inlined_call_operand.hbm [shape: f32[1,128], index: 6, kind: input, shape index: {}]   ;;  %s9817_s7 = inlined_call_operand.vmem [shape: f32[16,128], index: 7, kind: output, shape index: {}]  }
   0x1   :  { %13 = vsyncpa [#allocation5], 0 }
   0x2   :  { %14 = vsyncpa [#allocation8], 0  ;;  %s36_s26 = sshll.u32 %s9812_s2, 4  ;;  %s37_s26 = int_to_ptr.hbm [resolvable:$true] %s36_s26 }
   0x3   :  { %15 = vsyncpa [#allocation11], 0  ;;  %s9053_s27 = smov [#allocation4]   ;;  %s60_s8 = sshll.u32 %s9814_s4, 4  ;;  %s61_s8 = int_to_ptr.hbm [resolvable:$true] %s60_s8 }
   0x4   :  { %s38_s28 = sshll.u32 %s9053_s27, 4  ;;  %s9054_s9 = smov [#allocation7]   ;;  %s39_s28 = int_to_ptr.vmem [resolvable:$true] %s38_s28 }
   0x5   :  { %41 = dma.hbm_to_vmem [thread:$0]  %s37_s26, 32, %s39_s28, [#allocation5]  }
   0x6   :  { %s62_s10 = sshll.u32 %s9054_s9, 4  ;;  %s22_s13 = sshll.u32 %s9811_s1, 4  ;;  %s63_s10 = int_to_ptr.vmem [resolvable:$true] %s62_s10  ;;  %s23_s13 = int_to_ptr.hbm [resolvable:$true] %s22_s13 }
   0x7   :  { %65 = dma.hbm_to_vmem [thread:$0]  %s61_s8, 16, %s63_s10, [#allocation8]  }
   0x8   :  { %s9055_s2 = smov [#allocation2]   ;;  %s46_s17 = sshll.u32 %s9813_s3, 4  ;;  %s47_s17 = int_to_ptr.hbm [resolvable:$true] %s46_s17 }
   0x9   :  { %s24_s14 = sshll.u32 %s9055_s2, 4  ;;  %s9056_s18 = smov 128   ;;  %s25_s14 = int_to_ptr.vmem [resolvable:$true] %s24_s14 }
   0xa   :  { %s9057_s4 = smov 8   ;;  %s9058_s19 = smov [#allocation6]  }
   0xb   :  { %30 = dma.hbm_to_vmem [thread:$0]  %s23_s13, 2048, %s25_s14, [#allocation3], %s9056_s18, %s9056_s18, %s9057_s4  }
   0xc   :  { %s48_s20 = sshll.u32 %s9058_s19, 4  ;;  %s9059_s21 = smov 64   ;;  %s49_s20 = int_to_ptr.vmem [resolvable:$true] %s48_s20 }
   0xd   :  { %s9060_s22 = smov 4   ;;  %s70_s24 = sshll.u32 %s9815_s5, 4  ;;  %s71_s24 = int_to_ptr.hbm [resolvable:$true] %s70_s24 }
   0xe   :  { %54 = dma.hbm_to_vmem [thread:$0]  %s47_s17, 2048, %s49_s20, [#allocation5], %s9059_s21, %s9059_s21, %s9060_s22  }
   0xf   :  { %s9061_s25 = smov [#allocation9]   ;;  %s84_s28 = sshll.u32 %s9816_s6, 4  ;;  %s85_s28 = int_to_ptr.hbm [resolvable:$true] %s84_s28 }
  0x10   :  { %s72_s26 = sshll.u32 %s9061_s25, 4  ;;  %s9062_s29 = smov [#allocation10]   ;;  %s73_s26 = int_to_ptr.vmem [resolvable:$true] %s72_s26 }
  0x11   :  { %78 = dma.hbm_to_vmem [thread:$0]  %s71_s24, 50176, %s73_s26, [#allocation8], %s9059_s21, %s9059_s21, %s9060_s22  }
  0x12   :  { %s86_s30 = sshll.u32 %s9062_s29, 4  ;;  %s87_s30 = int_to_ptr.vmem [resolvable:$true] %s86_s30 }
  0x13   :  { %89 = dma.hbm_to_vmem [thread:$0]  %s85_s28, 16, %s87_s30, [#allocation11]  }
  0x14   :  { %9045 = dma.done.wait [#allocation3], 2048  }
  0x15   :  { %9046 = vsyncadd [#allocation3], 4294965248 }
  0x16   :  { %9047 = dma.done.wait [#allocation5], 2080  }
  0x17   :  { %9048 = vsyncadd [#allocation5], 4294965216 }
  0x18   :  { %9049 = dma.done.wait [#allocation8], 50192  }
  0x19   :  { %9050 = vsyncadd [#allocation8], 4294917104 }
  0x1a   :  { %9051 = dma.done.wait [#allocation11], 16  }
  0x1b   :  { %9052 = vsyncadd [#allocation11], 4294967280  ;;  %v6774_v0 = vld [vmem:[#allocation2 + $0x70] sm:$0xf]  ;;  %v8476_v1 = vld [vmem:[#allocation2 + $0x74] sm:$0xf0] }
  0x1c   :  { %v8475_v2 = vld [vmem:[#allocation2 + $0x74] sm:$0xf]  ;;  %v6775_v3 = vor.u32 %v8476_v1, %v6774_v0  ;;  %v6776_v4 = vld [vmem:[#allocation2 + $0x78] sm:$0xf0]  ;;  %v6766_v5 = vld [vmem:[#allocation2 + $0x60] sm:$0xf] }
  0x1d   :  { %v8474_v6 = vld [vmem:[#allocation2 + $0x64] sm:$0xf0]  ;;  %v6779_v7 = vor.u32 %v8475_v2, %v6776_v4  ;;  %v8473_v8 = vld [vmem:[#allocation2 + $0x64] sm:$0xf]  ;;  %v6768_v9 = vld [vmem:[#allocation2 + $0x68] sm:$0xf0] }
  0x1e   :  { %608 = vmatpush.bf16.msra.mxu0 %v6775_v3  ;;  %v6767_v10 = vor.u32 %v8474_v6, %v6766_v5  ;;  %v6771_v11 = vor.u32 %v8473_v8, %v6768_v9  ;;  %v6758_v12 = vld [vmem:[#allocation2 + $0x50] sm:$0xf]  ;;  %v8472_v13 = vld [vmem:[#allocation2 + $0x54] sm:$0xf0]  ;;  %v8471_v14 = vld [vmem:[#allocation2 + $0x54] sm:$0xf] }
  0x1f   :  { %862 = vmatpush.bf16.msra.mxu1 %v6779_v7  ;;  %v6760_v15 = vld [vmem:[#allocation2 + $0x58] sm:$0xf0]  ;;  %v6759_v16 = vor.u32 %v8472_v13, %v6758_v12  ;;  %v6750_v18 = vld [vmem:[#allocation2 + $0x40] sm:$0xf]  ;;  %v8470_v19 = vld [vmem:[#allocation2 + $0x44] sm:$0xf0] }
  0x20   :  { %v6763_v17 = vor.u32 %v8471_v14, %v6760_v15  ;;  %v8469_v20 = vld [vmem:[#allocation2 + $0x44] sm:$0xf]  ;;  %v6752_v21 = vld [vmem:[#allocation2 + $0x48] sm:$0xf0]  ;;  %v6751_v22 = vor.u32 %v8470_v19, %v6750_v18  ;;  %v6742_v24 = vld [vmem:[#allocation2 + $0x30] sm:$0xf] }
  0x21   :  { %v6755_v23 = vor.u32 %v8469_v20, %v6752_v21  ;;  %v8468_v25 = vld [vmem:[#allocation2 + $0x34] sm:$0xf0]  ;;  %v8467_v26 = vld [vmem:[#allocation2 + $0x34] sm:$0xf]  ;;  %v6744_v27 = vld [vmem:[#allocation2 + $0x38] sm:$0xf0] }
  0x22   :  { %609 = vmatpush.bf16.msra.mxu0 %v6767_v10  ;;  %v6743_v28 = vor.u32 %v8468_v25, %v6742_v24  ;;  %v6747_v29 = vor.u32 %v8467_v26, %v6744_v27  ;;  %v6734_v30 = vld [vmem:[#allocation2 + $0x20] sm:$0xf]  ;;  %v8466_v31 = vld [vmem:[#allocation2 + $0x24] sm:$0xf0]  ;;  %v8465_v32 = vld [vmem:[#allocation2 + $0x24] sm:$0xf] }
  0x23   :  { %863 = vmatpush.bf16.msra.mxu1 %v6771_v11  ;;  %v6736_v33 = vld [vmem:[#allocation2 + $0x28] sm:$0xf0]  ;;  %v6735_v34 = vor.u32 %v8466_v31, %v6734_v30  ;;  %v6726_v36 = vld [vmem:[#allocation2 + $0x10] sm:$0xf]  ;;  %v8464_v37 = vld [vmem:[#allocation2 + $0x14] sm:$0xf0] }
  0x24   :  { %v6739_v35 = vor.u32 %v8465_v32, %v6736_v33  ;;  %v8463_v38 = vld [vmem:[#allocation2 + $0x14] sm:$0xf]  ;;  %v6728_v39 = vld [vmem:[#allocation2 + $0x18] sm:$0xf0]  ;;  %v6727_v40 = vor.u32 %v8464_v37, %v6726_v36  ;;  %v6718_v42 = vld [vmem:[#allocation2] sm:$0xf] }
  0x25   :  { %v6731_v41 = vor.u32 %v8463_v38, %v6728_v39  ;;  %v8462_v43 = vld [vmem:[#allocation2 + $0x4] sm:$0xf0]  ;;  %v8461_v44 = vld [vmem:[#allocation2 + $0x4] sm:$0xf]  ;;  %v6720_v45 = vld [vmem:[#allocation2 + $0x8] sm:$0xf0] }
  0x26   :  { %610 = vmatpush.bf16.msra.mxu0 %v6759_v16  ;;  %v6719_v46 = vor.u32 %v8462_v43, %v6718_v42  ;;  %v6723_v47 = vor.u32 %v8461_v44, %v6720_v45  ;;  %v8412_v48 = vld [vmem:[%s9810_s0] sm:$0xff]  ;;  %v8413_v49 = vld [vmem:[%s9810_s0 + $0x8] sm:$0xff]  ;;  %v8414_v50 = vld [vmem:[%s9810_s0 + $0x10] sm:$0xff] }
  0x27   :  { %864 = vmatpush.bf16.msra.mxu1 %v6763_v17  ;;  %v8415_v51 = vld [vmem:[%s9810_s0 + $0x18] sm:$0xff]  ;;  %v8416_v52 = vld [vmem:[%s9810_s0 + $0x20] sm:$0xff]  ;;  %v8417_v55 = vld [vmem:[%s9810_s0 + $0x28] sm:$0xff] }
  0x28   :  { %v8484_v53 = vld [vmem:[#allocation6 + $0x38] sm:$0xff]  ;;  %v8483_v56 = vld [vmem:[#allocation6 + $0x30] sm:$0xff]  ;;  %v8482_v58 = vld [vmem:[#allocation6 + $0x28] sm:$0xff] }
  0x29   :  { %v8492_v54 = vld [vmem:[#allocation6 + $0x78] sm:$0xff]  ;;  %1542 = vmatpush.bf16.msra.mxu2 %v8484_v53  ;;  %v8491_v57 = vld [vmem:[#allocation6 + $0x70] sm:$0xff]  ;;  %v8490_v59 = vld [vmem:[#allocation6 + $0x68] sm:$0xff] }
  0x2a   :  { %611 = vmatpush.bf16.msra.mxu0 %v6751_v22  ;;  %1796 = vmatpush.bf16.msra.mxu3 %v8492_v54  ;;  %v8481_v60 = vld [vmem:[#allocation6 + $0x20] sm:$0xff]  ;;  %v8418_v62 = vld [vmem:[%s9810_s0 + $0x30] sm:$0xff]  ;;  %v8480_v63 = vld [vmem:[#allocation6 + $0x18] sm:$0xff] }
  0x2b   :  { %865 = vmatpush.bf16.msra.mxu1 %v6755_v23  ;;  %v8489_v61 = vld [vmem:[#allocation6 + $0x60] sm:$0xff]  ;;  %v8488_v0 = vld [vmem:[#allocation6 + $0x58] sm:$0xff]  ;;  %v8479_v1 = vld [vmem:[#allocation6 + $0x10] sm:$0xff] }
  0x2c   :  { %v8487_v2 = vld [vmem:[#allocation6 + $0x50] sm:$0xff]  ;;  %v8478_v3 = vld [vmem:[#allocation6 + $0x8] sm:$0xff]  ;;  %v8477_v5 = vld [vmem:[#allocation6] sm:$0xff] }
  0x2d   :  { %1543 = vmatpush.bf16.msra.mxu2 %v8483_v56  ;;  %v8486_v4 = vld [vmem:[#allocation6 + $0x48] sm:$0xff]  ;;  %v8485_v6 = vld [vmem:[#allocation6 + $0x40] sm:$0xff]  ;;  %v8419_v7 = vld [vmem:[%s9810_s0 + $0x38] sm:$0xff] }
  0x2e   :  { %612 = vmatpush.bf16.msra.mxu0 %v6743_v28  ;;  %1797 = vmatpush.bf16.msra.mxu3 %v8491_v57  ;;  %v8420_v8 = vld [vmem:[%s9810_s0 + $0x40] sm:$0xff]  ;;  %v8421_v26 = vld [vmem:[%s9810_s0 + $0x48] sm:$0xff]  ;;  %v8423_v56 = vld [vmem:[%s9810_s0 + $0x58] sm:$0xff] }
  0x2f   :  { %866 = vmatpush.bf16.msra.mxu1 %v6747_v29  ;;  %v228_v9 = vld [vmem:[#allocation4] sm:$0x3] }
  0x30   :  { %v9148_v12 = vperm.slane %v228_v9, 0  ;;  %v9150_v13 = vperm.slane %v228_v9, 1 }
  0x31   :  { %1544 = vmatpush.bf16.msra.mxu2 %v8482_v58 }
  0x32   :  { %613 = vmatpush.bf16.msra.mxu0 %v6735_v34  ;;  %1798 = vmatpush.bf16.msra.mxu3 %v8490_v59 }
  0x33   :  { %867 = vmatpush.bf16.msra.mxu1 %v6739_v35 }
  0x35   :  { %1545 = vmatpush.bf16.msra.mxu2 %v8481_v60 }
  0x36   :  { %614 = vmatpush.bf16.msra.mxu0 %v6727_v40  ;;  %1799 = vmatpush.bf16.msra.mxu3 %v8489_v61 }
  0x37   :  { %868 = vmatpush.bf16.msra.mxu1 %v6731_v41  ;;  %v8422_v41 = vld [vmem:[%s9810_s0 + $0x50] sm:$0xff] }
  0x39   :  { %1546 = vmatpush.bf16.msra.mxu2 %v8480_v63 }
  0x3a   :  { %615 = vmatpush.bf16.msra.mxu0 %v6719_v46  ;;  %1800 = vmatpush.bf16.msra.mxu3 %v8488_v0 }
  0x3b   :  { %869 = vmatpush.bf16.msra.mxu1 %v6723_v47 }
  0x3d   :  { %616 = vmatmul.bf16.vlgmr.msra.gmra.mxu0 %v8412_v48  ;;  %1547 = vmatpush.bf16.msra.mxu2 %v8479_v1 }
  0x3e   :  { %870 = vmatmul.bf16.vlgmr.msra.gmra.mxu1 %v8412_v48  ;;  %1801 = vmatpush.bf16.msra.mxu3 %v8487_v2 }
  0x41   :  { %1548 = vmatpush.bf16.msra.mxu2 %v8478_v3 }
  0x42   :  { %1802 = vmatpush.bf16.msra.mxu3 %v8486_v4 }
  0x45   :  { %1549 = vmatpush.bf16.msra.mxu2 %v8477_v5 }
  0x46   :  { %1803 = vmatpush.bf16.msra.mxu3 %v8485_v6 }
  0x4d   :  { %621 = vmatmul.bf16.gmra.mxu0 %v8413_v49 }
  0x4e   :  { %875 = vmatmul.bf16.gmra.mxu1 %v8413_v49 }
  0x5d   :  { %626 = vmatmul.bf16.gmra.mxu0 %v8414_v50 }
  0x5e   :  { %880 = vmatmul.bf16.gmra.mxu1 %v8414_v50 }
  0x6d   :  { %631 = vmatmul.bf16.gmra.mxu0 %v8415_v51 }
  0x6e   :  { %885 = vmatmul.bf16.gmra.mxu1 %v8415_v51 }
  0x7d   :  { %636 = vmatmul.bf16.gmra.mxu0 %v8416_v52 }
  0x7e   :  { %890 = vmatmul.bf16.gmra.mxu1 %v8416_v52 }
  0x8d   :  { %641 = vmatmul.bf16.gmra.mxu0 %v8417_v55 }
  0x8e   :  { %895 = vmatmul.bf16.gmra.mxu1 %v8417_v55 }
  0x9d   :  { %646 = vmatmul.bf16.gmra.mxu0 %v8418_v62 }
  0x9e   :  { %900 = vmatmul.bf16.gmra.mxu1 %v8418_v62 }
  0xad   :  { %651 = vmatmul.bf16.gmra.mxu0 %v8419_v7 }
  0xae   :  { %905 = vmatmul.bf16.gmra.mxu1 %v8419_v7  ;;  %v8424_v7 = vld [vmem:[%s9810_s0 + $0x60] sm:$0xff] }
  0xba   :  { %v617_v10 = vpop.f32.mrf.mxu0 }
  0xbb   :  { %v871_v11 = vpop.f32.mrf.mxu1  ;;  %v618_v14 = vadd.f32 %v617_v10, %v9148_v12 }
  0xbc   :  { %v872_v15 = vadd.f32 %v871_v11, %v9150_v13 }
  0xbd   :  { %656 = vmatmul.bf16.gmra.mxu0 %v8420_v8  ;;  %v1116_v20 = vmax.f32 %v618_v14, 0.0 }
  0xbe   :  { %910 = vmatmul.bf16.gmra.mxu1 %v8420_v8  ;;  %v1117_v22 = vmax.f32 %v872_v15, 0.0 }
  0xc2   :  { %v619_v16 = vpop.f32.mrf.mxu0 }
  0xc3   :  { %v620_v17 = vadd.f32 %v619_v16, %v9148_v12  ;;  %v873_v18 = vpop.f32.mrf.mxu1 }
  0xc4   :  { %v874_v19 = vadd.f32 %v873_v18, %v9150_v13 }
  0xc5   :  { %v1118_v21 = vmax.f32 %v620_v17, 0.0 }
  0xc6   :  { %v1119_v23 = vmax.f32 %v874_v19, 0.0 }
  0xc7   :  { %v1312_v24 = vpack.c.bf16 %v1118_v21, %v1116_v20 }
  0xc8   :  { %v1313_v25 = vpack.c.bf16 %v1119_v23, %v1117_v22 }
  0xc9   :  { %1550 = vmatmul.bf16.vlgmr.msra.gmra.mxu2 %v1312_v24  ;;  %v8425_v24 = vld [vmem:[%s9810_s0 + $0x68] sm:$0xff] }
  0xca   :  { %1804 = vmatmul.bf16.vlgmr.msra.gmra.mxu3 %v1313_v25  ;;  %v622_v27 = vpop.f32.mrf.mxu0 }
  0xcb   :  { %v876_v28 = vpop.f32.mrf.mxu1  ;;  %v623_v29 = vadd.f32 %v622_v27, %v9148_v12 }
  0xcc   :  { %v877_v30 = vadd.f32 %v876_v28, %v9150_v13 }
  0xcd   :  { %661 = vmatmul.bf16.gmra.mxu0 %v8421_v26  ;;  %v1120_v35 = vmax.f32 %v623_v29, 0.0 }
  0xce   :  { %915 = vmatmul.bf16.gmra.mxu1 %v8421_v26  ;;  %v1121_v37 = vmax.f32 %v877_v30, 0.0 }
  0xd2   :  { %v624_v31 = vpop.f32.mrf.mxu0 }
  0xd3   :  { %v625_v32 = vadd.f32 %v624_v31, %v9148_v12  ;;  %v878_v33 = vpop.f32.mrf.mxu1 }
  0xd4   :  { %v879_v34 = vadd.f32 %v878_v33, %v9150_v13 }
  0xd5   :  { %v1122_v36 = vmax.f32 %v625_v32, 0.0 }
  0xd6   :  { %v1123_v38 = vmax.f32 %v879_v34, 0.0 }
  0xd7   :  { %v1314_v39 = vpack.c.bf16 %v1122_v36, %v1120_v35 }
  0xd8   :  { %v1315_v40 = vpack.c.bf16 %v1123_v38, %v1121_v37  ;;  %v8508_v37 = vld [vmem:[#allocation9 + $0x78] sm:$0xff] }
  0xd9   :  { %1555 = vmatmul.bf16.gmra.mxu2 %v1314_v39  ;;  %2333 = vmatpush.bf16.msrb.mxu0 %v8508_v37 }
  0xda   :  { %1809 = vmatmul.bf16.gmra.mxu3 %v1315_v40  ;;  %v627_v42 = vpop.f32.mrf.mxu0  ;;  %v8426_v40 = vld [vmem:[%s9810_s0 + $0x70] sm:$0xff] }
  0xdb   :  { %v881_v43 = vpop.f32.mrf.mxu1  ;;  %v628_v44 = vadd.f32 %v627_v42, %v9148_v12 }
  0xdc   :  { %v882_v45 = vadd.f32 %v881_v43, %v9150_v13  ;;  %v8516_v43 = vld [vmem:[#allocation9 + $0xb8] sm:$0xff] }
  0xdd   :  { %666 = vmatmul.bf16.gmra.mxu0 %v8422_v41  ;;  %v1124_v50 = vmax.f32 %v628_v44, 0.0  ;;  %v8524_v44 = vld [vmem:[#allocation9 + $0xf8] sm:$0xff]  ;;  %2486 = vmatpush.bf16.msrb.mxu2 %v8516_v43 }
  0xde   :  { %920 = vmatmul.bf16.gmra.mxu1 %v8422_v41  ;;  %v1125_v52 = vmax.f32 %v882_v45, 0.0  ;;  %v8500_v45 = vld [vmem:[#allocation9 + $0x38] sm:$0xff]  ;;  %2573 = vmatpush.bf16.msrb.mxu3 %v8524_v44 }
  0xdf   :  { %2401 = vmatpush.bf16.msrb.mxu1 %v8500_v45 }
  0xe2   :  { %v629_v46 = vpop.f32.mrf.mxu0 }
  0xe3   :  { %v630_v47 = vadd.f32 %v629_v46, %v9148_v12  ;;  %v883_v48 = vpop.f32.mrf.mxu1 }
  0xe4   :  { %v884_v49 = vadd.f32 %v883_v48, %v9150_v13 }
  0xe5   :  { %v1126_v51 = vmax.f32 %v630_v47, 0.0 }
  0xe6   :  { %v1127_v53 = vmax.f32 %v884_v49, 0.0 }
  0xe7   :  { %v1316_v54 = vpack.c.bf16 %v1126_v51, %v1124_v50 }
  0xe8   :  { %v1317_v55 = vpack.c.bf16 %v1127_v53, %v1125_v52 }
  0xe9   :  { %1560 = vmatmul.bf16.gmra.mxu2 %v1316_v54 }
  0xea   :  { %1814 = vmatmul.bf16.gmra.mxu3 %v1317_v55  ;;  %v632_v57 = vpop.f32.mrf.mxu0 }
  0xeb   :  { %v886_v58 = vpop.f32.mrf.mxu1  ;;  %v633_v59 = vadd.f32 %v632_v57, %v9148_v12 }
  0xec   :  { %v887_v60 = vadd.f32 %v886_v58, %v9150_v13  ;;  %v8427_v58 = vld [vmem:[%s9810_s0 + $0x78] sm:$0xff] }
  0xed   :  { %671 = vmatmul.bf16.gmra.mxu0 %v8423_v56  ;;  %v1128_v1 = vmax.f32 %v633_v59, 0.0 }
  0xee   :  { %925 = vmatmul.bf16.gmra.mxu1 %v8423_v56  ;;  %v1129_v3 = vmax.f32 %v887_v60, 0.0 }
  0xf2   :  { %v634_v61 = vpop.f32.mrf.mxu0 }
  0xf3   :  { %v635_v62 = vadd.f32 %v634_v61, %v9148_v12  ;;  %v888_v63 = vpop.f32.mrf.mxu1 }
  0xf4   :  { %v889_v0 = vadd.f32 %v888_v63, %v9150_v13 }
  0xf5   :  { %v1130_v2 = vmax.f32 %v635_v62, 0.0 }
  0xf6   :  { %v1131_v4 = vmax.f32 %v889_v0, 0.0 }
  0xf7   :  { %v1318_v5 = vpack.c.bf16 %v1130_v2, %v1128_v1 }
  0xf8   :  { %v1319_v6 = vpack.c.bf16 %v1131_v4, %v1129_v3 }
  0xf9   :  { %1565 = vmatmul.bf16.gmra.mxu2 %v1318_v5 }
  0xfa   :  { %1819 = vmatmul.bf16.gmra.mxu3 %v1319_v6  ;;  %v637_v8 = vpop.f32.mrf.mxu0 }
  0xfb   :  { %v891_v9 = vpop.f32.mrf.mxu1  ;;  %v638_v10 = vadd.f32 %v637_v8, %v9148_v12 }
  0xfc   :  { %v892_v11 = vadd.f32 %v891_v9, %v9150_v13  ;;  %v8428_v9 = vld [vmem:[%s9810_s0 + $0x80] sm:$0xff] }
  0xfd   :  { %676 = vmatmul.bf16.gmra.mxu0 %v8424_v7  ;;  %v1132_v18 = vmax.f32 %v638_v10, 0.0 }
  0xfe   :  { %930 = vmatmul.bf16.gmra.mxu1 %v8424_v7  ;;  %v1133_v20 = vmax.f32 %v892_v11, 0.0 }
 0x102   :  { %v639_v14 = vpop.f32.mrf.mxu0 }
 0x103   :  { %v640_v15 = vadd.f32 %v639_v14, %v9148_v12  ;;  %v893_v16 = vpop.f32.mrf.mxu1 }
 0x104   :  { %v894_v17 = vadd.f32 %v893_v16, %v9150_v13 }
 0x105   :  { %v1134_v19 = vmax.f32 %v640_v15, 0.0 }
 0x106   :  { %v1135_v21 = vmax.f32 %v894_v17, 0.0 }
 0x107   :  { %v1320_v22 = vpack.c.bf16 %v1134_v19, %v1132_v18 }
 0x108   :  { %v1321_v23 = vpack.c.bf16 %v1135_v21, %v1133_v20 }
 0x109   :  { %1570 = vmatmul.bf16.gmra.mxu2 %v1320_v22 }
 0x10a   :  { %1824 = vmatmul.bf16.gmra.mxu3 %v1321_v23  ;;  %v642_v25 = vpop.f32.mrf.mxu0 }
 0x10b   :  { %v896_v26 = vpop.f32.mrf.mxu1  ;;  %v643_v27 = vadd.f32 %v642_v25, %v9148_v12 }
 0x10c   :  { %v897_v28 = vadd.f32 %v896_v26, %v9150_v13  ;;  %v9212_v26 = vld [vmem:[#allocation7] ss:$0 sm:$0xff] }
 0x10d   :  { %681 = vmatmul.bf16.gmra.mxu0 %v8425_v24  ;;  %v1136_v33 = vmax.f32 %v643_v27, 0.0  ;;  %v8429_v27 = vld [vmem:[%s9810_s0 + $0x88] sm:$0xff] }
 0x10e   :  { %935 = vmatmul.bf16.gmra.mxu1 %v8425_v24  ;;  %v1137_v35 = vmax.f32 %v897_v28, 0.0 }
 0x112   :  { %v644_v29 = vpop.f32.mrf.mxu0 }
 0x113   :  { %v645_v30 = vadd.f32 %v644_v29, %v9148_v12  ;;  %v898_v31 = vpop.f32.mrf.mxu1 }
 0x114   :  { %v899_v32 = vadd.f32 %v898_v31, %v9150_v13 }
 0x115   :  { %v1138_v34 = vmax.f32 %v645_v30, 0.0 }
 0x116   :  { %v1139_v36 = vmax.f32 %v899_v32, 0.0 }
 0x117   :  { %v1322_v38 = vpack.c.bf16 %v1138_v34, %v1136_v33 }
 0x118   :  { %v1323_v39 = vpack.c.bf16 %v1139_v36, %v1137_v35 }
 0x119   :  { %1575 = vmatmul.bf16.gmra.mxu2 %v1322_v38 }
 0x11a   :  { %1829 = vmatmul.bf16.gmra.mxu3 %v1323_v39  ;;  %v647_v41 = vpop.f32.mrf.mxu0 }
 0x11b   :  { %v901_v42 = vpop.f32.mrf.mxu1  ;;  %v648_v46 = vadd.f32 %v647_v41, %v9148_v12 }
 0x11c   :  { %v902_v47 = vadd.f32 %v901_v42, %v9150_v13 }
 0x11d   :  { %686 = vmatmul.bf16.gmra.mxu0 %v8426_v40  ;;  %v1140_v52 = vmax.f32 %v648_v46, 0.0 }
 0x11e   :  { %940 = vmatmul.bf16.gmra.mxu1 %v8426_v40  ;;  %v1141_v54 = vmax.f32 %v902_v47, 0.0 }
 0x122   :  { %v649_v48 = vpop.f32.mrf.mxu0 }
 0x123   :  { %v650_v49 = vadd.f32 %v649_v48, %v9148_v12  ;;  %v903_v50 = vpop.f32.mrf.mxu1 }
 0x124   :  { %v904_v51 = vadd.f32 %v903_v50, %v9150_v13 }
 0x125   :  { %v1142_v53 = vmax.f32 %v650_v49, 0.0 }
 0x126   :  { %v1143_v55 = vmax.f32 %v904_v51, 0.0 }
 0x127   :  { %v1324_v56 = vpack.c.bf16 %v1142_v53, %v1140_v52  ;;  %v8430_v53 = vld [vmem:[%s9810_s0 + $0x90] sm:$0xff] }
 0x128   :  { %v1325_v57 = vpack.c.bf16 %v1143_v55, %v1141_v54 }
 0x129   :  { %1580 = vmatmul.bf16.gmra.mxu2 %v1324_v56 }
 0x12a   :  { %1834 = vmatmul.bf16.gmra.mxu3 %v1325_v57  ;;  %v652_v59 = vpop.f32.mrf.mxu0 }
 0x12b   :  { %v906_v60 = vpop.f32.mrf.mxu1  ;;  %v653_v61 = vadd.f32 %v652_v59, %v9148_v12 }
 0x12c   :  { %v907_v62 = vadd.f32 %v906_v60, %v9150_v13 }
 0x12d   :  { %691 = vmatmul.bf16.gmra.mxu0 %v8427_v58  ;;  %v1144_v3 = vmax.f32 %v653_v61, 0.0 }
 0x12e   :  { %945 = vmatmul.bf16.gmra.mxu1 %v8427_v58  ;;  %v1145_v5 = vmax.f32 %v907_v62, 0.0 }
 0x132   :  { %v654_v63 = vpop.f32.mrf.mxu0 }
 0x133   :  { %v655_v0 = vadd.f32 %v654_v63, %v9148_v12  ;;  %v908_v1 = vpop.f32.mrf.mxu1 }
 0x134   :  { %v909_v2 = vadd.f32 %v908_v1, %v9150_v13 }
 0x135   :  { %v1146_v4 = vmax.f32 %v655_v0, 0.0 }
 0x136   :  { %v1147_v6 = vmax.f32 %v909_v2, 0.0 }
 0x137   :  { %v1326_v7 = vpack.c.bf16 %v1146_v4, %v1144_v3 }
 0x138   :  { %v1327_v8 = vpack.c.bf16 %v1147_v6, %v1145_v5 }
 0x139   :  { %1585 = vmatmul.bf16.gmra.mxu2 %v1326_v7 }
 0x13a   :  { %1839 = vmatmul.bf16.gmra.mxu3 %v1327_v8  ;;  %v657_v10 = vpop.f32.mrf.mxu0 }
 0x13b   :  { %v911_v11 = vpop.f32.mrf.mxu1  ;;  %v658_v14 = vadd.f32 %v657_v10, %v9148_v12 }
 0x13c   :  { %v912_v15 = vadd.f32 %v911_v11, %v9150_v13 }
 0x13d   :  { %696 = vmatmul.bf16.gmra.mxu0 %v8428_v9  ;;  %v1148_v20 = vmax.f32 %v658_v14, 0.0 }
 0x13e   :  { %950 = vmatmul.bf16.gmra.mxu1 %v8428_v9  ;;  %v1149_v22 = vmax.f32 %v912_v15, 0.0 }
 0x142   :  { %v659_v16 = vpop.f32.mrf.mxu0 }
 0x143   :  { %v660_v17 = vadd.f32 %v659_v16, %v9148_v12  ;;  %v913_v18 = vpop.f32.mrf.mxu1 }
 0x144   :  { %v914_v19 = vadd.f32 %v913_v18, %v9150_v13 }
 0x145   :  { %v1150_v21 = vmax.f32 %v660_v17, 0.0 }
 0x146   :  { %v1151_v23 = vmax.f32 %v914_v19, 0.0 }
 0x147   :  { %v1328_v24 = vpack.c.bf16 %v1150_v21, %v1148_v20  ;;  %v8431_v21 = vld [vmem:[%s9810_s0 + $0x98] sm:$0xff] }
 0x148   :  { %v1329_v25 = vpack.c.bf16 %v1151_v23, %v1149_v22 }
 0x149   :  { %1590 = vmatmul.bf16.gmra.mxu2 %v1328_v24 }
 0x14a   :  { %1844 = vmatmul.bf16.gmra.mxu3 %v1329_v25  ;;  %v662_v28 = vpop.f32.mrf.mxu0 }
 0x14b   :  { %v916_v29 = vpop.f32.mrf.mxu1  ;;  %v663_v34 = vadd.f32 %v662_v28, %v9148_v12 }
 0x14c   :  { %v1551_v30 = vpop.f32.mrf.mxu2  ;;  %v917_v35 = vadd.f32 %v916_v29, %v9150_v13 }
 0x14d   :  { %v1552_v31 = vadd.f32 %v9212_v26, %v1551_v30  ;;  %v1805_v32 = vpop.f32.mrf.mxu3  ;;  %701 = vmatmul.bf16.gmra.mxu0 %v8429_v27  ;;  %v1152_v41 = vmax.f32 %v663_v34, 0.0 }
 0x14e   :  { %955 = vmatmul.bf16.gmra.mxu1 %v8429_v27  ;;  %v1153_v46 = vmax.f32 %v917_v35, 0.0 }
 0x14f   :  { %v1806_v33 = vadd.f32 %v1805_v32, %v1552_v31 }
 0x151   :  { %v2050_v42 = vmax.f32 %v1806_v33, 0.0 }
 0x152   :  { %v664_v36 = vpop.f32.mrf.mxu0 }
 0x153   :  { %v665_v37 = vadd.f32 %v664_v36, %v9148_v12  ;;  %v918_v38 = vpop.f32.mrf.mxu1  ;;  %v2148_v51 = vpack.c.bf16 %v2050_v42, %v2050_v42 }
 0x154   :  { %v919_v39 = vadd.f32 %v918_v38, %v9150_v13  ;;  %v1553_v40 = vpop.f32.mrf.mxu2 }
 0x155   :  { %v1154_v43 = vmax.f32 %v665_v37, 0.0  ;;  %v1554_v44 = vadd.f32 %v9212_v26, %v1553_v40  ;;  %v1807_v45 = vpop.f32.mrf.mxu3  ;;  %v2349_v58 = vunpack.c.l.b16 %v2148_v51 }
 0x156   :  { %v1155_v47 = vmax.f32 %v919_v39, 0.0 }
 0x157   :  { %v1808_v48 = vadd.f32 %v1807_v45, %v1554_v44  ;;  %v1330_v49 = vpack.c.bf16 %v1154_v43, %v1152_v41 }
 0x158   :  { %v1331_v50 = vpack.c.bf16 %v1155_v47, %v1153_v46 }
 0x159   :  { %v2051_v52 = vmax.f32 %v1808_v48, 0.0  ;;  %1595 = vmatmul.bf16.gmra.mxu2 %v1330_v49 }
 0x15a   :  { %1849 = vmatmul.bf16.gmra.mxu3 %v1331_v50  ;;  %v667_v54 = vpop.f32.mrf.mxu0 }
 0x15b   :  { %v2149_v55 = vpack.c.bf16 %v2051_v52, %v2051_v52  ;;  %v921_v56 = vpop.f32.mrf.mxu1  ;;  %v668_v0 = vadd.f32 %v667_v54, %v9148_v12  ;;  %v8432_v52 = vld [vmem:[%s9810_s0 + $0xa0] sm:$0xff] }
 0x15c   :  { %v1556_v57 = vpop.f32.mrf.mxu2  ;;  %v922_v1 = vadd.f32 %v921_v56, %v9150_v13 }
 0x15d   :  { %v2350_v59 = vunpack.c.l.b16 %v2149_v55  ;;  %v1557_v60 = vadd.f32 %v9212_v26, %v1556_v57  ;;  %v1810_v61 = vpop.f32.mrf.mxu3  ;;  %706 = vmatmul.bf16.gmra.mxu0 %v8430_v53  ;;  %v1156_v7 = vmax.f32 %v668_v0, 0.0  ;;  %v8507_v0 = vld [vmem:[#allocation9 + $0x70] sm:$0xff] }
 0x15e   :  { %960 = vmatmul.bf16.gmra.mxu1 %v8430_v53  ;;  %v1157_v14 = vmax.f32 %v922_v1, 0.0  ;;  %2334 = vmatpush.bf16.msrb.mxu0 %v8507_v0 }
 0x15f   :  { %v9227_v62 = vpack.c.b16 %v2350_v59, %v2349_v58  ;;  %v1811_v63 = vadd.f32 %v1810_v61, %v1557_v60 }
 0x161   :  { %v2052_v8 = vmax.f32 %v1811_v63, 0.0 }
 0x162   :  { %v669_v2 = vpop.f32.mrf.mxu0 }
 0x163   :  { %v670_v3 = vadd.f32 %v669_v2, %v9148_v12  ;;  %v923_v4 = vpop.f32.mrf.mxu1  ;;  %v2150_v19 = vpack.c.bf16 %v2052_v8, %v2052_v8 }
 0x164   :  { %v924_v5 = vadd.f32 %v923_v4, %v9150_v13  ;;  %v1558_v6 = vpop.f32.mrf.mxu2 }
 0x165   :  { %v1158_v9 = vmax.f32 %v670_v3, 0.0  ;;  %v1559_v10 = vadd.f32 %v9212_v26, %v1558_v6  ;;  %v1812_v11 = vpop.f32.mrf.mxu3  ;;  %v2281_v27 = vunpack.c.l.b16 %v2150_v19  ;;  %v8499_v19 = vld [vmem:[#allocation9 + $0x30] sm:$0xff] }
 0x166   :  { %v1159_v15 = vmax.f32 %v924_v5, 0.0  ;;  %2402 = vmatpush.bf16.msrb.mxu1 %v8499_v19 }
 0x167   :  { %v1813_v16 = vadd.f32 %v1812_v11, %v1559_v10  ;;  %v1332_v17 = vpack.c.bf16 %v1158_v9, %v1156_v7 }
 0x168   :  { %v1333_v18 = vpack.c.bf16 %v1159_v15, %v1157_v14  ;;  %v8515_v15 = vld [vmem:[#allocation9 + $0xb0] sm:$0xff] }
 0x169   :  { %v2053_v20 = vmax.f32 %v1813_v16, 0.0  ;;  %1600 = vmatmul.bf16.gmra.mxu2 %v1332_v17  ;;  %v8523_v16 = vld [vmem:[#allocation9 + $0xf0] sm:$0xff] }
 0x16a   :  { %1854 = vmatmul.bf16.gmra.mxu3 %v1333_v18  ;;  %v672_v22 = vpop.f32.mrf.mxu0  ;;  %2487 = vmatpush.bf16.msrb.mxu2 %v8515_v15 }
 0x16b   :  { %v2151_v23 = vpack.c.bf16 %v2053_v20, %v2053_v20  ;;  %v926_v24 = vpop.f32.mrf.mxu1  ;;  %v673_v33 = vadd.f32 %v672_v22, %v9148_v12  ;;  %2574 = vmatpush.bf16.msrb.mxu3 %v8523_v16 }
 0x16c   :  { %v1561_v25 = vpop.f32.mrf.mxu2  ;;  %v927_v34 = vadd.f32 %v926_v24, %v9150_v13 }
 0x16d   :  { %v2282_v28 = vunpack.c.l.b16 %v2151_v23  ;;  %v1562_v29 = vadd.f32 %v9212_v26, %v1561_v25  ;;  %v1815_v30 = vpop.f32.mrf.mxu3  ;;  %711 = vmatmul.bf16.gmra.mxu0 %v8431_v21  ;;  %v1160_v40 = vmax.f32 %v673_v33, 0.0  ;;  %v8433_v25 = vld [vmem:[%s9810_s0 + $0xa8] sm:$0xff] }
 0x16e   :  { %965 = vmatmul.bf16.gmra.mxu1 %v8431_v21  ;;  %v1161_v45 = vmax.f32 %v927_v34, 0.0 }
 0x16f   :  { %v9238_v31 = vpack.c.b16 %v2282_v28, %v2281_v27  ;;  %v1816_v32 = vadd.f32 %v1815_v30, %v1562_v29 }
 0x171   :  { %v2054_v41 = vmax.f32 %v1816_v32, 0.0 }
 0x172   :  { %v674_v35 = vpop.f32.mrf.mxu0 }
 0x173   :  { %v675_v36 = vadd.f32 %v674_v35, %v9148_v12  ;;  %v928_v37 = vpop.f32.mrf.mxu1  ;;  %v2152_v50 = vpack.c.bf16 %v2054_v41, %v2054_v41 }
 0x174   :  { %v929_v38 = vadd.f32 %v928_v37, %v9150_v13  ;;  %v1563_v39 = vpop.f32.mrf.mxu2 }
 0x175   :  { %v1162_v42 = vmax.f32 %v675_v36, 0.0  ;;  %v1564_v43 = vadd.f32 %v9212_v26, %v1563_v39  ;;  %v1817_v44 = vpop.f32.mrf.mxu3  ;;  %v2434_v57 = vunpack.c.l.b16 %v2152_v50 }
 0x176   :  { %v1163_v46 = vmax.f32 %v929_v38, 0.0 }
 0x177   :  { %v1818_v47 = vadd.f32 %v1817_v44, %v1564_v43  ;;  %v1334_v48 = vpack.c.bf16 %v1162_v42, %v1160_v40 }
 0x178   :  { %v1335_v49 = vpack.c.bf16 %v1163_v46, %v1161_v45 }
 0x179   :  { %v2055_v51 = vmax.f32 %v1818_v47, 0.0  ;;  %1605 = vmatmul.bf16.gmra.mxu2 %v1334_v48 }
 0x17a   :  { %1859 = vmatmul.bf16.gmra.mxu3 %v1335_v49  ;;  %v677_v53 = vpop.f32.mrf.mxu0 }
 0x17b   :  { %v2153_v54 = vpack.c.bf16 %v2055_v51, %v2055_v51  ;;  %v931_v55 = vpop.f32.mrf.mxu1  ;;  %v678_v1 = vadd.f32 %v677_v53, %v9148_v12 }
 0x17c   :  { %v1566_v56 = vpop.f32.mrf.mxu2  ;;  %v932_v2 = vadd.f32 %v931_v55, %v9150_v13 }
 0x17d   :  { %v2435_v58 = vunpack.c.l.b16 %v2153_v54  ;;  %v1567_v59 = vadd.f32 %v9212_v26, %v1566_v56  ;;  %v1820_v60 = vpop.f32.mrf.mxu3  ;;  %716 = vmatmul.bf16.gmra.mxu0 %v8432_v52  ;;  %v1164_v8 = vmax.f32 %v678_v1, 0.0 }
 0x17e   :  { %970 = vmatmul.bf16.gmra.mxu1 %v8432_v52  ;;  %v1165_v17 = vmax.f32 %v932_v2, 0.0 }
 0x17f   :  { %v9249_v61 = vpack.c.b16 %v2435_v58, %v2434_v57  ;;  %v1821_v63 = vadd.f32 %v1820_v60, %v1567_v59  ;;  %v8434_v57 = vld [vmem:[%s9810_s0 + $0xb0] sm:$0xff] }
 0x181   :  { %v2056_v9 = vmax.f32 %v1821_v63, 0.0 }
 0x182   :  { %v679_v3 = vpop.f32.mrf.mxu0 }
 0x183   :  { %v680_v4 = vadd.f32 %v679_v3, %v9148_v12  ;;  %v933_v5 = vpop.f32.mrf.mxu1  ;;  %v2154_v23 = vpack.c.bf16 %v2056_v9, %v2056_v9 }
 0x184   :  { %v934_v6 = vadd.f32 %v933_v5, %v9150_v13  ;;  %v1568_v7 = vpop.f32.mrf.mxu2 }
 0x185   :  { %v1166_v10 = vmax.f32 %v680_v4, 0.0  ;;  %v1569_v11 = vadd.f32 %v9212_v26, %v1568_v7  ;;  %v1822_v14 = vpop.f32.mrf.mxu3  ;;  %v2521_v32 = vunpack.c.l.b16 %v2154_v23 }
 0x186   :  { %v1167_v18 = vmax.f32 %v934_v6, 0.0 }
 0x187   :  { %v1823_v20 = vadd.f32 %v1822_v14, %v1569_v11  ;;  %v1336_v21 = vpack.c.bf16 %v1166_v10, %v1164_v8 }
 0x188   :  { %v1337_v22 = vpack.c.bf16 %v1167_v18, %v1165_v17 }
 0x189   :  { %v2057_v24 = vmax.f32 %v1823_v20, 0.0  ;;  %1610 = vmatmul.bf16.gmra.mxu2 %v1336_v21 }
 0x18a   :  { %1864 = vmatmul.bf16.gmra.mxu3 %v1337_v22  ;;  %v682_v27 = vpop.f32.mrf.mxu0 }
 0x18b   :  { %v2155_v28 = vpack.c.bf16 %v2057_v24, %v2057_v24  ;;  %v936_v29 = vpop.f32.mrf.mxu1  ;;  %v683_v38 = vadd.f32 %v682_v27, %v9148_v12 }
 0x18c   :  { %v1571_v30 = vpop.f32.mrf.mxu2  ;;  %v937_v39 = vadd.f32 %v936_v29, %v9150_v13 }
 0x18d   :  { %v2522_v33 = vunpack.c.l.b16 %v2155_v28  ;;  %v1572_v34 = vadd.f32 %v9212_v26, %v1571_v30  ;;  %v1825_v35 = vpop.f32.mrf.mxu3  ;;  %721 = vmatmul.bf16.gmra.mxu0 %v8433_v25  ;;  %v1168_v45 = vmax.f32 %v683_v38, 0.0  ;;  %v8435_v28 = vld [vmem:[%s9810_s0 + $0xb8] sm:$0xff] }
 0x18e   :  { %975 = vmatmul.bf16.gmra.mxu1 %v8433_v25  ;;  %v1169_v50 = vmax.f32 %v937_v39, 0.0 }
 0x18f   :  { %v9260_v36 = vpack.c.b16 %v2522_v33, %v2521_v32  ;;  %v1826_v37 = vadd.f32 %v1825_v35, %v1572_v34 }
 0x191   :  { %v2058_v46 = vmax.f32 %v1826_v37, 0.0 }
 0x192   :  { %v684_v40 = vpop.f32.mrf.mxu0 }
 0x193   :  { %v685_v41 = vadd.f32 %v684_v40, %v9148_v12  ;;  %v938_v42 = vpop.f32.mrf.mxu1  ;;  %v2156_v55 = vpack.c.bf16 %v2058_v46, %v2058_v46 }
 0x194   :  { %v939_v43 = vadd.f32 %v938_v42, %v9150_v13  ;;  %v1573_v44 = vpop.f32.mrf.mxu2 }
 0x195   :  { %v1170_v47 = vmax.f32 %v685_v41, 0.0  ;;  %v1574_v48 = vadd.f32 %v9212_v26, %v1573_v44  ;;  %v1827_v49 = vpop.f32.mrf.mxu3  ;;  %v2608_v0 = vunpack.c.l.b16 %v2156_v55 }
 0x196   :  { %v1171_v51 = vmax.f32 %v939_v43, 0.0 }
 0x197   :  { %v1828_v52 = vadd.f32 %v1827_v49, %v1574_v48  ;;  %v1338_v53 = vpack.c.bf16 %v1170_v47, %v1168_v45 }
 0x198   :  { %v1339_v54 = vpack.c.bf16 %v1171_v51, %v1169_v50 }
 0x199   :  { %v2059_v56 = vmax.f32 %v1828_v52, 0.0  ;;  %1615 = vmatmul.bf16.gmra.mxu2 %v1338_v53 }
 0x19a   :  { %1869 = vmatmul.bf16.gmra.mxu3 %v1339_v54  ;;  %v687_v58 = vpop.f32.mrf.mxu0 }
 0x19b   :  { %v2157_v59 = vpack.c.bf16 %v2059_v56, %v2059_v56  ;;  %v941_v60 = vpop.f32.mrf.mxu1  ;;  %v688_v6 = vadd.f32 %v687_v58, %v9148_v12 }
 0x19c   :  { %v1576_v63 = vpop.f32.mrf.mxu2  ;;  %v942_v7 = vadd.f32 %v941_v60, %v9150_v13  ;;  %v8436_v60 = vld [vmem:[%s9810_s0 + $0xc0] sm:$0xff] }
 0x19d   :  { %v2609_v1 = vunpack.c.l.b16 %v2157_v59  ;;  %v1577_v2 = vadd.f32 %v9212_v26, %v1576_v63  ;;  %v1830_v3 = vpop.f32.mrf.mxu3  ;;  %726 = vmatmul.bf16.gmra.mxu0 %v8434_v57  ;;  %v1172_v15 = vmax.f32 %v688_v6, 0.0 }
 0x19e   :  { %980 = vmatmul.bf16.gmra.mxu1 %v8434_v57  ;;  %v1173_v20 = vmax.f32 %v942_v7, 0.0 }
 0x19f   :  { %v9271_v4 = vpack.c.b16 %v2609_v1, %v2608_v0  ;;  %v1831_v5 = vadd.f32 %v1830_v3, %v1577_v2 }
 0x1a1   :  { %v2060_v16 = vmax.f32 %v1831_v5, 0.0 }
 0x1a2   :  { %v689_v8 = vpop.f32.mrf.mxu0 }
 0x1a3   :  { %v690_v9 = vadd.f32 %v689_v8, %v9148_v12  ;;  %v943_v10 = vpop.f32.mrf.mxu1  ;;  %v2158_v25 = vpack.c.bf16 %v2060_v16, %v2060_v16 }
 0x1a4   :  { %v944_v11 = vadd.f32 %v943_v10, %v9150_v13  ;;  %v1578_v14 = vpop.f32.mrf.mxu2 }
 0x1a5   :  { %v1174_v17 = vmax.f32 %v690_v9, 0.0  ;;  %v1579_v18 = vadd.f32 %v9212_v26, %v1578_v14  ;;  %v1832_v19 = vpop.f32.mrf.mxu3  ;;  %v2695_v34 = vunpack.c.l.b16 %v2158_v25 }
 0x1a6   :  { %v1175_v21 = vmax.f32 %v944_v11, 0.0 }
 0x1a7   :  { %v1833_v22 = vadd.f32 %v1832_v19, %v1579_v18  ;;  %v1340_v23 = vpack.c.bf16 %v1174_v17, %v1172_v15 }
 0x1a8   :  { %v1341_v24 = vpack.c.bf16 %v1175_v21, %v1173_v20 }
 0x1a9   :  { %v2061_v27 = vmax.f32 %v1833_v22, 0.0  ;;  %1620 = vmatmul.bf16.gmra.mxu2 %v1340_v23 }
 0x1aa   :  { %1874 = vmatmul.bf16.gmra.mxu3 %v1341_v24  ;;  %v692_v29 = vpop.f32.mrf.mxu0 }
 0x1ab   :  { %v2159_v30 = vpack.c.bf16 %v2061_v27, %v2061_v27  ;;  %v946_v32 = vpop.f32.mrf.mxu1  ;;  %v693_v41 = vadd.f32 %v692_v29, %v9148_v12 }
 0x1ac   :  { %v1581_v33 = vpop.f32.mrf.mxu2  ;;  %v947_v42 = vadd.f32 %v946_v32, %v9150_v13 }
 0x1ad   :  { %v2696_v35 = vunpack.c.l.b16 %v2159_v30  ;;  %v1582_v37 = vadd.f32 %v9212_v26, %v1581_v33  ;;  %v1835_v38 = vpop.f32.mrf.mxu3  ;;  %731 = vmatmul.bf16.gmra.mxu0 %v8435_v28  ;;  %v1176_v48 = vmax.f32 %v693_v41, 0.0  ;;  %v8437_v33 = vld [vmem:[%s9810_s0 + $0xc8] sm:$0xff] }
 0x1ae   :  { %985 = vmatmul.bf16.gmra.mxu1 %v8435_v28  ;;  %v1177_v53 = vmax.f32 %v947_v42, 0.0 }
 0x1af   :  { %v9282_v39 = vpack.c.b16 %v2696_v35, %v2695_v34  ;;  %v1836_v40 = vadd.f32 %v1835_v38, %v1582_v37 }
 0x1b1   :  { %v2062_v49 = vmax.f32 %v1836_v40, 0.0 }
 0x1b2   :  { %v694_v43 = vpop.f32.mrf.mxu0 }
 0x1b3   :  { %v695_v44 = vadd.f32 %v694_v43, %v9148_v12  ;;  %v948_v45 = vpop.f32.mrf.mxu1  ;;  %v2160_v58 = vpack.c.bf16 %v2062_v49, %v2062_v49 }
 0x1b4   :  { %v949_v46 = vadd.f32 %v948_v45, %v9150_v13  ;;  %v1583_v47 = vpop.f32.mrf.mxu2 }
 0x1b5   :  { %v1178_v50 = vmax.f32 %v695_v44, 0.0  ;;  %v1584_v51 = vadd.f32 %v9212_v26, %v1583_v47  ;;  %v1837_v52 = vpop.f32.mrf.mxu3  ;;  %v2782_v3 = vunpack.c.l.b16 %v2160_v58 }
 0x1b6   :  { %v1179_v54 = vmax.f32 %v949_v46, 0.0 }
 0x1b7   :  { %v1838_v55 = vadd.f32 %v1837_v52, %v1584_v51  ;;  %v1342_v56 = vpack.c.bf16 %v1178_v50, %v1176_v48 }
 0x1b8   :  { %v1343_v57 = vpack.c.bf16 %v1179_v54, %v1177_v53 }
 0x1b9   :  { %v2063_v59 = vmax.f32 %v1838_v55, 0.0  ;;  %1625 = vmatmul.bf16.gmra.mxu2 %v1342_v56 }
 0x1ba   :  { %1879 = vmatmul.bf16.gmra.mxu3 %v1343_v57  ;;  %v697_v63 = vpop.f32.mrf.mxu0 }
 0x1bb   :  { %v2161_v0 = vpack.c.bf16 %v2063_v59, %v2063_v59  ;;  %v951_v1 = vpop.f32.mrf.mxu1  ;;  %v698_v10 = vadd.f32 %v697_v63, %v9148_v12 }
 0x1bc   :  { %v1586_v2 = vpop.f32.mrf.mxu2  ;;  %v952_v11 = vadd.f32 %v951_v1, %v9150_v13 }
 0x1bd   :  { %v2783_v5 = vunpack.c.l.b16 %v2161_v0  ;;  %v1587_v6 = vadd.f32 %v9212_v26, %v1586_v2  ;;  %v1840_v7 = vpop.f32.mrf.mxu3  ;;  %736 = vmatmul.bf16.gmra.mxu0 %v8436_v60  ;;  %v1180_v19 = vmax.f32 %v698_v10, 0.0 }
 0x1be   :  { %990 = vmatmul.bf16.gmra.mxu1 %v8436_v60  ;;  %v1181_v24 = vmax.f32 %v952_v11, 0.0 }
 0x1bf   :  { %v9293_v8 = vpack.c.b16 %v2783_v5, %v2782_v3  ;;  %v1841_v9 = vadd.f32 %v1840_v7, %v1587_v6  ;;  %v8438_v3 = vld [vmem:[%s9810_s0 + $0xd0] sm:$0xff] }
 0x1c1   :  { %v2064_v20 = vmax.f32 %v1841_v9, 0.0 }
 0x1c2   :  { %v699_v14 = vpop.f32.mrf.mxu0 }
 0x1c3   :  { %v700_v15 = vadd.f32 %v699_v14, %v9148_v12  ;;  %v953_v16 = vpop.f32.mrf.mxu1  ;;  %v2162_v30 = vpack.c.bf16 %v2064_v20, %v2064_v20 }
 0x1c4   :  { %v954_v17 = vadd.f32 %v953_v16, %v9150_v13  ;;  %v1588_v18 = vpop.f32.mrf.mxu2 }
 0x1c5   :  { %v1182_v21 = vmax.f32 %v700_v15, 0.0  ;;  %v1589_v22 = vadd.f32 %v9212_v26, %v1588_v18  ;;  %v1842_v23 = vpop.f32.mrf.mxu3  ;;  %v2869_v40 = vunpack.c.l.b16 %v2162_v30  ;;  %v8506_v18 = vld [vmem:[#allocation9 + $0x68] sm:$0xff] }
 0x1c6   :  { %v1183_v25 = vmax.f32 %v954_v17, 0.0  ;;  %2335 = vmatpush.bf16.msrb.mxu0 %v8506_v18 }
 0x1c7   :  { %v1843_v27 = vadd.f32 %v1842_v23, %v1589_v22  ;;  %v1344_v28 = vpack.c.bf16 %v1182_v21, %v1180_v19 }
 0x1c8   :  { %v1345_v29 = vpack.c.bf16 %v1183_v25, %v1181_v24 }
 0x1c9   :  { %v2065_v32 = vmax.f32 %v1843_v27, 0.0  ;;  %1630 = vmatmul.bf16.gmra.mxu2 %v1344_v28 }
 0x1ca   :  { %1884 = vmatmul.bf16.gmra.mxu3 %v1345_v29  ;;  %v702_v34 = vpop.f32.mrf.mxu0 }
 0x1cb   :  { %v2163_v35 = vpack.c.bf16 %v2065_v32, %v2065_v32  ;;  %v956_v37 = vpop.f32.mrf.mxu1  ;;  %v703_v46 = vadd.f32 %v702_v34, %v9148_v12 }
 0x1cc   :  { %v1591_v38 = vpop.f32.mrf.mxu2  ;;  %v957_v47 = vadd.f32 %v956_v37, %v9150_v13  ;;  %v8522_v37 = vld [vmem:[#allocation9 + $0xe8] sm:$0xff] }
 0x1cd   :  { %v2870_v41 = vunpack.c.l.b16 %v2163_v35  ;;  %v1592_v42 = vadd.f32 %v9212_v26, %v1591_v38  ;;  %v1845_v43 = vpop.f32.mrf.mxu3  ;;  %741 = vmatmul.bf16.gmra.mxu0 %v8437_v33  ;;  %v1184_v53 = vmax.f32 %v703_v46, 0.0  ;;  %2575 = vmatpush.bf16.msrb.mxu3 %v8522_v37 }
 0x1ce   :  { %995 = vmatmul.bf16.gmra.mxu1 %v8437_v33  ;;  %v1185_v58 = vmax.f32 %v957_v47, 0.0  ;;  %v8514_v33 = vld [vmem:[#allocation9 + $0xa8] sm:$0xff] }
 0x1cf   :  { %v9304_v44 = vpack.c.b16 %v2870_v41, %v2869_v40  ;;  %v1846_v45 = vadd.f32 %v1845_v43, %v1592_v42  ;;  %2488 = vmatpush.bf16.msrb.mxu2 %v8514_v33 }
 0x1d1   :  { %v2066_v54 = vmax.f32 %v1846_v45, 0.0  ;;  %v8439_v45 = vld [vmem:[%s9810_s0 + $0xd8] sm:$0xff] }
 0x1d2   :  { %v704_v48 = vpop.f32.mrf.mxu0 }
 0x1d3   :  { %v705_v49 = vadd.f32 %v704_v48, %v9148_v12  ;;  %v958_v50 = vpop.f32.mrf.mxu1  ;;  %v2164_v1 = vpack.c.bf16 %v2066_v54, %v2066_v54 }
 0x1d4   :  { %v959_v51 = vadd.f32 %v958_v50, %v9150_v13  ;;  %v1593_v52 = vpop.f32.mrf.mxu2 }
 0x1d5   :  { %v1186_v55 = vmax.f32 %v705_v49, 0.0  ;;  %v1594_v56 = vadd.f32 %v9212_v26, %v1593_v52  ;;  %v1847_v57 = vpop.f32.mrf.mxu3  ;;  %v2956_v10 = vunpack.c.l.b16 %v2164_v1 }
 0x1d6   :  { %v1187_v59 = vmax.f32 %v959_v51, 0.0 }
 0x1d7   :  { %v1848_v60 = vadd.f32 %v1847_v57, %v1594_v56  ;;  %v1346_v63 = vpack.c.bf16 %v1186_v55, %v1184_v53  ;;  %v8498_v56 = vld [vmem:[#allocation9 + $0x28] sm:$0xff] }
 0x1d8   :  { %v1347_v0 = vpack.c.bf16 %v1187_v59, %v1185_v58  ;;  %2403 = vmatpush.bf16.msrb.mxu1 %v8498_v56 }
 0x1d9   :  { %v2067_v2 = vmax.f32 %v1848_v60, 0.0  ;;  %1635 = vmatmul.bf16.gmra.mxu2 %v1346_v63 }
 0x1da   :  { %1889 = vmatmul.bf16.gmra.mxu3 %v1347_v0  ;;  %v707_v5 = vpop.f32.mrf.mxu0 }
 0x1db   :  { %v2165_v6 = vpack.c.bf16 %v2067_v2, %v2067_v2  ;;  %v961_v7 = vpop.f32.mrf.mxu1  ;;  %v708_v19 = vadd.f32 %v707_v5, %v9148_v12 }
 0x1dc   :  { %v1596_v9 = vpop.f32.mrf.mxu2  ;;  %v962_v20 = vadd.f32 %v961_v7, %v9150_v13 }
 0x1dd   :  { %v2957_v11 = vunpack.c.l.b16 %v2165_v6  ;;  %v1597_v14 = vadd.f32 %v9212_v26, %v1596_v9  ;;  %v1850_v15 = vpop.f32.mrf.mxu3  ;;  %746 = vmatmul.bf16.gmra.mxu0 %v8438_v3  ;;  %v1188_v27 = vmax.f32 %v708_v19, 0.0  ;;  %v8440_v19 = vld [vmem:[%s9810_s0 + $0xe0] sm:$0xff] }
 0x1de   :  { %1000 = vmatmul.bf16.gmra.mxu1 %v8438_v3  ;;  %v1189_v34 = vmax.f32 %v962_v20, 0.0 }
 0x1df   :  { %v9315_v16 = vpack.c.b16 %v2957_v11, %v2956_v10  ;;  %v1851_v17 = vadd.f32 %v1850_v15, %v1597_v14 }
 0x1e1   :  { %v2068_v28 = vmax.f32 %v1851_v17, 0.0 }
 0x1e2   :  { %v709_v21 = vpop.f32.mrf.mxu0 }
 0x1e3   :  { %v710_v22 = vadd.f32 %v709_v21, %v9148_v12  ;;  %v963_v23 = vpop.f32.mrf.mxu1  ;;  %v2166_v42 = vpack.c.bf16 %v2068_v28, %v2068_v28 }
 0x1e4   :  { %v964_v24 = vadd.f32 %v963_v23, %v9150_v13  ;;  %v1598_v25 = vpop.f32.mrf.mxu2 }
 0x1e5   :  { %v1190_v29 = vmax.f32 %v710_v22, 0.0  ;;  %v1599_v30 = vadd.f32 %v9212_v26, %v1598_v25  ;;  %v1852_v32 = vpop.f32.mrf.mxu3  ;;  %v3043_v50 = vunpack.c.l.b16 %v2166_v42 }
 0x1e6   :  { %v1191_v35 = vmax.f32 %v964_v24, 0.0 }
 0x1e7   :  { %v1853_v38 = vadd.f32 %v1852_v32, %v1599_v30  ;;  %v1348_v40 = vpack.c.bf16 %v1190_v29, %v1188_v27 }
 0x1e8   :  { %v1349_v41 = vpack.c.bf16 %v1191_v35, %v1189_v34 }
 0x1e9   :  { %v2069_v43 = vmax.f32 %v1853_v38, 0.0  ;;  %1640 = vmatmul.bf16.gmra.mxu2 %v1348_v40 }
 0x1ea   :  { %1894 = vmatmul.bf16.gmra.mxu3 %v1349_v41  ;;  %v712_v46 = vpop.f32.mrf.mxu0 }
 0x1eb   :  { %v2167_v47 = vpack.c.bf16 %v2069_v43, %v2069_v43  ;;  %v966_v48 = vpop.f32.mrf.mxu1  ;;  %v713_v57 = vadd.f32 %v712_v46, %v9148_v12 }
 0x1ec   :  { %v1601_v49 = vpop.f32.mrf.mxu2  ;;  %v967_v58 = vadd.f32 %v966_v48, %v9150_v13 }
 0x1ed   :  { %v3044_v51 = vunpack.c.l.b16 %v2167_v47  ;;  %v1602_v52 = vadd.f32 %v9212_v26, %v1601_v49  ;;  %v1855_v53 = vpop.f32.mrf.mxu3  ;;  %751 = vmatmul.bf16.gmra.mxu0 %v8439_v45  ;;  %v1192_v2 = vmax.f32 %v713_v57, 0.0 }
 0x1ee   :  { %1005 = vmatmul.bf16.gmra.mxu1 %v8439_v45  ;;  %v1193_v9 = vmax.f32 %v967_v58, 0.0 }
 0x1ef   :  { %v9326_v54 = vpack.c.b16 %v3044_v51, %v3043_v50  ;;  %v1856_v55 = vadd.f32 %v1855_v53, %v1602_v52 }
 0x1f1   :  { %v2070_v3 = vmax.f32 %v1856_v55, 0.0  ;;  %v8441_v55 = vld [vmem:[%s9810_s0 + $0xe8] sm:$0xff] }
 0x1f2   :  { %v714_v59 = vpop.f32.mrf.mxu0 }
 0x1f3   :  { %v715_v60 = vadd.f32 %v714_v59, %v9148_v12  ;;  %v968_v63 = vpop.f32.mrf.mxu1  ;;  %v2168_v17 = vpack.c.bf16 %v2070_v3, %v2070_v3 }
 0x1f4   :  { %v969_v0 = vadd.f32 %v968_v63, %v9150_v13  ;;  %v1603_v1 = vpop.f32.mrf.mxu2 }
 0x1f5   :  { %v1194_v5 = vmax.f32 %v715_v60, 0.0  ;;  %v1604_v6 = vadd.f32 %v9212_v26, %v1603_v1  ;;  %v1857_v7 = vpop.f32.mrf.mxu3  ;;  %v3130_v24 = vunpack.c.l.b16 %v2168_v17 }
 0x1f6   :  { %v1195_v10 = vmax.f32 %v969_v0, 0.0 }
 0x1f7   :  { %v1858_v11 = vadd.f32 %v1857_v7, %v1604_v6  ;;  %v1350_v14 = vpack.c.bf16 %v1194_v5, %v1192_v2 }
 0x1f8   :  { %v1351_v15 = vpack.c.bf16 %v1195_v10, %v1193_v9 }
 0x1f9   :  { %v2071_v18 = vmax.f32 %v1858_v11, 0.0  ;;  %1645 = vmatmul.bf16.gmra.mxu2 %v1350_v14 }
 0x1fa   :  { %1899 = vmatmul.bf16.gmra.mxu3 %v1351_v15  ;;  %v717_v20 = vpop.f32.mrf.mxu0 }
 0x1fb   :  { %v2169_v21 = vpack.c.bf16 %v2071_v18, %v2071_v18  ;;  %v971_v22 = vpop.f32.mrf.mxu1  ;;  %v718_v32 = vadd.f32 %v717_v20, %v9148_v12 }
 0x1fc   :  { %v1606_v23 = vpop.f32.mrf.mxu2  ;;  %v972_v33 = vadd.f32 %v971_v22, %v9150_v13 }
 0x1fd   :  { %v3131_v25 = vunpack.c.l.b16 %v2169_v21  ;;  %v1607_v27 = vadd.f32 %v9212_v26, %v1606_v23  ;;  %v1860_v28 = vpop.f32.mrf.mxu3  ;;  %756 = vmatmul.bf16.gmra.mxu0 %v8440_v19  ;;  %v1196_v41 = vmax.f32 %v718_v32, 0.0 }
 0x1fe   :  { %1010 = vmatmul.bf16.gmra.mxu1 %v8440_v19  ;;  %v1197_v47 = vmax.f32 %v972_v33, 0.0 }
 0x1ff   :  { %v9337_v29 = vpack.c.b16 %v3131_v25, %v3130_v24  ;;  %v1861_v30 = vadd.f32 %v1860_v28, %v1607_v27 }
 0x201   :  { %v2072_v42 = vmax.f32 %v1861_v30, 0.0  ;;  %v8442_v30 = vld [vmem:[%s9810_s0 + $0xf0] sm:$0xff] }
 0x202   :  { %v719_v34 = vpop.f32.mrf.mxu0 }
 0x203   :  { %v720_v35 = vadd.f32 %v719_v34, %v9148_v12  ;;  %v973_v37 = vpop.f32.mrf.mxu1  ;;  %v2170_v52 = vpack.c.bf16 %v2072_v42, %v2072_v42 }
 0x204   :  { %v974_v38 = vadd.f32 %v973_v37, %v9150_v13  ;;  %v1608_v40 = vpop.f32.mrf.mxu2 }
 0x205   :  { %v1198_v43 = vmax.f32 %v720_v35, 0.0  ;;  %v1609_v45 = vadd.f32 %v9212_v26, %v1608_v40  ;;  %v1862_v46 = vpop.f32.mrf.mxu3  ;;  %v3217_v60 = vunpack.c.l.b16 %v2170_v52 }
 0x206   :  { %v1199_v48 = vmax.f32 %v974_v38, 0.0 }
 0x207   :  { %v1863_v49 = vadd.f32 %v1862_v46, %v1609_v45  ;;  %v1352_v50 = vpack.c.bf16 %v1198_v43, %v1196_v41 }
 0x208   :  { %v1353_v51 = vpack.c.bf16 %v1199_v48, %v1197_v47 }
 0x209   :  { %v2073_v53 = vmax.f32 %v1863_v49, 0.0  ;;  %1650 = vmatmul.bf16.gmra.mxu2 %v1352_v50 }
 0x20a   :  { %1904 = vmatmul.bf16.gmra.mxu3 %v1353_v51  ;;  %v722_v56 = vpop.f32.mrf.mxu0 }
 0x20b   :  { %v2171_v57 = vpack.c.bf16 %v2073_v53, %v2073_v53  ;;  %v976_v58 = vpop.f32.mrf.mxu1  ;;  %v723_v5 = vadd.f32 %v722_v56, %v9148_v12 }
 0x20c   :  { %v1611_v59 = vpop.f32.mrf.mxu2  ;;  %v977_v6 = vadd.f32 %v976_v58, %v9150_v13 }
 0x20d   :  { %v3218_v63 = vunpack.c.l.b16 %v2171_v57  ;;  %v1612_v0 = vadd.f32 %v9212_v26, %v1611_v59  ;;  %v1865_v1 = vpop.f32.mrf.mxu3  ;;  %761 = vmatmul.bf16.gmra.mxu0 %v8441_v55  ;;  %v1200_v15 = vmax.f32 %v723_v5, 0.0  ;;  %v8443_v5 = vld [vmem:[%s9810_s0 + $0xf8] sm:$0xff] }
 0x20e   :  { %1015 = vmatmul.bf16.gmra.mxu1 %v8441_v55  ;;  %v1201_v21 = vmax.f32 %v977_v6, 0.0 }
 0x20f   :  { %v9348_v2 = vpack.c.b16 %v3218_v63, %v3217_v60  ;;  %v1866_v3 = vadd.f32 %v1865_v1, %v1612_v0 }
 0x211   :  { %v2074_v17 = vmax.f32 %v1866_v3, 0.0 }
 0x212   :  { %v724_v7 = vpop.f32.mrf.mxu0 }
 0x213   :  { %v725_v9 = vadd.f32 %v724_v7, %v9148_v12  ;;  %v978_v10 = vpop.f32.mrf.mxu1  ;;  %v2172_v27 = vpack.c.bf16 %v2074_v17, %v2074_v17 }
 0x214   :  { %v979_v11 = vadd.f32 %v978_v10, %v9150_v13  ;;  %v1613_v14 = vpop.f32.mrf.mxu2 }
 0x215   :  { %v1202_v18 = vmax.f32 %v725_v9, 0.0  ;;  %v1614_v19 = vadd.f32 %v9212_v26, %v1613_v14  ;;  %v1867_v20 = vpop.f32.mrf.mxu3  ;;  %v3304_v37 = vunpack.c.l.b16 %v2172_v27 }
 0x216   :  { %v1203_v22 = vmax.f32 %v979_v11, 0.0 }
 0x217   :  { %v1868_v23 = vadd.f32 %v1867_v20, %v1614_v19  ;;  %v1354_v24 = vpack.c.bf16 %v1202_v18, %v1200_v15 }
 0x218   :  { %v1355_v25 = vpack.c.bf16 %v1203_v22, %v1201_v21 }
 0x219   :  { %v2075_v28 = vmax.f32 %v1868_v23, 0.0  ;;  %1655 = vmatmul.bf16.gmra.mxu2 %v1354_v24 }
 0x21a   :  { %1909 = vmatmul.bf16.gmra.mxu3 %v1355_v25  ;;  %v727_v32 = vpop.f32.mrf.mxu0 }
 0x21b   :  { %v2173_v33 = vpack.c.bf16 %v2075_v28, %v2075_v28  ;;  %v981_v34 = vpop.f32.mrf.mxu1  ;;  %v728_v45 = vadd.f32 %v727_v32, %v9148_v12  ;;  %v9376_v32 = vld [vmem:[#allocation7] ss:$0 sm:$0xff] }
 0x21c   :  { %v1616_v35 = vpop.f32.mrf.mxu2  ;;  %v982_v46 = vadd.f32 %v981_v34, %v9150_v13 }
 0x21d   :  { %v3305_v38 = vunpack.c.l.b16 %v2173_v33  ;;  %v1617_v40 = vadd.f32 %v9212_v26, %v1616_v35  ;;  %v1870_v41 = vpop.f32.mrf.mxu3  ;;  %766 = vmatmul.bf16.gmra.mxu0 %v8442_v30  ;;  %v1204_v52 = vmax.f32 %v728_v45, 0.0 }
 0x21e   :  { %1020 = vmatmul.bf16.gmra.mxu1 %v8442_v30  ;;  %v1205_v58 = vmax.f32 %v982_v46, 0.0  ;;  %v8444_v46 = vld [vmem:[%s9810_s0 + $0x100] sm:$0xff] }
 0x21f   :  { %v9359_v42 = vpack.c.b16 %v3305_v38, %v3304_v37  ;;  %v1871_v43 = vadd.f32 %v1870_v41, %v1617_v40 }
 0x221   :  { %v2076_v53 = vmax.f32 %v1871_v43, 0.0 }
 0x222   :  { %v729_v47 = vpop.f32.mrf.mxu0 }
 0x223   :  { %v730_v48 = vadd.f32 %v729_v47, %v9148_v12  ;;  %v983_v49 = vpop.f32.mrf.mxu1  ;;  %v2174_v1 = vpack.c.bf16 %v2076_v53, %v2076_v53 }
 0x224   :  { %v984_v50 = vadd.f32 %v983_v49, %v9150_v13  ;;  %v1618_v51 = vpop.f32.mrf.mxu2 }
 0x225   :  { %v1206_v55 = vmax.f32 %v730_v48, 0.0  ;;  %v1619_v56 = vadd.f32 %v9212_v26, %v1618_v51  ;;  %v1872_v57 = vpop.f32.mrf.mxu3  ;;  %v3391_v11 = vunpack.c.l.b16 %v2174_v1 }
 0x226   :  { %v1207_v59 = vmax.f32 %v984_v50, 0.0 }
 0x227   :  { %v1873_v60 = vadd.f32 %v1872_v57, %v1619_v56  ;;  %v1356_v63 = vpack.c.bf16 %v1206_v55, %v1204_v52 }
 0x228   :  { %v1357_v0 = vpack.c.bf16 %v1207_v59, %v1205_v58 }
 0x229   :  { %v2077_v3 = vmax.f32 %v1873_v60, 0.0  ;;  %1660 = vmatmul.bf16.gmra.mxu2 %v1356_v63 }
 0x22a   :  { %1914 = vmatmul.bf16.gmra.mxu3 %v1357_v0  ;;  %v732_v6 = vpop.f32.mrf.mxu0 }
 0x22b   :  { %v2175_v7 = vpack.c.bf16 %v2077_v3, %v2077_v3  ;;  %v986_v9 = vpop.f32.mrf.mxu1  ;;  %v733_v20 = vadd.f32 %v732_v6, %v9148_v12 }
 0x22c   :  { %v1621_v10 = vpop.f32.mrf.mxu2  ;;  %v987_v21 = vadd.f32 %v986_v9, %v9150_v13 }
 0x22d   :  { %v3392_v14 = vunpack.c.l.b16 %v2175_v7  ;;  %v1622_v15 = vadd.f32 %v9212_v26, %v1621_v10  ;;  %v1875_v17 = vpop.f32.mrf.mxu3  ;;  %771 = vmatmul.bf16.gmra.mxu0 %v8443_v5  ;;  %v1208_v28 = vmax.f32 %v733_v20, 0.0 }
 0x22e   :  { %1025 = vmatmul.bf16.gmra.mxu1 %v8443_v5  ;;  %v1209_v35 = vmax.f32 %v987_v21, 0.0 }
 0x22f   :  { %v9370_v18 = vpack.c.b16 %v3392_v14, %v3391_v11  ;;  %v1876_v19 = vadd.f32 %v1875_v17, %v1622_v15  ;;  %v8505_v11 = vld [vmem:[#allocation9 + $0x60] sm:$0xff] }
 0x230   :  { %v8513_v17 = vld [vmem:[#allocation9 + $0xa0] sm:$0xff]  ;;  %2336 = vmatpush.bf16.msrb.mxu0 %v8505_v11 }
 0x231   :  { %v2078_v30 = vmax.f32 %v1876_v19, 0.0  ;;  %2489 = vmatpush.bf16.msrb.mxu2 %v8513_v17 }
 0x232   :  { %v734_v22 = vpop.f32.mrf.mxu0 }
 0x233   :  { %v735_v23 = vadd.f32 %v734_v22, %v9148_v12  ;;  %v988_v24 = vpop.f32.mrf.mxu1  ;;  %v2176_v43 = vpack.c.bf16 %v2078_v30, %v2078_v30 }
 0x234   :  { %v989_v25 = vadd.f32 %v988_v24, %v9150_v13  ;;  %v1623_v27 = vpop.f32.mrf.mxu2  ;;  %v8445_v24 = vld [vmem:[%s9810_s0 + $0x108] sm:$0xff] }
 0x235   :  { %v1210_v26 = vmax.f32 %v735_v23, 0.0  ;;  %v1624_v33 = vadd.f32 %v9376_v32, %v1623_v27  ;;  %v1877_v34 = vpop.f32.mrf.mxu3  ;;  %v3478_v51 = vunpack.c.l.b16 %v2176_v43 }
 0x236   :  { %v1211_v37 = vmax.f32 %v989_v25, 0.0 }
 0x237   :  { %v1878_v38 = vadd.f32 %v1877_v34, %v1624_v33  ;;  %v1358_v40 = vpack.c.bf16 %v1210_v26, %v1208_v28 }
 0x238   :  { %v1359_v41 = vpack.c.bf16 %v1211_v37, %v1209_v35 }
 0x239   :  { %v2079_v45 = vmax.f32 %v1878_v38, 0.0  ;;  %1665 = vmatmul.bf16.gmra.mxu2 %v1358_v40  ;;  %v8521_v40 = vld [vmem:[#allocation9 + $0xe0] sm:$0xff] }
 0x23a   :  { %1919 = vmatmul.bf16.gmra.mxu3 %v1359_v41  ;;  %v737_v47 = vpop.f32.mrf.mxu0  ;;  %v8497_v41 = vld [vmem:[#allocation9 + $0x20] sm:$0xff] }
 0x23b   :  { %v2177_v48 = vpack.c.bf16 %v2079_v45, %v2079_v45  ;;  %v991_v49 = vpop.f32.mrf.mxu1  ;;  %v738_v58 = vadd.f32 %v737_v47, %v9148_v12  ;;  %2576 = vmatpush.bf16.msrb.mxu3 %v8521_v40  ;;  %2404 = vmatpush.bf16.msrb.mxu1 %v8497_v41 }
 0x23c   :  { %v1626_v50 = vpop.f32.mrf.mxu2  ;;  %v992_v59 = vadd.f32 %v991_v49, %v9150_v13 }
 0x23d   :  { %v3479_v52 = vunpack.c.l.b16 %v2177_v48  ;;  %v1627_v53 = vadd.f32 %v9376_v32, %v1626_v50  ;;  %v1880_v55 = vpop.f32.mrf.mxu3  ;;  %776 = vmatmul.bf16.gmra.mxu0 %v8444_v46  ;;  %v1212_v5 = vmax.f32 %v738_v58, 0.0 }
 0x23e   :  { %1030 = vmatmul.bf16.gmra.mxu1 %v8444_v46  ;;  %v1213_v14 = vmax.f32 %v992_v59, 0.0 }
 0x23f   :  { %v9383_v56 = vpack.c.b16 %v3479_v52, %v3478_v51  ;;  %v1881_v57 = vadd.f32 %v1880_v55, %v1627_v53 }
 0x241   :  { %v2080_v6 = vmax.f32 %v1881_v57, 0.0 }
 0x242   :  { %v739_v60 = vpop.f32.mrf.mxu0 }
 0x243   :  { %v740_v63 = vadd.f32 %v739_v60, %v9148_v12  ;;  %v993_v0 = vpop.f32.mrf.mxu1  ;;  %v2178_v22 = vpack.c.bf16 %v2080_v6, %v2080_v6 }
 0x244   :  { %v994_v1 = vadd.f32 %v993_v0, %v9150_v13  ;;  %v1628_v3 = vpop.f32.mrf.mxu2 }
 0x245   :  { %v1214_v7 = vmax.f32 %v740_v63, 0.0  ;;  %v1629_v9 = vadd.f32 %v9376_v32, %v1628_v3  ;;  %v1882_v10 = vpop.f32.mrf.mxu3  ;;  %v3565_v26 = vunpack.c.l.b16 %v2178_v22 }
 0x246   :  { %v1215_v15 = vmax.f32 %v994_v1, 0.0 }
 0x247   :  { %v1883_v19 = vadd.f32 %v1882_v10, %v1629_v9  ;;  %v1360_v20 = vpack.c.bf16 %v1214_v7, %v1212_v5  ;;  %v8446_v5 = vld [vmem:[%s9810_s0 + $0x110] sm:$0xff] }
 0x248   :  { %v1361_v21 = vpack.c.bf16 %v1215_v15, %v1213_v14 }
 0x249   :  { %v2081_v23 = vmax.f32 %v1883_v19, 0.0  ;;  %1670 = vmatmul.bf16.gmra.mxu2 %v1360_v20 }
 0x24a   :  { %1924 = vmatmul.bf16.gmra.mxu3 %v1361_v21  ;;  %v742_v25 = vpop.f32.mrf.mxu0 }
 0x24b   :  { %v2179_v27 = vpack.c.bf16 %v2081_v23, %v2081_v23  ;;  %v996_v28 = vpop.f32.mrf.mxu1  ;;  %v743_v43 = vadd.f32 %v742_v25, %v9148_v12 }
 0x24c   :  { %v1631_v30 = vpop.f32.mrf.mxu2  ;;  %v997_v45 = vadd.f32 %v996_v28, %v9150_v13 }
 0x24d   :  { %v3566_v33 = vunpack.c.l.b16 %v2179_v27  ;;  %v1632_v34 = vadd.f32 %v9376_v32, %v1631_v30  ;;  %v1885_v35 = vpop.f32.mrf.mxu3  ;;  %781 = vmatmul.bf16.gmra.mxu0 %v8445_v24  ;;  %v1216_v51 = vmax.f32 %v743_v43, 0.0 }
 0x24e   :  { %1035 = vmatmul.bf16.gmra.mxu1 %v8445_v24  ;;  %v1217_v58 = vmax.f32 %v997_v45, 0.0 }
 0x24f   :  { %v9394_v37 = vpack.c.b16 %v3566_v33, %v3565_v26  ;;  %v1886_v38 = vadd.f32 %v1885_v35, %v1632_v34 }
 0x251   :  { %v2082_v52 = vmax.f32 %v1886_v38, 0.0 }
 0x252   :  { %v744_v46 = vpop.f32.mrf.mxu0 }
 0x253   :  { %v745_v47 = vadd.f32 %v744_v46, %v9148_v12  ;;  %v998_v48 = vpop.f32.mrf.mxu1  ;;  %v2180_v1 = vpack.c.bf16 %v2082_v52, %v2082_v52 }
 0x254   :  { %v999_v49 = vadd.f32 %v998_v48, %v9150_v13  ;;  %v1633_v50 = vpop.f32.mrf.mxu2  ;;  %v8447_v48 = vld [vmem:[%s9810_s0 + $0x118] sm:$0xff] }
 0x255   :  { %v1218_v53 = vmax.f32 %v745_v47, 0.0  ;;  %v1634_v55 = vadd.f32 %v9376_v32, %v1633_v50  ;;  %v1887_v57 = vpop.f32.mrf.mxu3  ;;  %v3652_v11 = vunpack.c.l.b16 %v2180_v1 }
 0x256   :  { %v1219_v59 = vmax.f32 %v999_v49, 0.0 }
 0x257   :  { %v1888_v60 = vadd.f32 %v1887_v57, %v1634_v55  ;;  %v1362_v63 = vpack.c.bf16 %v1218_v53, %v1216_v51 }
 0x258   :  { %v1363_v0 = vpack.c.bf16 %v1219_v59, %v1217_v58 }
 0x259   :  { %v2083_v3 = vmax.f32 %v1888_v60, 0.0  ;;  %1675 = vmatmul.bf16.gmra.mxu2 %v1362_v63 }
 0x25a   :  { %1929 = vmatmul.bf16.gmra.mxu3 %v1363_v0  ;;  %v747_v6 = vpop.f32.mrf.mxu0 }
 0x25b   :  { %v2181_v7 = vpack.c.bf16 %v2083_v3, %v2083_v3  ;;  %v1001_v9 = vpop.f32.mrf.mxu1  ;;  %v748_v21 = vadd.f32 %v747_v6, %v9148_v12 }
 0x25c   :  { %v1636_v10 = vpop.f32.mrf.mxu2  ;;  %v1002_v22 = vadd.f32 %v1001_v9, %v9150_v13 }
 0x25d   :  { %v3653_v14 = vunpack.c.l.b16 %v2181_v7  ;;  %v1637_v15 = vadd.f32 %v9376_v32, %v1636_v10  ;;  %v1890_v17 = vpop.f32.mrf.mxu3  ;;  %786 = vmatmul.bf16.gmra.mxu0 %v8446_v5  ;;  %v1220_v30 = vmax.f32 %v748_v21, 0.0 }
 0x25e   :  { %1040 = vmatmul.bf16.gmra.mxu1 %v8446_v5  ;;  %v1221_v38 = vmax.f32 %v1002_v22, 0.0 }
 0x25f   :  { %v9405_v19 = vpack.c.b16 %v3653_v14, %v3652_v11  ;;  %v1891_v20 = vadd.f32 %v1890_v17, %v1637_v15 }
 0x261   :  { %v2084_v26 = vmax.f32 %v1891_v20, 0.0 }
 0x262   :  { %v749_v23 = vpop.f32.mrf.mxu0 }
 0x263   :  { %v750_v24 = vadd.f32 %v749_v23, %v9148_v12  ;;  %v1003_v25 = vpop.f32.mrf.mxu1  ;;  %v2182_v46 = vpack.c.bf16 %v2084_v26, %v2084_v26 }
 0x264   :  { %v1004_v27 = vadd.f32 %v1003_v25, %v9150_v13  ;;  %v1638_v28 = vpop.f32.mrf.mxu2 }
 0x265   :  { %v1222_v33 = vmax.f32 %v750_v24, 0.0  ;;  %v1639_v34 = vadd.f32 %v9376_v32, %v1638_v28  ;;  %v1892_v35 = vpop.f32.mrf.mxu3  ;;  %v3739_v53 = vunpack.c.l.b16 %v2182_v46 }
 0x266   :  { %v1223_v40 = vmax.f32 %v1004_v27, 0.0  ;;  %v8448_v27 = vld [vmem:[%s9810_s0 + $0x120] sm:$0xff] }
 0x267   :  { %v1893_v41 = vadd.f32 %v1892_v35, %v1639_v34  ;;  %v1364_v43 = vpack.c.bf16 %v1222_v33, %v1220_v30 }
 0x268   :  { %v1365_v45 = vpack.c.bf16 %v1223_v40, %v1221_v38 }
 0x269   :  { %v2085_v47 = vmax.f32 %v1893_v41, 0.0  ;;  %1680 = vmatmul.bf16.gmra.mxu2 %v1364_v43 }
 0x26a   :  { %1934 = vmatmul.bf16.gmra.mxu3 %v1365_v45  ;;  %v752_v49 = vpop.f32.mrf.mxu0 }
 0x26b   :  { %v2183_v50 = vpack.c.bf16 %v2085_v47, %v2085_v47  ;;  %v1006_v51 = vpop.f32.mrf.mxu1  ;;  %v753_v63 = vadd.f32 %v752_v49, %v9148_v12 }
 0x26c   :  { %v1641_v52 = vpop.f32.mrf.mxu2  ;;  %v1007_v0 = vadd.f32 %v1006_v51, %v9150_v13 }
 0x26d   :  { %v3740_v55 = vunpack.c.l.b16 %v2183_v50  ;;  %v1642_v57 = vadd.f32 %v9376_v32, %v1641_v52  ;;  %v1895_v58 = vpop.f32.mrf.mxu3  ;;  %791 = vmatmul.bf16.gmra.mxu0 %v8447_v48  ;;  %v1224_v9 = vmax.f32 %v753_v63, 0.0 }
 0x26e   :  { %1045 = vmatmul.bf16.gmra.mxu1 %v8447_v48  ;;  %v1225_v17 = vmax.f32 %v1007_v0, 0.0 }
 0x26f   :  { %v9416_v59 = vpack.c.b16 %v3740_v55, %v3739_v53  ;;  %v1896_v60 = vadd.f32 %v1895_v58, %v1642_v57 }
 0x271   :  { %v2086_v10 = vmax.f32 %v1896_v60, 0.0 }
 0x272   :  { %v754_v1 = vpop.f32.mrf.mxu0 }
 0x273   :  { %v755_v3 = vadd.f32 %v754_v1, %v9148_v12  ;;  %v1008_v5 = vpop.f32.mrf.mxu1  ;;  %v2184_v24 = vpack.c.bf16 %v2086_v10, %v2086_v10 }
 0x274   :  { %v1009_v6 = vadd.f32 %v1008_v5, %v9150_v13  ;;  %v1643_v7 = vpop.f32.mrf.mxu2 }
 0x275   :  { %v1226_v11 = vmax.f32 %v755_v3, 0.0  ;;  %v1644_v14 = vadd.f32 %v9376_v32, %v1643_v7  ;;  %v1897_v15 = vpop.f32.mrf.mxu3  ;;  %v3826_v34 = vunpack.c.l.b16 %v2184_v24  ;;  %v8449_v7 = vld [vmem:[%s9810_s0 + $0x128] sm:$0xff] }
 0x276   :  { %v1227_v20 = vmax.f32 %v1009_v6, 0.0 }
 0x277   :  { %v1898_v21 = vadd.f32 %v1897_v15, %v1644_v14  ;;  %v1366_v22 = vpack.c.bf16 %v1226_v11, %v1224_v9 }
 0x278   :  { %v1367_v23 = vpack.c.bf16 %v1227_v20, %v1225_v17 }
 0x279   :  { %v2087_v25 = vmax.f32 %v1898_v21, 0.0  ;;  %1685 = vmatmul.bf16.gmra.mxu2 %v1366_v22 }
 0x27a   :  { %1939 = vmatmul.bf16.gmra.mxu3 %v1367_v23  ;;  %v757_v28 = vpop.f32.mrf.mxu0 }
 0x27b   :  { %v2185_v30 = vpack.c.bf16 %v2087_v25, %v2087_v25  ;;  %v1011_v26 = vpop.f32.mrf.mxu1  ;;  %v758_v45 = vadd.f32 %v757_v28, %v9148_v12 }
 0x27c   :  { %v1646_v33 = vpop.f32.mrf.mxu2  ;;  %v1012_v46 = vadd.f32 %v1011_v26, %v9150_v13 }
 0x27d   :  { %v3827_v35 = vunpack.c.l.b16 %v2185_v30  ;;  %v1647_v38 = vadd.f32 %v9376_v32, %v1646_v33  ;;  %v1900_v40 = vpop.f32.mrf.mxu3  ;;  %796 = vmatmul.bf16.gmra.mxu0 %v8448_v27  ;;  %v1228_v52 = vmax.f32 %v758_v45, 0.0 }
 0x27e   :  { %1050 = vmatmul.bf16.gmra.mxu1 %v8448_v27  ;;  %v1229_v60 = vmax.f32 %v1012_v46, 0.0 }
 0x27f   :  { %v9427_v41 = vpack.c.b16 %v3827_v35, %v3826_v34  ;;  %v1901_v43 = vadd.f32 %v1900_v40, %v1647_v38 }
 0x281   :  { %v2088_v53 = vmax.f32 %v1901_v43, 0.0 }
 0x282   :  { %v759_v47 = vpop.f32.mrf.mxu0 }
 0x283   :  { %v760_v48 = vadd.f32 %v759_v47, %v9148_v12  ;;  %v1013_v49 = vpop.f32.mrf.mxu1  ;;  %v2186_v5 = vpack.c.bf16 %v2088_v53, %v2088_v53 }
 0x284   :  { %v1014_v50 = vadd.f32 %v1013_v49, %v9150_v13  ;;  %v1648_v51 = vpop.f32.mrf.mxu2 }
 0x285   :  { %v1230_v55 = vmax.f32 %v760_v48, 0.0  ;;  %v1649_v57 = vadd.f32 %v9376_v32, %v1648_v51  ;;  %v1902_v58 = vpop.f32.mrf.mxu3  ;;  %v3913_v15 = vunpack.c.l.b16 %v2186_v5 }
 0x286   :  { %v1231_v63 = vmax.f32 %v1014_v50, 0.0 }
 0x287   :  { %v1903_v0 = vadd.f32 %v1902_v58, %v1649_v57  ;;  %v1368_v1 = vpack.c.bf16 %v1230_v55, %v1228_v52  ;;  %v8450_v52 = vld [vmem:[%s9810_s0 + $0x130] sm:$0xff] }
 0x288   :  { %v1369_v3 = vpack.c.bf16 %v1231_v63, %v1229_v60 }
 0x289   :  { %v2089_v6 = vmax.f32 %v1903_v0, 0.0  ;;  %1690 = vmatmul.bf16.gmra.mxu2 %v1368_v1 }
 0x28a   :  { %1944 = vmatmul.bf16.gmra.mxu3 %v1369_v3  ;;  %v762_v9 = vpop.f32.mrf.mxu0 }
 0x28b   :  { %v2187_v10 = vpack.c.bf16 %v2089_v6, %v2089_v6  ;;  %v1016_v11 = vpop.f32.mrf.mxu1  ;;  %v763_v24 = vadd.f32 %v762_v9, %v9148_v12 }
 0x28c   :  { %v1651_v14 = vpop.f32.mrf.mxu2  ;;  %v1017_v25 = vadd.f32 %v1016_v11, %v9150_v13 }
 0x28d   :  { %v3914_v17 = vunpack.c.l.b16 %v2187_v10  ;;  %v1652_v20 = vadd.f32 %v9376_v32, %v1651_v14  ;;  %v1905_v21 = vpop.f32.mrf.mxu3  ;;  %801 = vmatmul.bf16.gmra.mxu0 %v8449_v7  ;;  %v1232_v34 = vmax.f32 %v763_v24, 0.0 }
 0x28e   :  { %1055 = vmatmul.bf16.gmra.mxu1 %v8449_v7  ;;  %v1233_v45 = vmax.f32 %v1017_v25, 0.0  ;;  %v8504_v25 = vld [vmem:[#allocation9 + $0x58] sm:$0xff] }
 0x28f   :  { %v9438_v22 = vpack.c.b16 %v3914_v17, %v3913_v15  ;;  %v1906_v23 = vadd.f32 %v1905_v21, %v1652_v20  ;;  %2337 = vmatpush.bf16.msrb.mxu0 %v8504_v25 }
 0x291   :  { %v2090_v35 = vmax.f32 %v1906_v23, 0.0 }
 0x292   :  { %v764_v27 = vpop.f32.mrf.mxu0 }
 0x293   :  { %v765_v28 = vadd.f32 %v764_v27, %v9148_v12  ;;  %v1018_v30 = vpop.f32.mrf.mxu1  ;;  %v2188_v50 = vpack.c.bf16 %v2090_v35, %v2090_v35 }
 0x294   :  { %v1019_v26 = vadd.f32 %v1018_v30, %v9150_v13  ;;  %v1653_v33 = vpop.f32.mrf.mxu2 }
 0x295   :  { %v1234_v38 = vmax.f32 %v765_v28, 0.0  ;;  %v1654_v40 = vadd.f32 %v9376_v32, %v1653_v33  ;;  %v1907_v43 = vpop.f32.mrf.mxu3  ;;  %v4000_v60 = vunpack.c.l.b16 %v2188_v50 }
 0x296   :  { %v1235_v46 = vmax.f32 %v1019_v26, 0.0 }
 0x297   :  { %v1908_v47 = vadd.f32 %v1907_v43, %v1654_v40  ;;  %v1370_v48 = vpack.c.bf16 %v1234_v38, %v1232_v34  ;;  %v8451_v38 = vld [vmem:[%s9810_s0 + $0x138] sm:$0xff] }
 0x298   :  { %v1371_v49 = vpack.c.bf16 %v1235_v46, %v1233_v45 }
 0x299   :  { %v2091_v51 = vmax.f32 %v1908_v47, 0.0  ;;  %1695 = vmatmul.bf16.gmra.mxu2 %v1370_v48 }
 0x29a   :  { %1949 = vmatmul.bf16.gmra.mxu3 %v1371_v49  ;;  %v767_v53 = vpop.f32.mrf.mxu0 }
 0x29b   :  { %v2189_v55 = vpack.c.bf16 %v2091_v51, %v2091_v51  ;;  %v1021_v57 = vpop.f32.mrf.mxu1  ;;  %v768_v6 = vadd.f32 %v767_v53, %v9148_v12  ;;  %v8512_v53 = vld [vmem:[#allocation9 + $0x98] sm:$0xff] }
 0x29c   :  { %v1656_v58 = vpop.f32.mrf.mxu2  ;;  %v1022_v7 = vadd.f32 %v1021_v57, %v9150_v13  ;;  %v8496_v57 = vld [vmem:[#allocation9 + $0x18] sm:$0xff]  ;;  %2490 = vmatpush.bf16.msrb.mxu2 %v8512_v53 }
 0x29d   :  { %v4001_v63 = vunpack.c.l.b16 %v2189_v55  ;;  %v1657_v0 = vadd.f32 %v9376_v32, %v1656_v58  ;;  %v1910_v1 = vpop.f32.mrf.mxu3  ;;  %806 = vmatmul.bf16.gmra.mxu0 %v8450_v52  ;;  %v1236_v17 = vmax.f32 %v768_v6, 0.0  ;;  %v8520_v55 = vld [vmem:[#allocation9 + $0xd8] sm:$0xff]  ;;  %2405 = vmatpush.bf16.msrb.mxu1 %v8496_v57 }
 0x29e   :  { %1060 = vmatmul.bf16.gmra.mxu1 %v8450_v52  ;;  %v1237_v27 = vmax.f32 %v1022_v7, 0.0  ;;  %2577 = vmatpush.bf16.msrb.mxu3 %v8520_v55 }
 0x29f   :  { %v9449_v3 = vpack.c.b16 %v4001_v63, %v4000_v60  ;;  %v1911_v5 = vadd.f32 %v1910_v1, %v1657_v0 }
 0x2a1   :  { %v2092_v20 = vmax.f32 %v1911_v5, 0.0 }
 0x2a2   :  { %v769_v9 = vpop.f32.mrf.mxu0 }
 0x2a3   :  { %v770_v10 = vadd.f32 %v769_v9, %v9148_v12  ;;  %v1023_v11 = vpop.f32.mrf.mxu1  ;;  %v2190_v34 = vpack.c.bf16 %v2092_v20, %v2092_v20 }
 0x2a4   :  { %v1024_v14 = vadd.f32 %v1023_v11, %v9150_v13  ;;  %v1658_v15 = vpop.f32.mrf.mxu2 }
 0x2a5   :  { %v1238_v21 = vmax.f32 %v770_v10, 0.0  ;;  %v1659_v23 = vadd.f32 %v9376_v32, %v1658_v15  ;;  %v1912_v24 = vpop.f32.mrf.mxu3  ;;  %v4087_v47 = vunpack.c.l.b16 %v2190_v34 }
 0x2a6   :  { %v1239_v28 = vmax.f32 %v1024_v14, 0.0 }
 0x2a7   :  { %v1913_v30 = vadd.f32 %v1912_v24, %v1659_v23  ;;  %v1372_v26 = vpack.c.bf16 %v1238_v21, %v1236_v17 }
 0x2a8   :  { %v1373_v33 = vpack.c.bf16 %v1239_v28, %v1237_v27  ;;  %v8452_v27 = vld [vmem:[%s9810_s0 + $0x140] sm:$0xff] }
 0x2a9   :  { %v2093_v35 = vmax.f32 %v1913_v30, 0.0  ;;  %1700 = vmatmul.bf16.gmra.mxu2 %v1372_v26 }
 0x2aa   :  { %1954 = vmatmul.bf16.gmra.mxu3 %v1373_v33  ;;  %v772_v40 = vpop.f32.mrf.mxu0 }
 0x2ab   :  { %v2191_v43 = vpack.c.bf16 %v2093_v35, %v2093_v35  ;;  %v1026_v45 = vpop.f32.mrf.mxu1  ;;  %v773_v58 = vadd.f32 %v772_v40, %v9148_v12 }
 0x2ac   :  { %v1661_v46 = vpop.f32.mrf.mxu2  ;;  %v1027_v60 = vadd.f32 %v1026_v45, %v9150_v13 }
 0x2ad   :  { %v4088_v48 = vunpack.c.l.b16 %v2191_v43  ;;  %v1662_v49 = vadd.f32 %v9376_v32, %v1661_v46  ;;  %v1915_v50 = vpop.f32.mrf.mxu3  ;;  %811 = vmatmul.bf16.gmra.mxu0 %v8451_v38  ;;  %v1240_v7 = vmax.f32 %v773_v58, 0.0 }
 0x2ae   :  { %1065 = vmatmul.bf16.gmra.mxu1 %v8451_v38  ;;  %v1241_v15 = vmax.f32 %v1027_v60, 0.0 }
 0x2af   :  { %v9460_v51 = vpack.c.b16 %v4088_v48, %v4087_v47  ;;  %v1916_v52 = vadd.f32 %v1915_v50, %v1662_v49 }
 0x2b1   :  { %v2094_v9 = vmax.f32 %v1916_v52, 0.0 }
 0x2b2   :  { %v774_v63 = vpop.f32.mrf.mxu0 }
 0x2b3   :  { %v775_v0 = vadd.f32 %v774_v63, %v9148_v12  ;;  %v1028_v1 = vpop.f32.mrf.mxu1  ;;  %v2192_v24 = vpack.c.bf16 %v2094_v9, %v2094_v9 }
 0x2b4   :  { %v1029_v5 = vadd.f32 %v1028_v1, %v9150_v13  ;;  %v1663_v6 = vpop.f32.mrf.mxu2 }
 0x2b5   :  { %v1242_v10 = vmax.f32 %v775_v0, 0.0  ;;  %v1664_v11 = vadd.f32 %v9376_v32, %v1663_v6  ;;  %v1917_v14 = vpop.f32.mrf.mxu3  ;;  %v4174_v34 = vunpack.c.l.b16 %v2192_v24 }
 0x2b6   :  { %v1243_v17 = vmax.f32 %v1029_v5, 0.0 }
 0x2b7   :  { %v1918_v20 = vadd.f32 %v1917_v14, %v1664_v11  ;;  %v1374_v21 = vpack.c.bf16 %v1242_v10, %v1240_v7  ;;  %v8453_v11 = vld [vmem:[%s9810_s0 + $0x148] sm:$0xff] }
 0x2b8   :  { %v1375_v23 = vpack.c.bf16 %v1243_v17, %v1241_v15 }
 0x2b9   :  { %v2095_v25 = vmax.f32 %v1918_v20, 0.0  ;;  %1705 = vmatmul.bf16.gmra.mxu2 %v1374_v21 }
 0x2ba   :  { %1959 = vmatmul.bf16.gmra.mxu3 %v1375_v23  ;;  %v777_v28 = vpop.f32.mrf.mxu0 }
 0x2bb   :  { %v2193_v30 = vpack.c.bf16 %v2095_v25, %v2095_v25  ;;  %v1031_v26 = vpop.f32.mrf.mxu1  ;;  %v778_v46 = vadd.f32 %v777_v28, %v9148_v12 }
 0x2bc   :  { %v1666_v33 = vpop.f32.mrf.mxu2  ;;  %v1032_v47 = vadd.f32 %v1031_v26, %v9150_v13 }
 0x2bd   :  { %v4175_v35 = vunpack.c.l.b16 %v2193_v30  ;;  %v1667_v38 = vadd.f32 %v9376_v32, %v1666_v33  ;;  %v1920_v40 = vpop.f32.mrf.mxu3  ;;  %816 = vmatmul.bf16.gmra.mxu0 %v8452_v27  ;;  %v1244_v55 = vmax.f32 %v778_v46, 0.0 }
 0x2be   :  { %1070 = vmatmul.bf16.gmra.mxu1 %v8452_v27  ;;  %v1245_v0 = vmax.f32 %v1032_v47, 0.0 }
 0x2bf   :  { %v9471_v43 = vpack.c.b16 %v4175_v35, %v4174_v34  ;;  %v1921_v45 = vadd.f32 %v1920_v40, %v1667_v38 }
 0x2c1   :  { %v2096_v57 = vmax.f32 %v1921_v45, 0.0 }
 0x2c2   :  { %v779_v48 = vpop.f32.mrf.mxu0 }
 0x2c3   :  { %v780_v49 = vadd.f32 %v779_v48, %v9148_v12  ;;  %v1033_v50 = vpop.f32.mrf.mxu1  ;;  %v2194_v9 = vpack.c.bf16 %v2096_v57, %v2096_v57 }
 0x2c4   :  { %v1034_v52 = vadd.f32 %v1033_v50, %v9150_v13  ;;  %v1668_v53 = vpop.f32.mrf.mxu2 }
 0x2c5   :  { %v1246_v58 = vmax.f32 %v780_v49, 0.0  ;;  %v1669_v60 = vadd.f32 %v9376_v32, %v1668_v53  ;;  %v1922_v63 = vpop.f32.mrf.mxu3  ;;  %v4261_v21 = vunpack.c.l.b16 %v2194_v9 }
 0x2c6   :  { %v1247_v1 = vmax.f32 %v1034_v52, 0.0 }
 0x2c7   :  { %v1923_v5 = vadd.f32 %v1922_v63, %v1669_v60  ;;  %v1376_v6 = vpack.c.bf16 %v1246_v58, %v1244_v55  ;;  %v8454_v63 = vld [vmem:[%s9810_s0 + $0x150] sm:$0xff] }
 0x2c8   :  { %v1377_v7 = vpack.c.bf16 %v1247_v1, %v1245_v0 }
 0x2c9   :  { %v2097_v10 = vmax.f32 %v1923_v5, 0.0  ;;  %1710 = vmatmul.bf16.gmra.mxu2 %v1376_v6 }
 0x2ca   :  { %1964 = vmatmul.bf16.gmra.mxu3 %v1377_v7  ;;  %v782_v14 = vpop.f32.mrf.mxu0 }
 0x2cb   :  { %v2195_v15 = vpack.c.bf16 %v2097_v10, %v2097_v10  ;;  %v1036_v17 = vpop.f32.mrf.mxu1  ;;  %v783_v30 = vadd.f32 %v782_v14, %v9148_v12 }
 0x2cc   :  { %v1671_v20 = vpop.f32.mrf.mxu2  ;;  %v1037_v26 = vadd.f32 %v1036_v17, %v9150_v13 }
 0x2cd   :  { %v4262_v23 = vunpack.c.l.b16 %v2195_v15  ;;  %v1672_v24 = vadd.f32 %v9376_v32, %v1671_v20  ;;  %v1925_v25 = vpop.f32.mrf.mxu3  ;;  %821 = vmatmul.bf16.gmra.mxu0 %v8453_v11  ;;  %v1248_v45 = vmax.f32 %v783_v30, 0.0 }
 0x2ce   :  { %1075 = vmatmul.bf16.gmra.mxu1 %v8453_v11  ;;  %v1249_v50 = vmax.f32 %v1037_v26, 0.0 }
 0x2cf   :  { %v9482_v27 = vpack.c.b16 %v4262_v23, %v4261_v21  ;;  %v1926_v28 = vadd.f32 %v1925_v25, %v1672_v24 }
 0x2d1   :  { %v2098_v46 = vmax.f32 %v1926_v28, 0.0 }
 0x2d2   :  { %v784_v33 = vpop.f32.mrf.mxu0 }
 0x2d3   :  { %v785_v34 = vadd.f32 %v784_v33, %v9148_v12  ;;  %v1038_v35 = vpop.f32.mrf.mxu1  ;;  %v2196_v58 = vpack.c.bf16 %v2098_v46, %v2098_v46 }
 0x2d4   :  { %v1039_v38 = vadd.f32 %v1038_v35, %v9150_v13  ;;  %v1673_v40 = vpop.f32.mrf.mxu2 }
 0x2d5   :  { %v1250_v47 = vmax.f32 %v785_v34, 0.0  ;;  %v1674_v48 = vadd.f32 %v9376_v32, %v1673_v40  ;;  %v1927_v49 = vpop.f32.mrf.mxu3  ;;  %v4348_v7 = vunpack.c.l.b16 %v2196_v58 }
 0x2d6   :  { %v1251_v52 = vmax.f32 %v1039_v38, 0.0 }
 0x2d7   :  { %v1928_v53 = vadd.f32 %v1927_v49, %v1674_v48  ;;  %v1378_v55 = vpack.c.bf16 %v1250_v47, %v1248_v45 }
 0x2d8   :  { %v1379_v57 = vpack.c.bf16 %v1251_v52, %v1249_v50  ;;  %v8455_v50 = vld [vmem:[%s9810_s0 + $0x158] sm:$0xff] }
 0x2d9   :  { %v2099_v60 = vmax.f32 %v1928_v53, 0.0  ;;  %1715 = vmatmul.bf16.gmra.mxu2 %v1378_v55 }
 0x2da   :  { %1969 = vmatmul.bf16.gmra.mxu3 %v1379_v57  ;;  %v787_v0 = vpop.f32.mrf.mxu0 }
 0x2db   :  { %v2197_v1 = vpack.c.bf16 %v2099_v60, %v2099_v60  ;;  %v1041_v5 = vpop.f32.mrf.mxu1  ;;  %v788_v17 = vadd.f32 %v787_v0, %v9148_v12 }
 0x2dc   :  { %v1676_v6 = vpop.f32.mrf.mxu2  ;;  %v1042_v20 = vadd.f32 %v1041_v5, %v9150_v13 }
 0x2dd   :  { %v4349_v9 = vunpack.c.l.b16 %v2197_v1  ;;  %v1677_v10 = vadd.f32 %v9376_v32, %v1676_v6  ;;  %v1930_v11 = vpop.f32.mrf.mxu3  ;;  %826 = vmatmul.bf16.gmra.mxu0 %v8454_v63  ;;  %v1252_v30 = vmax.f32 %v788_v17, 0.0 }
 0x2de   :  { %1080 = vmatmul.bf16.gmra.mxu1 %v8454_v63  ;;  %v1253_v38 = vmax.f32 %v1042_v20, 0.0 }
 0x2df   :  { %v9493_v14 = vpack.c.b16 %v4349_v9, %v4348_v7  ;;  %v1931_v15 = vadd.f32 %v1930_v11, %v1677_v10 }
 0x2e1   :  { %v2100_v26 = vmax.f32 %v1931_v15, 0.0 }
 0x2e2   :  { %v789_v21 = vpop.f32.mrf.mxu0 }
 0x2e3   :  { %v790_v23 = vadd.f32 %v789_v21, %v9148_v12  ;;  %v1043_v24 = vpop.f32.mrf.mxu1  ;;  %v2198_v48 = vpack.c.bf16 %v2100_v26, %v2100_v26 }
 0x2e4   :  { %v1044_v25 = vadd.f32 %v1043_v24, %v9150_v13  ;;  %v1678_v28 = vpop.f32.mrf.mxu2 }
 0x2e5   :  { %v1254_v33 = vmax.f32 %v790_v23, 0.0  ;;  %v1679_v34 = vadd.f32 %v9376_v32, %v1678_v28  ;;  %v1932_v35 = vpop.f32.mrf.mxu3  ;;  %v4435_v58 = vunpack.c.l.b16 %v2198_v48 }
 0x2e6   :  { %v1255_v40 = vmax.f32 %v1044_v25, 0.0 }
 0x2e7   :  { %v1933_v45 = vadd.f32 %v1932_v35, %v1679_v34  ;;  %v1380_v46 = vpack.c.bf16 %v1254_v33, %v1252_v30 }
 0x2e8   :  { %v1381_v47 = vpack.c.bf16 %v1255_v40, %v1253_v38  ;;  %v8456_v40 = vld [vmem:[%s9810_s0 + $0x160] sm:$0xff] }
 0x2e9   :  { %v2101_v49 = vmax.f32 %v1933_v45, 0.0  ;;  %1720 = vmatmul.bf16.gmra.mxu2 %v1380_v46 }
 0x2ea   :  { %1974 = vmatmul.bf16.gmra.mxu3 %v1381_v47  ;;  %v792_v52 = vpop.f32.mrf.mxu0 }
 0x2eb   :  { %v2199_v53 = vpack.c.bf16 %v2101_v49, %v2101_v49  ;;  %v1046_v55 = vpop.f32.mrf.mxu1  ;;  %v793_v6 = vadd.f32 %v792_v52, %v9148_v12 }
 0x2ec   :  { %v1681_v57 = vpop.f32.mrf.mxu2  ;;  %v1047_v7 = vadd.f32 %v1046_v55, %v9150_v13 }
 0x2ed   :  { %v4436_v60 = vunpack.c.l.b16 %v2199_v53  ;;  %v1682_v63 = vadd.f32 %v9376_v32, %v1681_v57  ;;  %v1935_v0 = vpop.f32.mrf.mxu3  ;;  %831 = vmatmul.bf16.gmra.mxu0 %v8455_v50  ;;  %v1256_v20 = vmax.f32 %v793_v6, 0.0 }
 0x2ee   :  { %1085 = vmatmul.bf16.gmra.mxu1 %v8455_v50  ;;  %v1257_v28 = vmax.f32 %v1047_v7, 0.0 }
 0x2ef   :  { %v9504_v1 = vpack.c.b16 %v4436_v60, %v4435_v58  ;;  %v1936_v5 = vadd.f32 %v1935_v0, %v1682_v63 }
 0x2f1   :  { %v2102_v21 = vmax.f32 %v1936_v5, 0.0 }
 0x2f2   :  { %v794_v9 = vpop.f32.mrf.mxu0 }
 0x2f3   :  { %v795_v10 = vadd.f32 %v794_v9, %v9148_v12  ;;  %v1048_v11 = vpop.f32.mrf.mxu1  ;;  %v2200_v35 = vpack.c.bf16 %v2102_v21, %v2102_v21 }
 0x2f4   :  { %v1049_v15 = vadd.f32 %v1048_v11, %v9150_v13  ;;  %v1683_v17 = vpop.f32.mrf.mxu2 }
 0x2f5   :  { %v1258_v23 = vmax.f32 %v795_v10, 0.0  ;;  %v1684_v24 = vadd.f32 %v9376_v32, %v1683_v17  ;;  %v1937_v25 = vpop.f32.mrf.mxu3  ;;  %v4522_v49 = vunpack.c.l.b16 %v2200_v35 }
 0x2f6   :  { %v1259_v30 = vmax.f32 %v1049_v15, 0.0 }
 0x2f7   :  { %v1938_v26 = vadd.f32 %v1937_v25, %v1684_v24  ;;  %v1382_v33 = vpack.c.bf16 %v1258_v23, %v1256_v20  ;;  %v8503_v20 = vld [vmem:[#allocation9 + $0x50] sm:$0xff] }
 0x2f8   :  { %v1383_v34 = vpack.c.bf16 %v1259_v30, %v1257_v28  ;;  %v8495_v24 = vld [vmem:[#allocation9 + $0x10] sm:$0xff]  ;;  %2338 = vmatpush.bf16.msrb.mxu0 %v8503_v20 }
 0x2f9   :  { %v2103_v38 = vmax.f32 %v1938_v26, 0.0  ;;  %1725 = vmatmul.bf16.gmra.mxu2 %v1382_v33  ;;  %2406 = vmatpush.bf16.msrb.mxu1 %v8495_v24 }
 0x2fa   :  { %1979 = vmatmul.bf16.gmra.mxu3 %v1383_v34  ;;  %v797_v45 = vpop.f32.mrf.mxu0  ;;  %v8457_v34 = vld [vmem:[%s9810_s0 + $0x168] sm:$0xff] }
 0x2fb   :  { %v2201_v46 = vpack.c.bf16 %v2103_v38, %v2103_v38  ;;  %v1051_v47 = vpop.f32.mrf.mxu1  ;;  %v798_v58 = vadd.f32 %v797_v45, %v9148_v12  ;;  %v8502_v38 = vld [vmem:[#allocation9 + $0x48] sm:$0xff] }
 0x2fc   :  { %v1686_v48 = vpop.f32.mrf.mxu2  ;;  %v1052_v60 = vadd.f32 %v1051_v47, %v9150_v13  ;;  %2339 = vmatpush.bf16.msrb.mxu0 %v8502_v38 }
 0x2fd   :  { %v4523_v50 = vunpack.c.l.b16 %v2201_v46  ;;  %v1687_v52 = vadd.f32 %v9376_v32, %v1686_v48  ;;  %v1940_v53 = vpop.f32.mrf.mxu3  ;;  %836 = vmatmul.bf16.gmra.mxu0 %v8456_v40  ;;  %v1260_v9 = vmax.f32 %v798_v58, 0.0 }
 0x2fe   :  { %1090 = vmatmul.bf16.gmra.mxu1 %v8456_v40  ;;  %v1261_v21 = vmax.f32 %v1052_v60, 0.0  ;;  %v8494_v40 = vld [vmem:[#allocation9 + $0x8] sm:$0xff] }
 0x2ff   :  { %v9515_v55 = vpack.c.b16 %v4523_v50, %v4522_v49  ;;  %v1941_v57 = vadd.f32 %v1940_v53, %v1687_v52  ;;  %2407 = vmatpush.bf16.msrb.mxu1 %v8494_v40  ;;  %v8501_v53 = vld [vmem:[#allocation9 + $0x40] sm:$0xff]  ;;  %v8530_v40 = vld [vmem:[#allocation9 + $0x128] sm:$0xff] }
 0x300   :  { %2340 = vmatpush.bf16.msrb.mxu0 %v8501_v53 }
 0x301   :  { %v2104_v10 = vmax.f32 %v1941_v57, 0.0  ;;  %v8493_v57 = vld [vmem:[#allocation9] sm:$0xff] }
 0x302   :  { %v799_v63 = vpop.f32.mrf.mxu0 }
 0x303   :  { %v800_v0 = vadd.f32 %v799_v63, %v9148_v12  ;;  %v1053_v5 = vpop.f32.mrf.mxu1  ;;  %v2202_v26 = vpack.c.bf16 %v2104_v10, %v2104_v10  ;;  %v8511_v63 = vld [vmem:[#allocation9 + $0x90] sm:$0xff]  ;;  %2408 = vmatpush.bf16.msrb.mxu1 %v8493_v57  ;;  %v8529_v57 = vld [vmem:[#allocation9 + $0x120] sm:$0xff] }
 0x304   :  { %v1054_v6 = vadd.f32 %v1053_v5, %v9150_v13  ;;  %v1688_v7 = vpop.f32.mrf.mxu2  ;;  %v8532_v5 = vld [vmem:[#allocation9 + $0x138] sm:$0xff]  ;;  %2491 = vmatpush.bf16.msrb.mxu2 %v8511_v63 }
 0x305   :  { %v1262_v11 = vmax.f32 %v800_v0, 0.0  ;;  %v1689_v15 = vadd.f32 %v9376_v32, %v1688_v7  ;;  %v1942_v17 = vpop.f32.mrf.mxu3  ;;  %v4609_v48 = vunpack.c.l.b16 %v2202_v26  ;;  %v8519_v0 = vld [vmem:[#allocation9 + $0xd0] sm:$0xff]  ;;  %2660 = vmatpush.bf16.msra.mxu0 %v8532_v5 }
 0x306   :  { %v1263_v23 = vmax.f32 %v1054_v6, 0.0  ;;  %v8540_v6 = vld [vmem:[#allocation9 + $0x178] sm:$0xff]  ;;  %2578 = vmatpush.bf16.msrb.mxu3 %v8519_v0 }
 0x307   :  { %v1943_v25 = vadd.f32 %v1942_v17, %v1689_v15  ;;  %v1384_v28 = vpack.c.bf16 %v1262_v11, %v1260_v9  ;;  %2747 = vmatpush.bf16.msra.mxu1 %v8540_v6  ;;  %v8531_v15 = vld [vmem:[#allocation9 + $0x130] sm:$0xff] }
 0x308   :  { %v1385_v30 = vpack.c.bf16 %v1263_v23, %v1261_v21  ;;  %v8539_v17 = vld [vmem:[#allocation9 + $0x170] sm:$0xff] }
 0x309   :  { %v2105_v33 = vmax.f32 %v1943_v25, 0.0  ;;  %1730 = vmatmul.bf16.gmra.mxu2 %v1384_v28  ;;  %v9532_v28 = vld [vmem:[#allocation7] ss:$0 sm:$0xff]  ;;  %2661 = vmatpush.bf16.msra.mxu0 %v8531_v15 }
 0x30a   :  { %1984 = vmatmul.bf16.gmra.mxu3 %v1385_v30  ;;  %v802_v35 = vpop.f32.mrf.mxu0 }
 0x30b   :  { %v2203_v45 = vpack.c.bf16 %v2105_v33, %v2105_v33  ;;  %v1056_v46 = vpop.f32.mrf.mxu1  ;;  %v803_v7 = vadd.f32 %v802_v35, %v9148_v12  ;;  %2748 = vmatpush.bf16.msra.mxu1 %v8539_v17 }
 0x30c   :  { %v1691_v47 = vpop.f32.mrf.mxu2 }
 0x30d   :  { %v4610_v49 = vunpack.c.l.b16 %v2203_v45  ;;  %v1692_v50 = vadd.f32 %v9376_v32, %v1691_v47  ;;  %v1945_v52 = vpop.f32.mrf.mxu3  ;;  %841 = vmatmul.bf16.gmra.mxu0 %v8457_v34  ;;  %v1057_v32 = vadd.f32 %v1056_v46, %v9150_v13  ;;  %v1264_v23 = vmax.f32 %v803_v7, 0.0  ;;  %v8538_v45 = vld [vmem:[#allocation9 + $0x168] sm:$0xff] }
 0x30e   :  { %1095 = vmatmul.bf16.gmra.mxu1 %v8457_v34  ;;  %2662 = vmatpush.bf16.msra.mxu0 %v8530_v40 }
 0x30f   :  { %v9526_v58 = vpack.c.b16 %v4610_v49, %v4609_v48  ;;  %v1946_v60 = vadd.f32 %v1945_v52, %v1692_v50  ;;  %v1265_v33 = vmax.f32 %v1057_v32, 0.0  ;;  %v8458_v49 = vld [vmem:[%s9810_s0 + $0x170] sm:$0xff]  ;;  %2749 = vmatpush.bf16.msra.mxu1 %v8538_v45 }
 0x311   :  { %v2106_v24 = vmax.f32 %v1946_v60, 0.0  ;;  %v8537_v60 = vld [vmem:[#allocation9 + $0x160] sm:$0xff] }
 0x312   :  { %v804_v9 = vpop.f32.mrf.mxu0  ;;  %2663 = vmatpush.bf16.msra.mxu0 %v8529_v57 }
 0x313   :  { %v805_v10 = vadd.f32 %v804_v9, %v9148_v12  ;;  %v1058_v11 = vpop.f32.mrf.mxu1  ;;  %v2204_v47 = vpack.c.bf16 %v2106_v24, %v2106_v24  ;;  %2750 = vmatpush.bf16.msra.mxu1 %v8537_v60  ;;  %v8527_v24 = vld [vmem:[#allocation9 + $0x110] sm:$0xff] }
 0x314   :  { %v1059_v20 = vadd.f32 %v1058_v11, %v9150_v13  ;;  %v1693_v21 = vpop.f32.mrf.mxu2  ;;  %v8536_v11 = vld [vmem:[#allocation9 + $0x158] sm:$0xff] }
 0x315   :  { %v1266_v25 = vmax.f32 %v805_v10, 0.0  ;;  %v1694_v30 = vadd.f32 %v9532_v28, %v1693_v21  ;;  %v1947_v26 = vpop.f32.mrf.mxu3  ;;  %v4696_v0 = vunpack.c.l.b16 %v2204_v47  ;;  %v8528_v10 = vld [vmem:[#allocation9 + $0x118] sm:$0xff] }
 0x316   :  { %v1267_v34 = vmax.f32 %v1059_v20, 0.0  ;;  %2664 = vmatpush.bf16.msra.mxu0 %v8528_v10  ;;  %v8459_v60 = vld [vmem:[%s9810_s0 + $0x178] sm:$0xff] }
 0x317   :  { %v1948_v35 = vadd.f32 %v1947_v26, %v1694_v30  ;;  %v1386_v38 = vpack.c.bf16 %v1266_v25, %v1264_v23  ;;  %2751 = vmatpush.bf16.msra.mxu1 %v8536_v11  ;;  %v8535_v25 = vld [vmem:[#allocation9 + $0x150] sm:$0xff] }
 0x318   :  { %v1387_v46 = vpack.c.bf16 %v1267_v34, %v1265_v33 }
 0x319   :  { %v2107_v48 = vmax.f32 %v1948_v35, 0.0  ;;  %1735 = vmatmul.bf16.gmra.mxu2 %v1386_v38 }
 0x31a   :  { %1989 = vmatmul.bf16.gmra.mxu3 %v1387_v46  ;;  %v807_v50 = vpop.f32.mrf.mxu0  ;;  %2665 = vmatpush.bf16.msra.mxu0 %v8527_v24 }
 0x31b   :  { %v2205_v52 = vpack.c.bf16 %v2107_v48, %v2107_v48  ;;  %v1061_v53 = vpop.f32.mrf.mxu1  ;;  %v808_v15 = vadd.f32 %v807_v50, %v9148_v12  ;;  %2752 = vmatpush.bf16.msra.mxu1 %v8535_v25  ;;  %v8534_v50 = vld [vmem:[#allocation9 + $0x148] sm:$0xff] }
 0x31c   :  { %v1696_v63 = vpop.f32.mrf.mxu2  ;;  %v1062_v17 = vadd.f32 %v1061_v53, %v9150_v13 }
 0x31d   :  { %v4697_v5 = vunpack.c.l.b16 %v2205_v52  ;;  %v1697_v6 = vadd.f32 %v9532_v28, %v1696_v63  ;;  %v1950_v7 = vpop.f32.mrf.mxu3  ;;  %846 = vmatmul.bf16.gmra.mxu0 %v8458_v49  ;;  %v1268_v33 = vmax.f32 %v808_v15, 0.0 }
 0x31e   :  { %1100 = vmatmul.bf16.gmra.mxu1 %v8458_v49  ;;  %v1269_v45 = vmax.f32 %v1062_v17, 0.0  ;;  %v8526_v49 = vld [vmem:[#allocation9 + $0x108] sm:$0xff] }
 0x31f   :  { %v9539_v32 = vpack.c.b16 %v4697_v5, %v4696_v0  ;;  %v1951_v9 = vadd.f32 %v1950_v7, %v1697_v6  ;;  %2666 = vmatpush.bf16.msra.mxu0 %v8526_v49  ;;  %2753 = vmatpush.bf16.msra.mxu1 %v8534_v50  ;;  %v8525_v6 = vld [vmem:[#allocation9 + $0x100] sm:$0xff] }
 0x320   :  { %v8533_v7 = vld [vmem:[#allocation9 + $0x140] sm:$0xff] }
 0x321   :  { %v2108_v34 = vmax.f32 %v1951_v9, 0.0 }
 0x322   :  { %v809_v20 = vpop.f32.mrf.mxu0 }
 0x323   :  { %v810_v21 = vadd.f32 %v809_v20, %v9148_v12  ;;  %v1063_v23 = vpop.f32.mrf.mxu1  ;;  %v2206_v53 = vpack.c.bf16 %v2108_v34, %v2108_v34  ;;  %2667 = vmatpush.bf16.msra.mxu0 %v8525_v6  ;;  %2754 = vmatpush.bf16.msra.mxu1 %v8533_v7 }
 0x324   :  { %v1064_v30 = vadd.f32 %v1063_v23, %v9150_v13  ;;  %v1698_v26 = vpop.f32.mrf.mxu2 }
 0x325   :  { %v1270_v35 = vmax.f32 %v810_v21, 0.0  ;;  %v1699_v38 = vadd.f32 %v9532_v28, %v1698_v26  ;;  %v1952_v40 = vpop.f32.mrf.mxu3  ;;  %v4783_v10 = vunpack.c.l.b16 %v2206_v53 }
 0x326   :  { %v1271_v46 = vmax.f32 %v1064_v30, 0.0 }
 0x327   :  { %v1953_v47 = vadd.f32 %v1952_v40, %v1699_v38  ;;  %v1388_v48 = vpack.c.bf16 %v1270_v35, %v1268_v33 }
 0x328   :  { %v1389_v52 = vpack.c.bf16 %v1271_v46, %v1269_v45 }
 0x329   :  { %v2109_v57 = vmax.f32 %v1953_v47, 0.0  ;;  %1740 = vmatmul.bf16.gmra.mxu2 %v1388_v48 }
 0x32a   :  { %1994 = vmatmul.bf16.gmra.mxu3 %v1389_v52  ;;  %v812_v63 = vpop.f32.mrf.mxu0 }
 0x32b   :  { %v2207_v0 = vpack.c.bf16 %v2109_v57, %v2109_v57  ;;  %v1066_v5 = vpop.f32.mrf.mxu1  ;;  %v813_v23 = vadd.f32 %v812_v63, %v9148_v12 }
 0x32c   :  { %v1701_v9 = vpop.f32.mrf.mxu2  ;;  %v1067_v24 = vadd.f32 %v1066_v5, %v9150_v13 }
 0x32d   :  { %v4784_v11 = vunpack.c.l.b16 %v2207_v0  ;;  %v1702_v15 = vadd.f32 %v9532_v28, %v1701_v9  ;;  %v1955_v17 = vpop.f32.mrf.mxu3  ;;  %851 = vmatmul.bf16.gmra.mxu0 %v8459_v60  ;;  %v1272_v35 = vmax.f32 %v813_v23, 0.0 }
 0x32e   :  { %1105 = vmatmul.bf16.gmra.mxu1 %v8459_v60  ;;  %v1273_v47 = vmax.f32 %v1067_v24, 0.0  ;;  %v8460_v60 = vld [vmem:[%s9810_s0 + $0x180] sm:$0xff] }
 0x32f   :  { %v9550_v20 = vpack.c.b16 %v4784_v11, %v4783_v10  ;;  %v1956_v21 = vadd.f32 %v1955_v17, %v1702_v15 }
 0x331   :  { %v2110_v38 = vmax.f32 %v1956_v21, 0.0 }
 0x332   :  { %v814_v25 = vpop.f32.mrf.mxu0 }
 0x333   :  { %v815_v30 = vadd.f32 %v814_v25, %v9148_v12  ;;  %v1068_v26 = vpop.f32.mrf.mxu1  ;;  %v2208_v53 = vpack.c.bf16 %v2110_v38, %v2110_v38 }
 0x334   :  { %v1069_v33 = vadd.f32 %v1068_v26, %v9150_v13  ;;  %v1703_v34 = vpop.f32.mrf.mxu2 }
 0x335   :  { %v1274_v40 = vmax.f32 %v815_v30, 0.0  ;;  %v1704_v45 = vadd.f32 %v9532_v28, %v1703_v34  ;;  %v1957_v46 = vpop.f32.mrf.mxu3  ;;  %v4870_v7 = vunpack.c.l.b16 %v2208_v53 }
 0x336   :  { %v1275_v48 = vmax.f32 %v1069_v33, 0.0 }
 0x337   :  { %v1958_v49 = vadd.f32 %v1957_v46, %v1704_v45  ;;  %v1390_v50 = vpack.c.bf16 %v1274_v40, %v1272_v35 }
 0x338   :  { %v1391_v52 = vpack.c.bf16 %v1275_v48, %v1273_v47 }
 0x339   :  { %v2111_v57 = vmax.f32 %v1958_v49, 0.0  ;;  %1745 = vmatmul.bf16.gmra.mxu2 %v1390_v50 }
 0x33a   :  { %1999 = vmatmul.bf16.gmra.mxu3 %v1391_v52  ;;  %v817_v63 = vpop.f32.mrf.mxu0 }
 0x33b   :  { %v2209_v0 = vpack.c.bf16 %v2111_v57, %v2111_v57  ;;  %v1071_v5 = vpop.f32.mrf.mxu1  ;;  %v818_v21 = vadd.f32 %v817_v63, %v9148_v12 }
 0x33c   :  { %v1706_v6 = vpop.f32.mrf.mxu2  ;;  %v1072_v23 = vadd.f32 %v1071_v5, %v9150_v13  ;;  %v8572_v5 = vld [vmem:[#allocation9 + $0x278] sm:$0xff] }
 0x33d   :  { %v4871_v9 = vunpack.c.l.b16 %v2209_v0  ;;  %v1707_v10 = vadd.f32 %v9532_v28, %v1706_v6  ;;  %v1960_v11 = vpop.f32.mrf.mxu3  ;;  %856 = vmatmul.bf16.gmra.mxu0 %v8460_v60  ;;  %v1276_v34 = vmax.f32 %v818_v21, 0.0 }
 0x33e   :  { %1110 = vmatmul.bf16.gmra.mxu1 %v8460_v60  ;;  %v1277_v46 = vmax.f32 %v1072_v23, 0.0  ;;  %v8564_v60 = vld [vmem:[#allocation9 + $0x238] sm:$0xff] }
 0x33f   :  { %v9561_v15 = vpack.c.b16 %v4871_v9, %v4870_v7  ;;  %v1961_v17 = vadd.f32 %v1960_v11, %v1707_v10 }
 0x341   :  { %v2112_v35 = vmax.f32 %v1961_v17, 0.0  ;;  %v8563_v17 = vld [vmem:[#allocation9 + $0x230] sm:$0xff] }
 0x342   :  { %v819_v24 = vpop.f32.mrf.mxu0 }
 0x343   :  { %v820_v25 = vadd.f32 %v819_v24, %v9148_v12  ;;  %v1073_v30 = vpop.f32.mrf.mxu1  ;;  %v2210_v52 = vpack.c.bf16 %v2112_v35, %v2112_v35  ;;  %v8571_v24 = vld [vmem:[#allocation9 + $0x270] sm:$0xff]  ;;  %v8570_v35 = vld [vmem:[#allocation9 + $0x268] sm:$0xff] }
 0x344   :  { %v1074_v26 = vadd.f32 %v1073_v30, %v9150_v13  ;;  %v1708_v33 = vpop.f32.mrf.mxu2 }
 0x345   :  { %v1278_v38 = vmax.f32 %v820_v25, 0.0  ;;  %v1709_v40 = vadd.f32 %v9532_v28, %v1708_v33  ;;  %v1962_v45 = vpop.f32.mrf.mxu3  ;;  %v4957_v7 = vunpack.c.l.b16 %v2210_v52  ;;  %v8562_v33 = vld [vmem:[#allocation9 + $0x228] sm:$0xff]  ;;  %v8561_v52 = vld [vmem:[#allocation9 + $0x220] sm:$0xff] }
 0x346   :  { %v1279_v47 = vmax.f32 %v1074_v26, 0.0 }
 0x347   :  { %v1963_v48 = vadd.f32 %v1962_v45, %v1709_v40  ;;  %v1392_v49 = vpack.c.bf16 %v1278_v38, %v1276_v34 }
 0x348   :  { %v1393_v50 = vpack.c.bf16 %v1279_v47, %v1277_v46 }
 0x349   :  { %v2113_v53 = vmax.f32 %v1963_v48, 0.0  ;;  %1750 = vmatmul.bf16.gmra.mxu2 %v1392_v49 }
 0x34a   :  { %2004 = vmatmul.bf16.gmra.mxu3 %v1393_v50  ;;  %v822_v57 = vpop.f32.mrf.mxu0 }
 0x34b   :  { %v2211_v63 = vpack.c.bf16 %v2113_v53, %v2113_v53  ;;  %v1076_v0 = vpop.f32.mrf.mxu1  ;;  %v823_v25 = vadd.f32 %v822_v57, %v9148_v12 }
 0x34c   :  { %v1711_v6 = vpop.f32.mrf.mxu2  ;;  %v1077_v30 = vadd.f32 %v1076_v0, %v9150_v13 }
 0x34d   :  { %v4958_v9 = vunpack.c.l.b16 %v2211_v63  ;;  %v1712_v10 = vadd.f32 %v9532_v28, %v1711_v6  ;;  %v1965_v11 = vpop.f32.mrf.mxu3  ;;  %2341 = vmatmul.bf16.vlgmr.msrb.gmra.mxu0 %v9238_v31  ;;  %v1280_v40 = vmax.f32 %v823_v25, 0.0 }
 0x34e   :  { %2409 = vmatmul.bf16.vlgmr.msrb.gmra.mxu1 %v9227_v62  ;;  %3008 = vmatpush.bf16.msrb.mxu0 %v8564_v60  ;;  %v1281_v49 = vmax.f32 %v1077_v30, 0.0  ;;  %v8569_v60 = vld [vmem:[#allocation9 + $0x260] sm:$0xff] }
 0x34f   :  { %v9571_v21 = vpack.c.b16 %v4958_v9, %v4957_v7  ;;  %v1966_v23 = vadd.f32 %v1965_v11, %v1712_v10  ;;  %3095 = vmatpush.bf16.msrb.mxu1 %v8572_v5  ;;  %v8560_v7 = vld [vmem:[#allocation9 + $0x218] sm:$0xff] }
 0x350   :  { %v8568_v11 = vld [vmem:[#allocation9 + $0x258] sm:$0xff] }
 0x351   :  { %v2114_v45 = vmax.f32 %v1966_v23, 0.0 }
 0x352   :  { %3009 = vmatpush.bf16.msrb.mxu0 %v8563_v17  ;;  %v824_v26 = vpop.f32.mrf.mxu0 }
 0x353   :  { %3096 = vmatpush.bf16.msrb.mxu1 %v8571_v24  ;;  %v825_v34 = vadd.f32 %v824_v26, %v9148_v12  ;;  %v1078_v31 = vpop.f32.mrf.mxu1  ;;  %v2212_v0 = vpack.c.bf16 %v2114_v45, %v2114_v45  ;;  %v8559_v26 = vld [vmem:[#allocation9 + $0x210] sm:$0xff] }
 0x354   :  { %v1079_v62 = vadd.f32 %v1078_v31, %v9150_v13  ;;  %v1713_v38 = vpop.f32.mrf.mxu2  ;;  %v8567_v31 = vld [vmem:[#allocation9 + $0x250] sm:$0xff] }
 0x355   :  { %v1282_v46 = vmax.f32 %v825_v34, 0.0  ;;  %v1714_v47 = vadd.f32 %v9532_v28, %v1713_v38  ;;  %v1967_v48 = vpop.f32.mrf.mxu3  ;;  %v5044_v23 = vunpack.c.l.b16 %v2212_v0 }
 0x356   :  { %v1283_v50 = vmax.f32 %v1079_v62, 0.0  ;;  %3010 = vmatpush.bf16.msrb.mxu0 %v8562_v33 }
 0x357   :  { %v1968_v53 = vadd.f32 %v1967_v48, %v1714_v47  ;;  %3097 = vmatpush.bf16.msrb.mxu1 %v8570_v35  ;;  %v1394_v57 = vpack.c.bf16 %v1282_v46, %v1280_v40  ;;  %v8558_v40 = vld [vmem:[#allocation9 + $0x208] sm:$0xff] }
 0x358   :  { %v1395_v63 = vpack.c.bf16 %v1283_v50, %v1281_v49  ;;  %v8566_v46 = vld [vmem:[#allocation9 + $0x248] sm:$0xff] }
 0x359   :  { %v2115_v5 = vmax.f32 %v1968_v53, 0.0  ;;  %1755 = vmatmul.bf16.gmra.mxu2 %v1394_v57 }
 0x35a   :  { %2009 = vmatmul.bf16.gmra.mxu3 %v1395_v63  ;;  %3011 = vmatpush.bf16.msrb.mxu0 %v8561_v52  ;;  %v827_v6 = vpop.f32.mrf.mxu0  ;;  %v8557_v63 = vld [vmem:[#allocation9 + $0x200] sm:$0xff] }
 0x35b   :  { %v2213_v9 = vpack.c.bf16 %v2115_v5, %v2115_v5  ;;  %3098 = vmatpush.bf16.msrb.mxu1 %v8569_v60  ;;  %v1081_v10 = vpop.f32.mrf.mxu1  ;;  %v828_v35 = vadd.f32 %v827_v6, %v9148_v12  ;;  %v8565_v6 = vld [vmem:[#allocation9 + $0x240] sm:$0xff] }
 0x35c   :  { %v1716_v17 = vpop.f32.mrf.mxu2  ;;  %v1082_v62 = vadd.f32 %v1081_v10, %v9150_v13  ;;  %v8604_v10 = vld [vmem:[#allocation9 + $0x378] sm:$0xff] }
 0x35d   :  { %v5045_v24 = vunpack.c.l.b16 %v2213_v9  ;;  %v1717_v25 = vadd.f32 %v9532_v28, %v1716_v17  ;;  %v1970_v30 = vpop.f32.mrf.mxu3  ;;  %2668 = vmatmul.bf16.vlgmr.msra.gmra.mxu0 %v9271_v4  ;;  %v1284_v48 = vmax.f32 %v828_v35, 0.0 }
 0x35e   :  { %2755 = vmatmul.bf16.vlgmr.msra.gmra.mxu1 %v9282_v39  ;;  %3012 = vmatpush.bf16.msrb.mxu0 %v8560_v7  ;;  %v1285_v57 = vmax.f32 %v1082_v62, 0.0  ;;  %v8596_v7 = vld [vmem:[#allocation9 + $0x338] sm:$0xff] }
 0x35f   :  { %v9581_v33 = vpack.c.b16 %v5045_v24, %v5044_v23  ;;  %v1971_v34 = vadd.f32 %v1970_v30, %v1717_v25  ;;  %3099 = vmatpush.bf16.msrb.mxu1 %v8568_v11  ;;  %v8595_v30 = vld [vmem:[#allocation9 + $0x330] sm:$0xff] }
 0x361   :  { %v2116_v49 = vmax.f32 %v1971_v34, 0.0  ;;  %v8603_v34 = vld [vmem:[#allocation9 + $0x370] sm:$0xff] }
 0x362   :  { %3013 = vmatpush.bf16.msrb.mxu0 %v8559_v26  ;;  %v829_v38 = vpop.f32.mrf.mxu0 }
 0x363   :  { %3100 = vmatpush.bf16.msrb.mxu1 %v8567_v31  ;;  %v830_v45 = vadd.f32 %v829_v38, %v9148_v12  ;;  %v1083_v4 = vpop.f32.mrf.mxu1  ;;  %v2214_v11 = vpack.c.bf16 %v2116_v49, %v2116_v49 }
 0x364   :  { %v1084_v39 = vadd.f32 %v1083_v4, %v9150_v13  ;;  %v1718_v47 = vpop.f32.mrf.mxu2  ;;  %v8594_v4 = vld [vmem:[#allocation9 + $0x328] sm:$0xff] }
 0x365   :  { %v1286_v50 = vmax.f32 %v830_v45, 0.0  ;;  %v1719_v52 = vadd.f32 %v9532_v28, %v1718_v47  ;;  %v1972_v53 = vpop.f32.mrf.mxu3  ;;  %v5131_v31 = vunpack.c.l.b16 %v2214_v11  ;;  %v8602_v47 = vld [vmem:[#allocation9 + $0x368] sm:$0xff] }
 0x366   :  { %v1287_v60 = vmax.f32 %v1084_v39, 0.0  ;;  %3014 = vmatpush.bf16.msrb.mxu0 %v8558_v40  ;;  %v8518_v39 = vld [vmem:[#allocation9 + $0xc8] sm:$0xff] }
 0x367   :  { %v1973_v0 = vadd.f32 %v1972_v53, %v1719_v52  ;;  %3101 = vmatpush.bf16.msrb.mxu1 %v8566_v46  ;;  %v1396_v5 = vpack.c.bf16 %v1286_v50, %v1284_v48  ;;  %v8510_v46 = vld [vmem:[#allocation9 + $0x88] sm:$0xff]  ;;  %2579 = vmatpush.bf16.msrb.mxu3 %v8518_v39 }
 0x368   :  { %v1397_v9 = vpack.c.bf16 %v1287_v60, %v1285_v57  ;;  %2492 = vmatpush.bf16.msrb.mxu2 %v8510_v46  ;;  %v8601_v60 = vld [vmem:[#allocation9 + $0x360] sm:$0xff] }
 0x369   :  { %v2117_v17 = vmax.f32 %v1973_v0, 0.0  ;;  %1760 = vmatmul.bf16.gmra.mxu2 %v1396_v5 }
 0x36a   :  { %2014 = vmatmul.bf16.gmra.mxu3 %v1397_v9  ;;  %3015 = vmatpush.bf16.msrb.mxu0 %v8557_v63  ;;  %v832_v23 = vpop.f32.mrf.mxu0 }
 0x36b   :  { %v2215_v24 = vpack.c.bf16 %v2117_v17, %v2117_v17  ;;  %3102 = vmatpush.bf16.msrb.mxu1 %v8565_v6  ;;  %v1086_v25 = vpop.f32.mrf.mxu1  ;;  %v833_v48 = vadd.f32 %v832_v23, %v9148_v12  ;;  %v8592_v23 = vld [vmem:[#allocation9 + $0x318] sm:$0xff] }
 0x36c   :  { %v1721_v26 = vpop.f32.mrf.mxu2  ;;  %v1087_v49 = vadd.f32 %v1086_v25, %v9150_v13  ;;  %v8600_v25 = vld [vmem:[#allocation9 + $0x358] sm:$0xff] }
 0x36d   :  { %v5132_v35 = vunpack.c.l.b16 %v2215_v24  ;;  %v1722_v62 = vadd.f32 %v9532_v28, %v1721_v26  ;;  %v1975_v38 = vpop.f32.mrf.mxu3  ;;  %3016 = vmatmul.bf16.vlgmr.msrb.gmra.mxu0 %v9315_v16  ;;  %v1288_v63 = vmax.f32 %v833_v48, 0.0 }
 0x36e   :  { %3356 = vmatpush.bf16.msra.mxu0 %v8596_v7  ;;  %3103 = vmatmul.bf16.vlgmr.msrb.gmra.mxu1 %v9326_v54  ;;  %v8593_v54 = vld [vmem:[#allocation9 + $0x320] sm:$0xff]  ;;  %v1289_v9 = vmax.f32 %v1087_v49, 0.0 }
 0x36f   :  { %3443 = vmatpush.bf16.msra.mxu1 %v8604_v10  ;;  %v9591_v40 = vpack.c.b16 %v5132_v35, %v5131_v31  ;;  %v1976_v45 = vadd.f32 %v1975_v38, %v1722_v62  ;;  %v8591_v62 = vld [vmem:[#allocation9 + $0x310] sm:$0xff] }
 0x371   :  { %v2118_v0 = vmax.f32 %v1976_v45, 0.0  ;;  %v8599_v45 = vld [vmem:[#allocation9 + $0x350] sm:$0xff] }
 0x372   :  { %3357 = vmatpush.bf16.msra.mxu0 %v8595_v30  ;;  %v834_v50 = vpop.f32.mrf.mxu0 }
 0x373   :  { %3444 = vmatpush.bf16.msra.mxu1 %v8603_v34  ;;  %v835_v16 = vadd.f32 %v834_v50, %v9148_v12  ;;  %v1088_v52 = vpop.f32.mrf.mxu1  ;;  %v2216_v30 = vpack.c.bf16 %v2118_v0, %v2118_v0  ;;  %v8590_v50 = vld [vmem:[#allocation9 + $0x308] sm:$0xff] }
 0x374   :  { %v1089_v53 = vadd.f32 %v1088_v52, %v9150_v13  ;;  %v1723_v57 = vpop.f32.mrf.mxu2 }
 0x375   :  { %v1290_v5 = vmax.f32 %v835_v16, 0.0  ;;  %v1724_v6 = vadd.f32 %v9532_v28, %v1723_v57  ;;  %v1977_v7 = vpop.f32.mrf.mxu3  ;;  %v8598_v16 = vld [vmem:[#allocation9 + $0x348] sm:$0xff] }
 0x376   :  { %3358 = vmatpush.bf16.msra.mxu0 %v8594_v4  ;;  %v1291_v10 = vmax.f32 %v1089_v53, 0.0  ;;  %v5218_v4 = vunpack.c.l.b16 %v2216_v30 }
 0x377   :  { %3445 = vmatpush.bf16.msra.mxu1 %v8602_v47  ;;  %v1978_v11 = vadd.f32 %v1977_v7, %v1724_v6  ;;  %v1398_v17 = vpack.c.bf16 %v1290_v5, %v1288_v63  ;;  %v8589_v63 = vld [vmem:[#allocation9 + $0x300] sm:$0xff]  ;;  %v8628_v7 = vld [vmem:[#allocation9 + $0x438] sm:$0xff] }
 0x378   :  { %v1399_v24 = vpack.c.bf16 %v1291_v10, %v1289_v9  ;;  %v8597_v6 = vld [vmem:[#allocation9 + $0x340] sm:$0xff] }
 0x379   :  { %v2119_v26 = vmax.f32 %v1978_v11, 0.0  ;;  %1765 = vmatmul.bf16.gmra.mxu2 %v1398_v17 }
 0x37a   :  { %3359 = vmatpush.bf16.msra.mxu0 %v8593_v54  ;;  %2019 = vmatmul.bf16.gmra.mxu3 %v1399_v24  ;;  %v837_v34 = vpop.f32.mrf.mxu0  ;;  %v8636_v24 = vld [vmem:[#allocation9 + $0x478] sm:$0xff] }
 0x37b   :  { %3446 = vmatpush.bf16.msra.mxu1 %v8601_v60  ;;  %v2217_v31 = vpack.c.bf16 %v2119_v26, %v2119_v26  ;;  %v1091_v35 = vpop.f32.mrf.mxu1  ;;  %v838_v52 = vadd.f32 %v837_v34, %v9148_v12 }
 0x37c   :  { %v1726_v38 = vpop.f32.mrf.mxu2  ;;  %v1092_v54 = vadd.f32 %v1091_v35, %v9150_v13  ;;  %v8627_v35 = vld [vmem:[#allocation9 + $0x430] sm:$0xff] }
 0x37d   :  { %v5219_v46 = vunpack.c.l.b16 %v2217_v31  ;;  %v1727_v39 = vadd.f32 %v9532_v28, %v1726_v38  ;;  %v1980_v47 = vpop.f32.mrf.mxu3  ;;  %v1292_v9 = vmax.f32 %v838_v52, 0.0 }
 0x37e   :  { %3360 = vmatpush.bf16.msra.mxu0 %v8592_v23 }
 0x37f   :  { %3447 = vmatpush.bf16.msra.mxu1 %v8600_v25  ;;  %v9599_v48 = vpack.c.b16 %v5219_v46, %v5218_v4  ;;  %v1981_v49 = vadd.f32 %v1980_v47, %v1727_v39  ;;  %v1293_v25 = vmax.f32 %v1092_v54, 0.0 }
 0x381   :  { %v2120_v10 = vmax.f32 %v1981_v49, 0.0  ;;  %v8626_v49 = vld [vmem:[#allocation9 + $0x428] sm:$0xff] }
 0x382   :  { %3361 = vmatpush.bf16.msra.mxu0 %v8591_v62  ;;  %v839_v53 = vpop.f32.mrf.mxu0 }
 0x383   :  { %3448 = vmatpush.bf16.msra.mxu1 %v8599_v45  ;;  %v840_v57 = vadd.f32 %v839_v53, %v9148_v12  ;;  %v1093_v60 = vpop.f32.mrf.mxu1  ;;  %v2218_v62 = vpack.c.bf16 %v2120_v10, %v2120_v10  ;;  %v8635_v45 = vld [vmem:[#allocation9 + $0x470] sm:$0xff]  ;;  %v8634_v53 = vld [vmem:[#allocation9 + $0x468] sm:$0xff] }
 0x384   :  { %v1094_v0 = vadd.f32 %v1093_v60, %v9150_v13  ;;  %v1728_v5 = vpop.f32.mrf.mxu2 }
 0x385   :  { %v1294_v11 = vmax.f32 %v840_v57, 0.0  ;;  %v1729_v17 = vadd.f32 %v9532_v28, %v1728_v5  ;;  %v1982_v23 = vpop.f32.mrf.mxu3 }
 0x386   :  { %3362 = vmatpush.bf16.msra.mxu0 %v8590_v50  ;;  %v1295_v30 = vmax.f32 %v1094_v0, 0.0  ;;  %v5305_v50 = vunpack.c.l.b16 %v2218_v62 }
 0x387   :  { %3449 = vmatpush.bf16.msra.mxu1 %v8598_v16  ;;  %v1983_v26 = vadd.f32 %v1982_v23, %v1729_v17  ;;  %v1400_v34 = vpack.c.bf16 %v1294_v11, %v1292_v9  ;;  %v8624_v11 = vld [vmem:[#allocation9 + $0x418] sm:$0xff] }
 0x388   :  { %v1401_v31 = vpack.c.bf16 %v1295_v30, %v1293_v25 }
 0x389   :  { %v2121_v38 = vmax.f32 %v1983_v26, 0.0  ;;  %1770 = vmatmul.bf16.gmra.mxu2 %v1400_v34  ;;  %v8632_v26 = vld [vmem:[#allocation9 + $0x458] sm:$0xff] }
 0x38a   :  { %3363 = vmatpush.bf16.msra.mxu0 %v8589_v63  ;;  %2024 = vmatmul.bf16.gmra.mxu3 %v1401_v31  ;;  %v842_v4 = vpop.f32.mrf.mxu0 }
 0x38b   :  { %3450 = vmatpush.bf16.msra.mxu1 %v8597_v6  ;;  %v2219_v46 = vpack.c.bf16 %v2121_v38, %v2121_v38  ;;  %v1096_v39 = vpop.f32.mrf.mxu1  ;;  %v843_v63 = vadd.f32 %v842_v4, %v9148_v12 }
 0x38c   :  { %v1731_v47 = vpop.f32.mrf.mxu2  ;;  %v1097_v0 = vadd.f32 %v1096_v39, %v9150_v13  ;;  %v8631_v39 = vld [vmem:[#allocation9 + $0x450] sm:$0xff] }
 0x38d   :  { %3364 = vmatmul.bf16.vlgmr.msra.gmra.mxu0 %v9359_v42  ;;  %v5306_v16 = vunpack.c.l.b16 %v2219_v46  ;;  %v1732_v52 = vadd.f32 %v9532_v28, %v1731_v47  ;;  %v1985_v54 = vpop.f32.mrf.mxu3  ;;  %v8625_v42 = vld [vmem:[#allocation9 + $0x420] sm:$0xff]  ;;  %v1296_v17 = vmax.f32 %v843_v63, 0.0 }
 0x38e   :  { %3704 = vmatpush.bf16.msrb.mxu0 %v8628_v7  ;;  %3451 = vmatmul.bf16.vlgmr.msra.gmra.mxu1 %v9370_v18  ;;  %v8633_v18 = vld [vmem:[#allocation9 + $0x460] sm:$0xff]  ;;  %v1297_v34 = vmax.f32 %v1097_v0, 0.0 }
 0x38f   :  { %3791 = vmatpush.bf16.msrb.mxu1 %v8636_v24  ;;  %v9609_v57 = vpack.c.b16 %v5306_v16, %v5305_v50  ;;  %v1986_v60 = vadd.f32 %v1985_v54, %v1732_v52  ;;  %v8509_v16 = vld [vmem:[#allocation9 + $0x80] sm:$0xff] }
 0x390   :  { %v8517_v52 = vld [vmem:[#allocation9 + $0xc0] sm:$0xff]  ;;  %2493 = vmatpush.bf16.msrb.mxu2 %v8509_v16  ;;  %v8659_v16 = vld [vmem:[#allocation9 + $0x530] sm:$0xff] }
 0x391   :  { %v2122_v23 = vmax.f32 %v1986_v60, 0.0  ;;  %v8548_v60 = vld [vmem:[#allocation9 + $0x1b8] sm:$0xff]  ;;  %2580 = vmatpush.bf16.msrb.mxu3 %v8517_v52 }
 0x392   :  { %3705 = vmatpush.bf16.msrb.mxu0 %v8627_v35  ;;  %v844_v5 = vpop.f32.mrf.mxu0 }
 0x393   :  { %3792 = vmatpush.bf16.msrb.mxu1 %v8635_v45  ;;  %v845_v6 = vadd.f32 %v844_v5, %v9148_v12  ;;  %v1098_v7 = vpop.f32.mrf.mxu1  ;;  %v8623_v45 = vld [vmem:[#allocation9 + $0x410] sm:$0xff]  ;;  %v2220_v4 = vpack.c.bf16 %v2122_v23, %v2122_v23 }
 0x394   :  { %v1099_v9 = vadd.f32 %v1098_v7, %v9150_v13  ;;  %v1733_v10 = vpop.f32.mrf.mxu2  ;;  %2834 = vmatpush.bf16.msra.mxu2 %v8548_v60 }
 0x395   :  { %v1298_v24 = vmax.f32 %v845_v6, 0.0  ;;  %v1734_v25 = vadd.f32 %v9532_v28, %v1733_v10  ;;  %v1987_v30 = vpop.f32.mrf.mxu3  ;;  %v5392_v63 = vunpack.c.l.b16 %v2220_v4  ;;  %v8630_v6 = vld [vmem:[#allocation9 + $0x448] sm:$0xff]  ;;  %v8621_v10 = vld [vmem:[#allocation9 + $0x400] sm:$0xff] }
 0x396   :  { %3706 = vmatpush.bf16.msrb.mxu0 %v8626_v49  ;;  %v1299_v31 = vmax.f32 %v1099_v9, 0.0  ;;  %v8554_v4 = vld [vmem:[#allocation9 + $0x1e8] sm:$0xff] }
 0x397   :  { %3793 = vmatpush.bf16.msrb.mxu1 %v8634_v53  ;;  %v1988_v35 = vadd.f32 %v1987_v30, %v1734_v25  ;;  %v1402_v62 = vpack.c.bf16 %v1298_v24, %v1296_v17  ;;  %v8622_v53 = vld [vmem:[#allocation9 + $0x408] sm:$0xff]  ;;  %v8555_v17 = vld [vmem:[#allocation9 + $0x1f0] sm:$0xff]  ;;  %v8629_v24 = vld [vmem:[#allocation9 + $0x440] sm:$0xff] }
 0x398   :  { %v1403_v38 = vpack.c.bf16 %v1299_v31, %v1297_v34  ;;  %v8660_v25 = vld [vmem:[#allocation9 + $0x538] sm:$0xff] }
 0x399   :  { %v2123_v46 = vmax.f32 %v1988_v35, 0.0  ;;  %1775 = vmatmul.bf16.gmra.mxu2 %v1402_v62  ;;  %v8668_v34 = vld [vmem:[#allocation9 + $0x578] sm:$0xff] }
 0x39a   :  { %3707 = vmatpush.bf16.msrb.mxu0 %v8625_v42  ;;  %2029 = vmatmul.bf16.gmra.mxu3 %v1403_v38  ;;  %v847_v47 = vpop.f32.mrf.mxu0  ;;  %v8556_v42 = vld [vmem:[#allocation9 + $0x1f8] sm:$0xff] }
 0x39b   :  { %3794 = vmatpush.bf16.msrb.mxu1 %v8633_v18  ;;  %v2221_v49 = vpack.c.bf16 %v2123_v46, %v2123_v46  ;;  %v1101_v50 = vpop.f32.mrf.mxu1  ;;  %2921 = vmatpush.bf16.msra.mxu3 %v8556_v42  ;;  %v848_v23 = vadd.f32 %v847_v47, %v9148_v12 }
 0x39c   :  { %v1736_v54 = vpop.f32.mrf.mxu2  ;;  %v1102_v30 = vadd.f32 %v1101_v50, %v9150_v13 }
 0x39d   :  { %v5393_v18 = vunpack.c.l.b16 %v2221_v49  ;;  %v1737_v0 = vadd.f32 %v9532_v28, %v1736_v54  ;;  %v1990_v5 = vpop.f32.mrf.mxu3  ;;  %v1300_v46 = vmax.f32 %v848_v23, 0.0 }
 0x39e   :  { %3708 = vmatpush.bf16.msrb.mxu0 %v8624_v11  ;;  %v8547_v11 = vld [vmem:[#allocation9 + $0x1b0] sm:$0xff]  ;;  %v1301_v52 = vmax.f32 %v1102_v30, 0.0 }
 0x39f   :  { %3795 = vmatpush.bf16.msrb.mxu1 %v8632_v26  ;;  %v9617_v7 = vpack.c.b16 %v5393_v18, %v5392_v63  ;;  %v1991_v9 = vadd.f32 %v1990_v5, %v1737_v0  ;;  %2835 = vmatpush.bf16.msra.mxu2 %v8547_v11  ;;  %v8545_v18 = vld [vmem:[#allocation9 + $0x1a0] sm:$0xff]  ;;  %v8666_v11 = vld [vmem:[#allocation9 + $0x568] sm:$0xff] }
 0x3a0   :  { %2922 = vmatpush.bf16.msra.mxu3 %v8555_v17  ;;  %v8553_v0 = vld [vmem:[#allocation9 + $0x1e0] sm:$0xff] }
 0x3a2   :  { %3709 = vmatpush.bf16.msrb.mxu0 %v8623_v45  ;;  %v849_v26 = vpop.f32.mrf.mxu0  ;;  %v8546_v45 = vld [vmem:[#allocation9 + $0x1a8] sm:$0xff] }
 0x3a3   :  { %3796 = vmatpush.bf16.msrb.mxu1 %v8631_v39  ;;  %v850_v31 = vadd.f32 %v849_v26, %v9148_v12  ;;  %v1103_v35 = vpop.f32.mrf.mxu1  ;;  %v2124_v39 = vmax.f32 %v1991_v9, 0.0  ;;  %2836 = vmatpush.bf16.msra.mxu2 %v8546_v45  ;;  %v8658_v9 = vld [vmem:[#allocation9 + $0x528] sm:$0xff]  ;;  %v8543_v45 = vld [vmem:[#allocation9 + $0x190] sm:$0xff] }
 0x3a4   :  { %v1104_v62 = vadd.f32 %v1103_v35, %v9150_v13  ;;  %v1738_v38 = vpop.f32.mrf.mxu2  ;;  %2923 = vmatpush.bf16.msra.mxu3 %v8554_v4  ;;  %v8665_v35 = vld [vmem:[#allocation9 + $0x560] sm:$0xff]  ;;  %v8551_v4 = vld [vmem:[#allocation9 + $0x1d0] sm:$0xff] }
 0x3a5   :  { %v1302_v47 = vmax.f32 %v850_v31, 0.0  ;;  %v1739_v49 = vadd.f32 %v9532_v28, %v1738_v38  ;;  %v1992_v50 = vpop.f32.mrf.mxu3  ;;  %v2222_v5 = vpack.c.bf16 %v2124_v39, %v2124_v39  ;;  %v8657_v31 = vld [vmem:[#allocation9 + $0x520] sm:$0xff]  ;;  %v8656_v39 = vld [vmem:[#allocation9 + $0x518] sm:$0xff] }
 0x3a6   :  { %3710 = vmatpush.bf16.msrb.mxu0 %v8622_v53  ;;  %v1303_v54 = vmax.f32 %v1104_v62, 0.0  ;;  %v8667_v53 = vld [vmem:[#allocation9 + $0x570] sm:$0xff] }
 0x3a7   :  { %3797 = vmatpush.bf16.msrb.mxu1 %v8630_v6  ;;  %v1993_v60 = vadd.f32 %v1992_v50, %v1739_v49  ;;  %v1404_v42 = vpack.c.bf16 %v1302_v47, %v1300_v46  ;;  %2837 = vmatpush.bf16.msra.mxu2 %v8545_v18  ;;  %v8664_v50 = vld [vmem:[#allocation9 + $0x558] sm:$0xff] }
 0x3a8   :  { %v1405_v63 = vpack.c.bf16 %v1303_v54, %v1301_v52  ;;  %2924 = vmatpush.bf16.msra.mxu3 %v8553_v0 }
 0x3a9   :  { %v2125_v6 = vmax.f32 %v1993_v60, 0.0  ;;  %1780 = vmatmul.bf16.gmra.mxu2 %v1404_v42  ;;  %v8542_v60 = vld [vmem:[#allocation9 + $0x188] sm:$0xff] }
 0x3aa   :  { %3711 = vmatpush.bf16.msrb.mxu0 %v8621_v10  ;;  %2034 = vmatmul.bf16.gmra.mxu3 %v1405_v63  ;;  %v852_v10 = vpop.f32.mrf.mxu0  ;;  %v8550_v42 = vld [vmem:[#allocation9 + $0x1c8] sm:$0xff] }
 0x3ab   :  { %3798 = vmatpush.bf16.msrb.mxu1 %v8629_v24  ;;  %v2223_v17 = vpack.c.bf16 %v2125_v6, %v2125_v6  ;;  %v1106_v23 = vpop.f32.mrf.mxu1  ;;  %v8544_v24 = vld [vmem:[#allocation9 + $0x198] sm:$0xff]  ;;  %v853_v46 = vadd.f32 %v852_v10, %v9148_v12 }
 0x3ac   :  { %2838 = vmatpush.bf16.msra.mxu2 %v8544_v24  ;;  %v1107_v47 = vadd.f32 %v1106_v23, %v9150_v13 }
 0x3ad   :  { %3712 = vmatmul.bf16.vlgmr.msrb.gmra.mxu0 %v9405_v19  ;;  %v1741_v19 = vpop.f32.mrf.mxu2  ;;  %v5480_v30 = vunpack.c.l.b16 %v2223_v17  ;;  %v1304_v63 = vmax.f32 %v853_v46, 0.0  ;;  %v8663_v17 = vld [vmem:[#allocation9 + $0x550] sm:$0xff] }
 0x3ae   :  { %4052 = vmatpush.bf16.msra.mxu0 %v8660_v25  ;;  %3799 = vmatmul.bf16.vlgmr.msrb.gmra.mxu1 %v9416_v59  ;;  %v8552_v25 = vld [vmem:[#allocation9 + $0x1d8] sm:$0xff]  ;;  %v5479_v59 = vunpack.c.l.b16 %v2222_v5  ;;  %v1742_v26 = vadd.f32 %v9532_v28, %v1741_v19  ;;  %v1305_v10 = vmax.f32 %v1107_v47, 0.0 }
 0x3af   :  { %4139 = vmatpush.bf16.msra.mxu1 %v8668_v34  ;;  %v1995_v34 = vpop.f32.mrf.mxu3  ;;  %2925 = vmatpush.bf16.msra.mxu3 %v8552_v25  ;;  %v8541_v25 = vld [vmem:[#allocation9 + $0x180] sm:$0xff] }
 0x3b0   :  { %v9627_v62 = vpack.c.b16 %v5480_v30, %v5479_v59  ;;  %v1996_v38 = vadd.f32 %v1995_v34, %v1742_v26  ;;  %2839 = vmatpush.bf16.msra.mxu2 %v8543_v45  ;;  %v8549_v59 = vld [vmem:[#allocation9 + $0x1c0] sm:$0xff]  ;;  %v8654_v34 = vld [vmem:[#allocation9 + $0x508] sm:$0xff] }
 0x3b2   :  { %4053 = vmatpush.bf16.msra.mxu0 %v8659_v16  ;;  %v854_v49 = vpop.f32.mrf.mxu0  ;;  %v2126_v18 = vmax.f32 %v1996_v38, 0.0 }
 0x3b3   :  { %4140 = vmatpush.bf16.msra.mxu1 %v8667_v53  ;;  %v855_v16 = vadd.f32 %v854_v49, %v9148_v12  ;;  %v1108_v52 = vpop.f32.mrf.mxu1  ;;  %2926 = vmatpush.bf16.msra.mxu3 %v8551_v4 }
 0x3b4   :  { %v1109_v54 = vadd.f32 %v1108_v52, %v9150_v13  ;;  %2840 = vmatpush.bf16.msra.mxu2 %v8542_v60  ;;  %v2224_v30 = vpack.c.bf16 %v2126_v18, %v2126_v18  ;;  %v8692_v52 = vld [vmem:[#allocation9 + $0x638] sm:$0xff] }
 0x3b5   :  { %v1743_v53 = vpop.f32.mrf.mxu2  ;;  %v1306_v0 = vmax.f32 %v855_v16, 0.0  ;;  %v8661_v16 = vld [vmem:[#allocation9 + $0x540] sm:$0xff]  ;;  %v8700_v60 = vld [vmem:[#allocation9 + $0x678] sm:$0xff] }
 0x3b6   :  { %4054 = vmatpush.bf16.msra.mxu0 %v8658_v9  ;;  %v1744_v5 = vadd.f32 %v9532_v28, %v1743_v53  ;;  %v8655_v9 = vld [vmem:[#allocation9 + $0x510] sm:$0xff]  ;;  %v5566_v4 = vunpack.c.l.b16 %v2224_v30 }
 0x3b7   :  { %4141 = vmatpush.bf16.msra.mxu1 %v8666_v11  ;;  %v1997_v6 = vpop.f32.mrf.mxu3  ;;  %v1307_v11 = vmax.f32 %v1109_v54, 0.0  ;;  %v1406_v19 = vpack.c.bf16 %v1306_v0, %v1304_v63  ;;  %2927 = vmatpush.bf16.msra.mxu3 %v8550_v42  ;;  %v8691_v0 = vld [vmem:[#allocation9 + $0x630] sm:$0xff] }
 0x3b8   :  { %v1998_v23 = vadd.f32 %v1997_v6, %v1744_v5  ;;  %2841 = vmatpush.bf16.msra.mxu2 %v8541_v25 }
 0x3b9   :  { %v1407_v24 = vpack.c.bf16 %v1307_v11, %v1305_v10  ;;  %1785 = vmatmul.bf16.gmra.mxu2 %v1406_v19 }
 0x3ba   :  { %4055 = vmatpush.bf16.msra.mxu0 %v8657_v31  ;;  %v2127_v26 = vmax.f32 %v1998_v23, 0.0  ;;  %v857_v28 = vpop.f32.mrf.mxu0  ;;  %v8662_v31 = vld [vmem:[#allocation9 + $0x548] sm:$0xff] }
 0x3bb   :  { %4142 = vmatpush.bf16.msra.mxu1 %v8665_v35  ;;  %2039 = vmatmul.bf16.gmra.mxu3 %v1407_v24  ;;  %v1111_v38 = vpop.f32.mrf.mxu1  ;;  %v858_v42 = vadd.f32 %v857_v28, %v9148_v12  ;;  %v8698_v28 = vld [vmem:[#allocation9 + $0x668] sm:$0xff] }
 0x3bc   :  { %v2225_v35 = vpack.c.bf16 %v2127_v26, %v2127_v26  ;;  %2928 = vmatpush.bf16.msra.mxu3 %v8549_v59  ;;  %v1112_v63 = vadd.f32 %v1111_v38, %v9150_v13  ;;  %v8690_v26 = vld [vmem:[#allocation9 + $0x628] sm:$0xff]  ;;  %v8689_v38 = vld [vmem:[#allocation9 + $0x620] sm:$0xff] }
 0x3bd   :  { %v1746_v45 = vpop.f32.mrf.mxu2 }
 0x3be   :  { %4056 = vmatpush.bf16.msra.mxu0 %v8656_v39  ;;  %v5567_v46 = vunpack.c.l.b16 %v2225_v35  ;;  %v9634_v39 = vld [vmem:[#allocation7] ss:$0 sm:$0xff]  ;;  %v1309_v59 = vmax.f32 %v1112_v63, 0.0 }
 0x3bf   :  { %4143 = vmatpush.bf16.msra.mxu1 %v8664_v50  ;;  %v1747_v47 = vadd.f32 %v9634_v39, %v1746_v45  ;;  %v2000_v49 = vpop.f32.mrf.mxu3  ;;  %v8653_v50 = vld [vmem:[#allocation9 + $0x500] sm:$0xff]  ;;  %v8696_v63 = vld [vmem:[#allocation9 + $0x658] sm:$0xff] }
 0x3c0   :  { %v9637_v54 = vpack.c.b16 %v5567_v46, %v5566_v4  ;;  %v8697_v4 = vld [vmem:[#allocation9 + $0x660] sm:$0xff] }
 0x3c1   :  { %v2001_v53 = vadd.f32 %v2000_v49, %v1747_v47 }
 0x3c2   :  { %4057 = vmatpush.bf16.msra.mxu0 %v8655_v9  ;;  %v859_v18 = vpop.f32.mrf.mxu0  ;;  %v8699_v9 = vld [vmem:[#allocation9 + $0x670] sm:$0xff] }
 0x3c3   :  { %4144 = vmatpush.bf16.msra.mxu1 %v8663_v17  ;;  %v860_v5 = vadd.f32 %v859_v18, %v9148_v12  ;;  %v1113_v6 = vpop.f32.mrf.mxu1  ;;  %v1308_v17 = vmax.f32 %v858_v42, 0.0  ;;  %v2128_v23 = vmax.f32 %v2001_v53, 0.0  ;;  %v8688_v53 = vld [vmem:[#allocation9 + $0x618] sm:$0xff]  ;;  %v8687_v18 = vld [vmem:[#allocation9 + $0x610] sm:$0xff] }
 0x3c4   :  { %v1114_v10 = vadd.f32 %v1113_v6, %v9150_v13 }
 0x3c5   :  { %v1748_v11 = vpop.f32.mrf.mxu2  ;;  %v1310_v19 = vmax.f32 %v860_v5, 0.0 }
 0x3c6   :  { %4058 = vmatpush.bf16.msra.mxu0 %v8654_v34  ;;  %v1749_v24 = vadd.f32 %v9634_v39, %v1748_v11  ;;  %v1311_v30 = vmax.f32 %v1114_v10, 0.0  ;;  %v8580_v11 = vld [vmem:[#allocation9 + $0x2b8] sm:$0xff] }
 0x3c7   :  { %4145 = vmatpush.bf16.msra.mxu1 %v8662_v31  ;;  %v2002_v25 = vpop.f32.mrf.mxu3  ;;  %v1408_v34 = vpack.c.bf16 %v1310_v19, %v1308_v17  ;;  %v2226_v31 = vpack.c.bf16 %v2128_v23, %v2128_v23  ;;  %v8588_v23 = vld [vmem:[#allocation9 + $0x2f8] sm:$0xff]  ;;  %v8686_v19 = vld [vmem:[#allocation9 + $0x608] sm:$0xff] }
 0x3c8   :  { %v2003_v12 = vadd.f32 %v2002_v25, %v1749_v24  ;;  %v1409_v13 = vpack.c.bf16 %v1311_v30, %v1309_v59  ;;  %v8694_v24 = vld [vmem:[#allocation9 + $0x648] sm:$0xff]  ;;  %v8579_v30 = vld [vmem:[#allocation9 + $0x2b0] sm:$0xff] }
 0x3c9   :  { %1790 = vmatmul.bf16.gmra.mxu2 %v1408_v34  ;;  %v5653_v49 = vunpack.c.l.b16 %v2226_v31  ;;  %v8685_v34 = vld [vmem:[#allocation9 + $0x600] sm:$0xff]  ;;  %v8724_v31 = vld [vmem:[#allocation9 + $0x738] sm:$0xff] }
 0x3ca   :  { %4059 = vmatpush.bf16.msra.mxu0 %v8653_v50  ;;  %v2342_v35 = vpop.f32.mrf.mxu0 }
 0x3cb   :  { %4146 = vmatpush.bf16.msra.mxu1 %v8661_v16  ;;  %2044 = vmatmul.bf16.gmra.mxu3 %v1409_v13  ;;  %v2410_v45 = vpop.f32.mrf.mxu1  ;;  %v8693_v13 = vld [vmem:[#allocation9 + $0x640] sm:$0xff] }
 0x3cc   :  { %v9646_v46 = vadd.f32 %v2410_v45, %v2342_v35  ;;  %v8586_v45 = vld [vmem:[#allocation9 + $0x2e8] sm:$0xff] }
 0x3cd   :  { %4060 = vmatmul.bf16.vlgmr.msra.gmra.mxu0 %v9449_v3  ;;  %v2129_v3 = vmax.f32 %v2003_v12, 0.0  ;;  %v1751_v47 = vpop.f32.mrf.mxu2  ;;  %v8587_v12 = vld [vmem:[#allocation9 + $0x2f0] sm:$0xff] }
 0x3ce   :  { %4400 = vmatpush.bf16.msrb.mxu0 %v8692_v52  ;;  %4147 = vmatmul.bf16.vlgmr.msra.gmra.mxu1 %v9460_v51  ;;  %v1752_v16 = vadd.f32 %v9634_v39, %v1751_v47  ;;  %v8731_v47 = vld [vmem:[#allocation9 + $0x770] sm:$0xff] }
 0x3cf   :  { %4487 = vmatpush.bf16.msrb.mxu1 %v8700_v60  ;;  %v2227_v51 = vpack.c.bf16 %v2129_v3, %v2129_v3  ;;  %v2005_v52 = vpop.f32.mrf.mxu3 }
 0x3d0   :  { %v2006_v42 = vadd.f32 %v2005_v52, %v1752_v16  ;;  %v8722_v52 = vld [vmem:[#allocation9 + $0x728] sm:$0xff] }
 0x3d1   :  { %v5654_v50 = vunpack.c.l.b16 %v2227_v51  ;;  %v8732_v51 = vld [vmem:[#allocation9 + $0x778] sm:$0xff] }
 0x3d2   :  { %4401 = vmatpush.bf16.msrb.mxu0 %v8691_v0  ;;  %v8695_v0 = vld [vmem:[#allocation9 + $0x650] sm:$0xff]  ;;  %v2130_v6 = vmax.f32 %v2006_v42, 0.0  ;;  %v8730_v42 = vld [vmem:[#allocation9 + $0x768] sm:$0xff] }
 0x3d3   :  { %4488 = vmatpush.bf16.msrb.mxu1 %v8699_v9  ;;  %v9649_v60 = vpack.c.b16 %v5654_v50, %v5653_v49  ;;  %v8577_v49 = vld [vmem:[#allocation9 + $0x2a0] sm:$0xff] }
 0x3d4   :  { %v2228_v25 = vpack.c.bf16 %v2130_v6, %v2130_v6  ;;  %v8585_v50 = vld [vmem:[#allocation9 + $0x2e0] sm:$0xff] }
 0x3d5   :  { %v1753_v5 = vpop.f32.mrf.mxu2 }
 0x3d6   :  { %4402 = vmatpush.bf16.msrb.mxu0 %v8690_v26  ;;  %v1754_v9 = vadd.f32 %v9634_v39, %v1753_v5  ;;  %v5740_v3 = vunpack.c.l.b16 %v2228_v25  ;;  %v8583_v5 = vld [vmem:[#allocation9 + $0x2d0] sm:$0xff]  ;;  %v8573_v25 = vld [vmem:[#allocation9 + $0x280] sm:$0xff] }
 0x3d7   :  { %4489 = vmatpush.bf16.msrb.mxu1 %v8698_v28  ;;  %v2007_v10 = vpop.f32.mrf.mxu3 }
 0x3d8   :  { %v2008_v17 = vadd.f32 %v2007_v10, %v1754_v9  ;;  %v8720_v9 = vld [vmem:[#allocation9 + $0x718] sm:$0xff] }
 0x3d9   :  { %2494 = vmatmul.bf16.vlgmr.msrb.gmra.mxu2 %v9249_v61  ;;  %v8578_v61 = vld [vmem:[#allocation9 + $0x2a8] sm:$0xff] }
 0x3da   :  { %4403 = vmatpush.bf16.msrb.mxu0 %v8689_v38  ;;  %v2131_v59 = vmax.f32 %v2008_v17, 0.0  ;;  %3182 = vmatpush.bf16.msrb.mxu2 %v8580_v11  ;;  %v8728_v17 = vld [vmem:[#allocation9 + $0x758] sm:$0xff] }
 0x3db   :  { %4490 = vmatpush.bf16.msrb.mxu1 %v8697_v4  ;;  %2581 = vmatmul.bf16.vlgmr.msrb.gmra.mxu3 %v9260_v36  ;;  %v8723_v4 = vld [vmem:[#allocation9 + $0x730] sm:$0xff] }
 0x3dc   :  { %v2229_v26 = vpack.c.bf16 %v2131_v59, %v2131_v59  ;;  %3269 = vmatpush.bf16.msrb.mxu3 %v8588_v23  ;;  %v8574_v23 = vld [vmem:[#allocation9 + $0x288] sm:$0xff]  ;;  %v8581_v59 = vld [vmem:[#allocation9 + $0x2c0] sm:$0xff] }
 0x3dd   :  { %v9654_v28 = vpop.f32.mrf.mxu2 }
 0x3de   :  { %4404 = vmatpush.bf16.msrb.mxu0 %v8688_v53  ;;  %v5741_v35 = vunpack.c.l.b16 %v2229_v26  ;;  %3183 = vmatpush.bf16.msrb.mxu2 %v8579_v30  ;;  %v8612_v30 = vld [vmem:[#allocation9 + $0x3b8] sm:$0xff] }
 0x3df   :  { %4491 = vmatpush.bf16.msrb.mxu1 %v8696_v63  ;;  %v9656_v38 = vpop.f32.mrf.mxu3  ;;  %v8576_v63 = vld [vmem:[#allocation9 + $0x298] sm:$0xff] }
 0x3e0   :  { %v9658_v36 = vpack.c.b16 %v5741_v35, %v5740_v3  ;;  %3270 = vmatpush.bf16.msrb.mxu3 %v8587_v12  ;;  %v8620_v12 = vld [vmem:[#allocation9 + $0x3f8] sm:$0xff]  ;;  %v8611_v3 = vld [vmem:[#allocation9 + $0x3b0] sm:$0xff] }
 0x3e1   :  { %v8619_v35 = vld [vmem:[#allocation9 + $0x3f0] sm:$0xff] }
 0x3e2   :  { %4405 = vmatpush.bf16.msrb.mxu0 %v8687_v18  ;;  %3184 = vmatpush.bf16.msrb.mxu2 %v8578_v61  ;;  %v8584_v18 = vld [vmem:[#allocation9 + $0x2d8] sm:$0xff]  ;;  %v8725_v61 = vld [vmem:[#allocation9 + $0x740] sm:$0xff] }
 0x3e3   :  { %4492 = vmatpush.bf16.msrb.mxu1 %v8695_v0  ;;  %v8575_v0 = vld [vmem:[#allocation9 + $0x290] sm:$0xff] }
 0x3e4   :  { %3271 = vmatpush.bf16.msrb.mxu3 %v8586_v45  ;;  %v8756_v45 = vld [vmem:[#allocation9 + $0x838] sm:$0xff] }
 0x3e5   :  { %v9662_v16 = vpop.f32.mrf.mxu2 }
 0x3e6   :  { %4406 = vmatpush.bf16.msrb.mxu0 %v8686_v19  ;;  %3185 = vmatpush.bf16.msrb.mxu2 %v8577_v49 }
 0x3e7   :  { %4493 = vmatpush.bf16.msrb.mxu1 %v8694_v24  ;;  %v9664_v53 = vpop.f32.mrf.mxu3  ;;  %v8727_v24 = vld [vmem:[#allocation9 + $0x750] sm:$0xff] }
 0x3e8   :  { %3272 = vmatpush.bf16.msrb.mxu3 %v8585_v50  ;;  %v8618_v50 = vld [vmem:[#allocation9 + $0x3e8] sm:$0xff] }
 0x3e9   :  { %2842 = vmatmul.bf16.vlgmr.msra.gmra.mxu2 %v9293_v8  ;;  %v8582_v8 = vld [vmem:[#allocation9 + $0x2c8] sm:$0xff] }
 0x3ea   :  { %4407 = vmatpush.bf16.msrb.mxu0 %v8685_v34  ;;  %3186 = vmatpush.bf16.msrb.mxu2 %v8576_v63  ;;  %v8718_v34 = vld [vmem:[#allocation9 + $0x708] sm:$0xff]  ;;  %v8755_v63 = vld [vmem:[#allocation9 + $0x830] sm:$0xff] }
 0x3eb   :  { %4494 = vmatpush.bf16.msrb.mxu1 %v8693_v13  ;;  %2929 = vmatmul.bf16.vlgmr.msra.gmra.mxu3 %v9304_v44  ;;  %v8719_v44 = vld [vmem:[#allocation9 + $0x710] sm:$0xff] }
 0x3ec   :  { %3273 = vmatpush.bf16.msrb.mxu3 %v8584_v18  ;;  %v8763_v18 = vld [vmem:[#allocation9 + $0x870] sm:$0xff] }
 0x3ed   :  { %4408 = vmatmul.bf16.vlgmr.msrb.gmra.mxu0 %v9493_v14  ;;  %v8721_v14 = vld [vmem:[#allocation9 + $0x720] sm:$0xff]  ;;  %v1761_v6 = vpop.f32.mrf.mxu2 }
 0x3ee   :  { %4748 = vmatpush.bf16.msra.mxu0 %v8724_v31  ;;  %4495 = vmatmul.bf16.vlgmr.msrb.gmra.mxu1 %v9504_v1  ;;  %v8729_v1 = vld [vmem:[#allocation9 + $0x760] sm:$0xff]  ;;  %v1762_v10 = vadd.f32 %v9634_v39, %v1761_v6  ;;  %v8726_v31 = vld [vmem:[#allocation9 + $0x748] sm:$0xff] }
 0x3ef   :  { %4835 = vmatpush.bf16.msra.mxu1 %v8732_v51  ;;  %v2015_v11 = vpop.f32.mrf.mxu3  ;;  %3187 = vmatpush.bf16.msrb.mxu2 %v8575_v0  ;;  %v8717_v51 = vld [vmem:[#allocation9 + $0x700] sm:$0xff]  ;;  %v8762_v0 = vld [vmem:[#allocation9 + $0x868] sm:$0xff] }
 0x3f0   :  { %v9669_v19 = vadd.f32 %v2015_v11, %v1762_v10  ;;  %3274 = vmatpush.bf16.msrb.mxu3 %v8583_v5  ;;  %v8608_v5 = vld [vmem:[#allocation9 + $0x398] sm:$0xff]  ;;  %v8761_v11 = vld [vmem:[#allocation9 + $0x860] sm:$0xff] }
 0x3f2   :  { %4749 = vmatpush.bf16.msra.mxu0 %v8723_v4  ;;  %v8764_v4 = vld [vmem:[#allocation9 + $0x878] sm:$0xff] }
 0x3f3   :  { %4836 = vmatpush.bf16.msra.mxu1 %v8731_v47  ;;  %3188 = vmatpush.bf16.msrb.mxu2 %v8574_v23  ;;  %v8610_v47 = vld [vmem:[#allocation9 + $0x3a8] sm:$0xff]  ;;  %v8752_v23 = vld [vmem:[#allocation9 + $0x818] sm:$0xff] }
 0x3f4   :  { %3275 = vmatpush.bf16.msrb.mxu3 %v8582_v8  ;;  %v8760_v8 = vld [vmem:[#allocation9 + $0x858] sm:$0xff] }
 0x3f5   :  { %v9671_v26 = vpop.f32.mrf.mxu2 }
 0x3f6   :  { %4750 = vmatpush.bf16.msra.mxu0 %v8722_v52 }
 0x3f7   :  { %4837 = vmatpush.bf16.msra.mxu1 %v8730_v42  ;;  %v9673_v13 = vpop.f32.mrf.mxu3  ;;  %3189 = vmatpush.bf16.msrb.mxu2 %v8573_v25  ;;  %v8614_v25 = vld [vmem:[#allocation9 + $0x3c8] sm:$0xff] }
 0x3f8   :  { %3276 = vmatpush.bf16.msrb.mxu3 %v8581_v59 }
 0x3fa   :  { %4751 = vmatpush.bf16.msra.mxu0 %v8721_v14  ;;  %3190 = vmatmul.bf16.vlgmr.msrb.gmra.mxu2 %v9337_v29  ;;  %v8617_v14 = vld [vmem:[#allocation9 + $0x3e0] sm:$0xff] }
 0x3fb   :  { %4838 = vmatpush.bf16.msra.mxu1 %v8729_v1  ;;  %3530 = vmatpush.bf16.msra.mxu2 %v8612_v30  ;;  %v8754_v1 = vld [vmem:[#allocation9 + $0x828] sm:$0xff]  ;;  %v8751_v30 = vld [vmem:[#allocation9 + $0x810] sm:$0xff] }
 0x3fc   :  { %3617 = vmatpush.bf16.msra.mxu3 %v8620_v12  ;;  %v8759_v12 = vld [vmem:[#allocation9 + $0x850] sm:$0xff] }
 0x3fd   :  { %3277 = vmatmul.bf16.vlgmr.msrb.gmra.mxu3 %v9348_v2  ;;  %v1766_v49 = vpop.f32.mrf.mxu2  ;;  %v8609_v2 = vld [vmem:[#allocation9 + $0x3a0] sm:$0xff] }
 0x3fe   :  { %4752 = vmatpush.bf16.msra.mxu0 %v8720_v9  ;;  %v1767_v52 = vadd.f32 %v9634_v39, %v1766_v49  ;;  %v8616_v9 = vld [vmem:[#allocation9 + $0x3d8] sm:$0xff]  ;;  %v8651_v49 = vld [vmem:[#allocation9 + $0x4f0] sm:$0xff] }
 0x3ff   :  { %4839 = vmatpush.bf16.msra.mxu1 %v8728_v17  ;;  %3531 = vmatpush.bf16.msra.mxu2 %v8611_v3  ;;  %v2020_v42 = vpop.f32.mrf.mxu3  ;;  %v8615_v17 = vld [vmem:[#allocation9 + $0x3d0] sm:$0xff]  ;;  %v8644_v3 = vld [vmem:[#allocation9 + $0x4b8] sm:$0xff] }
 0x400   :  { %3618 = vmatpush.bf16.msra.mxu3 %v8619_v35  ;;  %v9678_v29 = vadd.f32 %v2020_v42, %v1767_v52  ;;  %v8652_v35 = vld [vmem:[#allocation9 + $0x4f8] sm:$0xff]  ;;  %v8757_v52 = vld [vmem:[#allocation9 + $0x840] sm:$0xff] }
 0x401   :  { %v8788_v42 = vld [vmem:[#allocation9 + $0x938] sm:$0xff] }
 0x402   :  { %4753 = vmatpush.bf16.msra.mxu0 %v8719_v44  ;;  %v8606_v44 = vld [vmem:[#allocation9 + $0x388] sm:$0xff] }
 0x403   :  { %4840 = vmatpush.bf16.msra.mxu1 %v8727_v24  ;;  %3532 = vmatpush.bf16.msra.mxu2 %v8610_v47 }
 0x404   :  { %3619 = vmatpush.bf16.msra.mxu3 %v8618_v50  ;;  %v8749_v50 = vld [vmem:[#allocation9 + $0x800] sm:$0xff] }
 0x405   :  { %v9682_v6 = vpop.f32.mrf.mxu2 }
 0x406   :  { %4754 = vmatpush.bf16.msra.mxu0 %v8718_v34  ;;  %v8605_v34 = vld [vmem:[#allocation9 + $0x380] sm:$0xff] }
 0x407   :  { %4841 = vmatpush.bf16.msra.mxu1 %v8726_v31  ;;  %3533 = vmatpush.bf16.msra.mxu2 %v8609_v2  ;;  %v9684_v10 = vpop.f32.mrf.mxu3  ;;  %v8613_v31 = vld [vmem:[#allocation9 + $0x3c0] sm:$0xff]  ;;  %v8650_v2 = vld [vmem:[#allocation9 + $0x4e8] sm:$0xff] }
 0x408   :  { %3620 = vmatpush.bf16.msra.mxu3 %v8617_v14  ;;  %v8787_v14 = vld [vmem:[#allocation9 + $0x930] sm:$0xff] }
 0x40a   :  { %4755 = vmatpush.bf16.msra.mxu0 %v8717_v51  ;;  %v8750_v51 = vld [vmem:[#allocation9 + $0x808] sm:$0xff] }
 0x40b   :  { %4842 = vmatpush.bf16.msra.mxu1 %v8725_v61  ;;  %3534 = vmatpush.bf16.msra.mxu2 %v8608_v5  ;;  %v8758_v61 = vld [vmem:[#allocation9 + $0x848] sm:$0xff]  ;;  %v8649_v5 = vld [vmem:[#allocation9 + $0x4e0] sm:$0xff] }
 0x40c   :  { %3621 = vmatpush.bf16.msra.mxu3 %v8616_v9  ;;  %v8786_v9 = vld [vmem:[#allocation9 + $0x928] sm:$0xff] }
 0x40d   :  { %4756 = vmatmul.bf16.vlgmr.msra.gmra.mxu0 %v9539_v32  ;;  %v8753_v32 = vld [vmem:[#allocation9 + $0x820] sm:$0xff]  ;;  %v9686_v24 = vpop.f32.mrf.mxu2 }
 0x40e   :  { %5096 = vmatpush.bf16.msrb.mxu0 %v8756_v45  ;;  %4843 = vmatmul.bf16.vlgmr.msra.gmra.mxu1 %v9550_v20  ;;  %v8607_v20 = vld [vmem:[#allocation9 + $0x390] sm:$0xff] }
 0x40f   :  { %5183 = vmatpush.bf16.msrb.mxu1 %v8764_v4  ;;  %3535 = vmatpush.bf16.msra.mxu2 %v8607_v20  ;;  %v9688_v59 = vpop.f32.mrf.mxu3  ;;  %v8643_v4 = vld [vmem:[#allocation9 + $0x4b0] sm:$0xff]  ;;  %v8648_v20 = vld [vmem:[#allocation9 + $0x4d8] sm:$0xff] }
 0x410   :  { %3622 = vmatpush.bf16.msra.mxu3 %v8615_v17  ;;  %v8793_v17 = vld [vmem:[#allocation9 + $0x960] sm:$0xff] }
 0x412   :  { %5097 = vmatpush.bf16.msrb.mxu0 %v8755_v63  ;;  %v8796_v63 = vld [vmem:[#allocation9 + $0x978] sm:$0xff] }
 0x413   :  { %5184 = vmatpush.bf16.msrb.mxu1 %v8763_v18  ;;  %3536 = vmatpush.bf16.msra.mxu2 %v8606_v44  ;;  %v8642_v18 = vld [vmem:[#allocation9 + $0x4a8] sm:$0xff]  ;;  %v8647_v44 = vld [vmem:[#allocation9 + $0x4d0] sm:$0xff] }
 0x414   :  { %3623 = vmatpush.bf16.msra.mxu3 %v8614_v25  ;;  %v8784_v25 = vld [vmem:[#allocation9 + $0x918] sm:$0xff] }
 0x415   :  { %v9690_v45 = vpop.f32.mrf.mxu2 }
 0x416   :  { %5098 = vmatpush.bf16.msrb.mxu0 %v8754_v1  ;;  %v8795_v1 = vld [vmem:[#allocation9 + $0x970] sm:$0xff] }
 0x417   :  { %5185 = vmatpush.bf16.msrb.mxu1 %v8762_v0  ;;  %3537 = vmatpush.bf16.msra.mxu2 %v8605_v34  ;;  %v9692_v47 = vpop.f32.mrf.mxu3  ;;  %v8646_v34 = vld [vmem:[#allocation9 + $0x4c8] sm:$0xff] }
 0x418   :  { %3624 = vmatpush.bf16.msra.mxu3 %v8613_v31  ;;  %v8783_v31 = vld [vmem:[#allocation9 + $0x910] sm:$0xff] }
 0x41a   :  { %5099 = vmatpush.bf16.msrb.mxu0 %v8753_v32  ;;  %3538 = vmatmul.bf16.vlgmr.msra.gmra.mxu2 %v9383_v56  ;;  %v8641_v56 = vld [vmem:[#allocation9 + $0x4a0] sm:$0xff]  ;;  %v8794_v32 = vld [vmem:[#allocation9 + $0x968] sm:$0xff] }
 0x41b   :  { %5186 = vmatpush.bf16.msrb.mxu1 %v8761_v11  ;;  %3878 = vmatpush.bf16.msrb.mxu2 %v8644_v3  ;;  %v8640_v11 = vld [vmem:[#allocation9 + $0x498] sm:$0xff]  ;;  %v8791_v3 = vld [vmem:[#allocation9 + $0x950] sm:$0xff] }
 0x41c   :  { %3965 = vmatpush.bf16.msrb.mxu3 %v8652_v35 }
 0x41d   :  { %3625 = vmatmul.bf16.vlgmr.msra.gmra.mxu3 %v9394_v37  ;;  %v9697_v0 = vpop.f32.mrf.mxu2 }
 0x41e   :  { %5100 = vmatpush.bf16.msrb.mxu0 %v8752_v23 }
 0x41f   :  { %5187 = vmatpush.bf16.msrb.mxu1 %v8760_v8  ;;  %3879 = vmatpush.bf16.msrb.mxu2 %v8643_v4  ;;  %v9700_v37 = vpop.f32.mrf.mxu3 }
 0x420   :  { %3966 = vmatpush.bf16.msrb.mxu3 %v8651_v49  ;;  %v8645_v49 = vld [vmem:[#allocation9 + $0x4c0] sm:$0xff] }
 0x422   :  { %5101 = vmatpush.bf16.msrb.mxu0 %v8751_v30  ;;  %v8792_v30 = vld [vmem:[#allocation9 + $0x958] sm:$0xff] }
 0x423   :  { %5188 = vmatpush.bf16.msrb.mxu1 %v8759_v12  ;;  %3880 = vmatpush.bf16.msrb.mxu2 %v8642_v18  ;;  %v8638_v12 = vld [vmem:[#allocation9 + $0x488] sm:$0xff] }
 0x424   :  { %3967 = vmatpush.bf16.msrb.mxu3 %v8650_v2  ;;  %v8790_v18 = vld [vmem:[#allocation9 + $0x948] sm:$0xff]  ;;  %v8675_v2 = vld [vmem:[#allocation9 + $0x5b0] sm:$0xff] }
 0x425   :  { %v9702_v23 = vpop.f32.mrf.mxu2 }
 0x426   :  { %5102 = vmatpush.bf16.msrb.mxu0 %v8750_v51  ;;  %v8637_v51 = vld [vmem:[#allocation9 + $0x480] sm:$0xff] }
 0x427   :  { %5189 = vmatpush.bf16.msrb.mxu1 %v8758_v61  ;;  %3881 = vmatpush.bf16.msrb.mxu2 %v8641_v56  ;;  %v9704_v8 = vpop.f32.mrf.mxu3  ;;  %v8789_v56 = vld [vmem:[#allocation9 + $0x940] sm:$0xff] }
 0x428   :  { %3968 = vmatpush.bf16.msrb.mxu3 %v8649_v5  ;;  %v8820_v5 = vld [vmem:[#allocation9 + $0xa38] sm:$0xff] }
 0x42a   :  { %5103 = vmatpush.bf16.msrb.mxu0 %v8749_v50  ;;  %v8676_v50 = vld [vmem:[#allocation9 + $0x5b8] sm:$0xff] }
 0x42b   :  { %5190 = vmatpush.bf16.msrb.mxu1 %v8757_v52  ;;  %3882 = vmatpush.bf16.msrb.mxu2 %v8640_v11  ;;  %v8684_v52 = vld [vmem:[#allocation9 + $0x5f8] sm:$0xff] }
 0x42c   :  { %3969 = vmatpush.bf16.msrb.mxu3 %v8648_v20  ;;  %v8674_v20 = vld [vmem:[#allocation9 + $0x5a8] sm:$0xff] }
 0x42d   :  { %5104 = vmatmul.bf16.vlgmr.msrb.gmra.mxu0 %v9581_v33  ;;  %v8785_v33 = vld [vmem:[#allocation9 + $0x920] sm:$0xff]  ;;  %v1781_v35 = vpop.f32.mrf.mxu2 }
 0x42e   :  { %5444 = vmatpush.bf16.msra.mxu0 %v8788_v42  ;;  %5191 = vmatmul.bf16.vlgmr.msrb.gmra.mxu1 %v9591_v40  ;;  %v8639_v40 = vld [vmem:[#allocation9 + $0x490] sm:$0xff]  ;;  %v1782_v61 = vadd.f32 %v9634_v39, %v1781_v35  ;;  %v8782_v42 = vld [vmem:[#allocation9 + $0x908] sm:$0xff] }
 0x42f   :  { %5531 = vmatpush.bf16.msra.mxu1 %v8796_v63  ;;  %3883 = vmatpush.bf16.msrb.mxu2 %v8639_v40  ;;  %v2035_v4 = vpop.f32.mrf.mxu3  ;;  %v8827_v40 = vld [vmem:[#allocation9 + $0xa70] sm:$0xff] }
 0x430   :  { %3970 = vmatpush.bf16.msrb.mxu3 %v8647_v44  ;;  %v9707_v63 = vadd.f32 %v2035_v4, %v1782_v61  ;;  %v8818_v44 = vld [vmem:[#allocation9 + $0xa28] sm:$0xff]  ;;  %v8671_v61 = vld [vmem:[#allocation9 + $0x590] sm:$0xff] }
 0x431   :  { %v8679_v4 = vld [vmem:[#allocation9 + $0x5d0] sm:$0xff] }
 0x432   :  { %5445 = vmatpush.bf16.msra.mxu0 %v8787_v14  ;;  %v8683_v14 = vld [vmem:[#allocation9 + $0x5f0] sm:$0xff] }
 0x433   :  { %5532 = vmatpush.bf16.msra.mxu1 %v8795_v1  ;;  %3884 = vmatpush.bf16.msrb.mxu2 %v8638_v12  ;;  %v8781_v1 = vld [vmem:[#allocation9 + $0x900] sm:$0xff] }
 0x434   :  { %3971 = vmatpush.bf16.msrb.mxu3 %v8646_v34 }
 0x436   :  { %5446 = vmatpush.bf16.msra.mxu0 %v8786_v9  ;;  %v9711_v9 = vpop.f32.mrf.mxu2 }
 0x437   :  { %5533 = vmatpush.bf16.msra.mxu1 %v8794_v32  ;;  %3885 = vmatpush.bf16.msrb.mxu2 %v8637_v51  ;;  %v8828_v32 = vld [vmem:[#allocation9 + $0xa78] sm:$0xff]  ;;  %v9713_v11 = vpop.f32.mrf.mxu3  ;;  %v1759_v51 = vadd.f32 %v9634_v39, %v9662_v16  ;;  %v8678_v16 = vld [vmem:[#allocation9 + $0x5c8] sm:$0xff] }
 0x438   :  { %3972 = vmatpush.bf16.msrb.mxu3 %v8645_v49  ;;  %v1757_v49 = vadd.f32 %v9634_v39, %v9654_v28  ;;  %v8823_v28 = vld [vmem:[#allocation9 + $0xa50] sm:$0xff] }
 0x43a   :  { %5447 = vmatpush.bf16.msra.mxu0 %v8785_v33  ;;  %3886 = vmatmul.bf16.vlgmr.msrb.gmra.mxu2 %v9427_v41  ;;  %v8682_v33 = vld [vmem:[#allocation9 + $0x5e8] sm:$0xff]  ;;  %v8673_v41 = vld [vmem:[#allocation9 + $0x5a0] sm:$0xff] }
 0x43b   :  { %5534 = vmatpush.bf16.msra.mxu1 %v8793_v17  ;;  %4226 = vmatpush.bf16.msra.mxu2 %v8676_v50  ;;  %v8819_v17 = vld [vmem:[#allocation9 + $0xa30] sm:$0xff]  ;;  %v8816_v50 = vld [vmem:[#allocation9 + $0xa18] sm:$0xff] }
 0x43c   :  { %4313 = vmatpush.bf16.msra.mxu3 %v8684_v52 }
 0x43d   :  { %3973 = vmatmul.bf16.vlgmr.msrb.gmra.mxu3 %v9438_v22  ;;  %v8681_v22 = vld [vmem:[#allocation9 + $0x5e0] sm:$0xff] }
 0x43e   :  { %5448 = vmatpush.bf16.msra.mxu0 %v8784_v25  ;;  %v1786_v25 = vpop.f32.mrf.mxu2 }
 0x43f   :  { %5535 = vmatpush.bf16.msra.mxu1 %v8792_v30  ;;  %4227 = vmatpush.bf16.msra.mxu2 %v8675_v2  ;;  %v8826_v30 = vld [vmem:[#allocation9 + $0xa68] sm:$0xff]  ;;  %v1787_v12 = vadd.f32 %v9634_v39, %v1786_v25  ;;  %v2040_v34 = vpop.f32.mrf.mxu3  ;;  %v9734_v25 = vpop.f32.mrf.mxu0 }
 0x440   :  { %4314 = vmatpush.bf16.msra.mxu3 %v8683_v14  ;;  %v8670_v14 = vld [vmem:[#allocation9 + $0x588] sm:$0xff] }
 0x441   :  { %v9718_v35 = vadd.f32 %v2040_v34, %v1787_v12  ;;  %v8715_v34 = vld [vmem:[#allocation9 + $0x6f0] sm:$0xff] }
 0x442   :  { %5449 = vmatpush.bf16.msra.mxu0 %v8783_v31  ;;  %v8672_v31 = vld [vmem:[#allocation9 + $0x598] sm:$0xff] }
 0x443   :  { %5536 = vmatpush.bf16.msra.mxu1 %v8791_v3  ;;  %4228 = vmatpush.bf16.msra.mxu2 %v8674_v20  ;;  %v8680_v3 = vld [vmem:[#allocation9 + $0x5d8] sm:$0xff]  ;;  %v8677_v20 = vld [vmem:[#allocation9 + $0x5c0] sm:$0xff] }
 0x444   :  { %4315 = vmatpush.bf16.msra.mxu3 %v8682_v33  ;;  %v8708_v33 = vld [vmem:[#allocation9 + $0x6b8] sm:$0xff] }
 0x446   :  { %5450 = vmatpush.bf16.msra.mxu0 %v8782_v42  ;;  %v9724_v52 = vpop.f32.mrf.mxu2  ;;  %v8824_v42 = vld [vmem:[#allocation9 + $0xa58] sm:$0xff] }
 0x447   :  { %5537 = vmatpush.bf16.msra.mxu1 %v8790_v18  ;;  %4229 = vmatpush.bf16.msra.mxu2 %v8673_v41  ;;  %v2013_v18 = vadd.f32 %v9664_v53, %v1759_v51  ;;  %v9727_v2 = vpop.f32.mrf.mxu3  ;;  %v8716_v53 = vld [vmem:[#allocation9 + $0x6f8] sm:$0xff] }
 0x448   :  { %4316 = vmatpush.bf16.msra.mxu3 %v8681_v22  ;;  %v8822_v22 = vld [vmem:[#allocation9 + $0xa48] sm:$0xff] }
 0x44a   :  { %5451 = vmatpush.bf16.msra.mxu0 %v8781_v1  ;;  %v2011_v1 = vadd.f32 %v9656_v38, %v1757_v49 }
 0x44b   :  { %5538 = vmatpush.bf16.msra.mxu1 %v8789_v56  ;;  %4230 = vmatpush.bf16.msra.mxu2 %v8672_v31  ;;  %v8815_v56 = vld [vmem:[#allocation9 + $0xa10] sm:$0xff]  ;;  %v8813_v31 = vld [vmem:[#allocation9 + $0xa00] sm:$0xff] }
 0x44c   :  { %4317 = vmatpush.bf16.msra.mxu3 %v8680_v3  ;;  %v9736_v3 = vpop.f32.mrf.mxu1 }
 0x44d   :  { %5452 = vmatmul.bf16.vlgmr.msra.gmra.mxu0 %v9617_v7  ;;  %v8817_v7 = vld [vmem:[#allocation9 + $0xa20] sm:$0xff] }
 0x44e   :  { %5792 = vmatpush.bf16.msrb.mxu0 %v8820_v5  ;;  %5539 = vmatmul.bf16.vlgmr.msra.gmra.mxu1 %v9627_v62  ;;  %v8825_v62 = vld [vmem:[#allocation9 + $0xa60] sm:$0xff]  ;;  %v2133_v5 = vmax.f32 %v2013_v18, 0.0  ;;  %v9730_v41 = vpop.f32.mrf.mxu2  ;;  %v8851_v18 = vld [vmem:[#allocation9 + $0xb30] sm:$0xff] }
 0x44f   :  { %5879 = vmatpush.bf16.msrb.mxu1 %v8828_v32  ;;  %4231 = vmatpush.bf16.msra.mxu2 %v8671_v61  ;;  %v8669_v32 = vld [vmem:[#allocation9 + $0x580] sm:$0xff]  ;;  %v9732_v38 = vpop.f32.mrf.mxu3  ;;  %v8860_v61 = vld [vmem:[#allocation9 + $0xb78] sm:$0xff] }
 0x450   :  { %4318 = vmatpush.bf16.msra.mxu3 %v8679_v4  ;;  %v8706_v4 = vld [vmem:[#allocation9 + $0x6a8] sm:$0xff] }
 0x452   :  { %5793 = vmatpush.bf16.msrb.mxu0 %v8819_v17  ;;  %v2132_v17 = vmax.f32 %v2011_v1, 0.0  ;;  %v8713_v1 = vld [vmem:[#allocation9 + $0x6e0] sm:$0xff] }
 0x453   :  { %5880 = vmatpush.bf16.msrb.mxu1 %v8827_v40  ;;  %4232 = vmatpush.bf16.msra.mxu2 %v8670_v14  ;;  %v8814_v40 = vld [vmem:[#allocation9 + $0xa08] sm:$0xff] }
 0x454   :  { %4319 = vmatpush.bf16.msra.mxu3 %v8678_v16  ;;  %v2230_v12 = vpack.c.bf16 %v2132_v17, %v2132_v17  ;;  %v8859_v16 = vld [vmem:[#allocation9 + $0xb70] sm:$0xff] }
 0x456   :  { %5794 = vmatpush.bf16.msrb.mxu0 %v8818_v44  ;;  %v2231_v44 = vpack.c.bf16 %v2133_v5, %v2133_v5  ;;  %v5827_v49 = vunpack.c.l.b16 %v2230_v12  ;;  %v8858_v5 = vld [vmem:[#allocation9 + $0xb68] sm:$0xff]  ;;  %v8703_v12 = vld [vmem:[#allocation9 + $0x690] sm:$0xff] }
 0x457   :  { %5881 = vmatpush.bf16.msrb.mxu1 %v8826_v30  ;;  %4233 = vmatpush.bf16.msra.mxu2 %v8669_v32  ;;  %v8707_v30 = vld [vmem:[#allocation9 + $0x6b0] sm:$0xff]  ;;  %v9745_v32 = vpop.f32.mrf.mxu1 }
 0x458   :  { %4320 = vmatpush.bf16.msra.mxu3 %v8677_v20  ;;  %v5828_v51 = vunpack.c.l.b16 %v2231_v44  ;;  %v8704_v20 = vld [vmem:[#allocation9 + $0x698] sm:$0xff]  ;;  %v8857_v44 = vld [vmem:[#allocation9 + $0xb60] sm:$0xff] }
 0x45a   :  { %5795 = vmatpush.bf16.msrb.mxu0 %v8817_v7  ;;  %4234 = vmatmul.bf16.vlgmr.msra.gmra.mxu2 %v9471_v43  ;;  %v8821_v7 = vld [vmem:[#allocation9 + $0xa40] sm:$0xff]  ;;  %v5829_v14 = vpack.c.b16 %v5828_v51, %v5827_v49  ;;  %v9742_v43 = vpop.f32.mrf.mxu3  ;;  %v8856_v51 = vld [vmem:[#allocation9 + $0xb58] sm:$0xff] }
 0x45b   :  { %5882 = vmatpush.bf16.msrb.mxu1 %v8825_v62  ;;  %4574 = vmatpush.bf16.msrb.mxu2 %v8708_v33  ;;  %v8852_v62 = vld [vmem:[#allocation9 + $0xb38] sm:$0xff] }
 0x45c   :  { %4661 = vmatpush.bf16.msrb.mxu3 %v8716_v53  ;;  %v8712_v33 = vld [vmem:[#allocation9 + $0x6d8] sm:$0xff]  ;;  %v8849_v53 = vld [vmem:[#allocation9 + $0xb20] sm:$0xff] }
 0x45d   :  { %4321 = vmatmul.bf16.vlgmr.msra.gmra.mxu3 %v9482_v27  ;;  %v8705_v27 = vld [vmem:[#allocation9 + $0x6a0] sm:$0xff] }
 0x45e   :  { %5796 = vmatpush.bf16.msrb.mxu0 %v8816_v50  ;;  %v8714_v50 = vld [vmem:[#allocation9 + $0x6e8] sm:$0xff] }
 0x45f   :  { %5883 = vmatpush.bf16.msrb.mxu1 %v8824_v42  ;;  %4575 = vmatpush.bf16.msrb.mxu2 %v8707_v30  ;;  %v9740_v42 = vpop.f32.mrf.mxu2  ;;  %v1779_v30 = vadd.f32 %v9634_v39, %v9702_v23 }
 0x460   :  { %4662 = vmatpush.bf16.msrb.mxu3 %v8715_v34  ;;  %v1772_v34 = vadd.f32 %v9634_v39, %v9686_v24  ;;  %v2413_v24 = vadd.f32 %v9736_v3, %v9734_v25 }
 0x461   :  { %v2033_v23 = vadd.f32 %v9704_v8, %v1779_v30  ;;  %v8739_v30 = vld [vmem:[#allocation9 + $0x7b0] sm:$0xff] }
 0x462   :  { %5797 = vmatpush.bf16.msrb.mxu0 %v8815_v56  ;;  %v2669_v56 = vpop.f32.mrf.mxu0  ;;  %v2026_v49 = vadd.f32 %v9688_v59, %v1772_v34 }
 0x463   :  { %5884 = vmatpush.bf16.msrb.mxu1 %v8823_v28  ;;  %4576 = vmatpush.bf16.msrb.mxu2 %v8706_v4  ;;  %v8850_v28 = vld [vmem:[#allocation9 + $0xb28] sm:$0xff] }
 0x464   :  { %4663 = vmatpush.bf16.msrb.mxu3 %v8714_v50  ;;  %v8702_v4 = vld [vmem:[#allocation9 + $0x688] sm:$0xff]  ;;  %v2138_v25 = vmax.f32 %v2026_v49, 0.0 }
 0x465   :  { %v8710_v50 = vld [vmem:[#allocation9 + $0x6c8] sm:$0xff] }
 0x466   :  { %5798 = vmatpush.bf16.msrb.mxu0 %v8814_v40 }
 0x467   :  { %5885 = vmatpush.bf16.msrb.mxu1 %v8822_v22  ;;  %4577 = vmatpush.bf16.msrb.mxu2 %v8705_v27  ;;  %v2495_v17 = vpop.f32.mrf.mxu2  ;;  %v2582_v22 = vpop.f32.mrf.mxu3  ;;  %v8855_v27 = vld [vmem:[#allocation9 + $0xb50] sm:$0xff] }
 0x468   :  { %4664 = vmatpush.bf16.msrb.mxu3 %v8713_v1  ;;  %v2500_v40 = vadd.f32 %v2495_v17, %v9646_v46  ;;  %v2141_v1 = vmax.f32 %v2033_v23, 0.0  ;;  %v8846_v17 = vld [vmem:[#allocation9 + $0xb08] sm:$0xff]  ;;  %v8884_v23 = vld [vmem:[#allocation9 + $0xc38] sm:$0xff] }
 0x46a   :  { %5799 = vmatpush.bf16.msrb.mxu0 %v8813_v31  ;;  %v2587_v31 = vadd.f32 %v2582_v22, %v2500_v40  ;;  %v2239_v40 = vpack.c.bf16 %v2141_v1, %v2141_v1  ;;  %v2236_v22 = vpack.c.bf16 %v2138_v25, %v2138_v25  ;;  %v8882_v25 = vld [vmem:[#allocation9 + $0xc28] sm:$0xff] }
 0x46b   :  { %5886 = vmatpush.bf16.msrb.mxu1 %v8821_v7  ;;  %4578 = vmatpush.bf16.msrb.mxu2 %v8704_v20  ;;  %v8711_v7 = vld [vmem:[#allocation9 + $0x6d0] sm:$0xff]  ;;  %v8740_v20 = vld [vmem:[#allocation9 + $0x7b8] sm:$0xff] }
 0x46c   :  { %4665 = vmatpush.bf16.msrb.mxu3 %v8712_v33  ;;  %v2674_v3 = vadd.f32 %v2669_v56, %v2587_v31  ;;  %v8747_v31 = vld [vmem:[#allocation9 + $0x7f0] sm:$0xff] }
 0x46d   :  { %5800 = vmatmul.bf16.vlgmr.msrb.gmra.mxu0 %v9658_v36  ;;  %v1774_v36 = vadd.f32 %v9634_v39, %v9690_v45  ;;  %v8848_v45 = vld [vmem:[#allocation9 + $0xb18] sm:$0xff] }
 0x46e   :  { %6140 = vmatpush.bf16.msra.mxu0 %v8852_v62  ;;  %5887 = vmatmul.bf16.vlgmr.msrb.gmra.mxu1 %v5829_v14  ;;  %v1777_v62 = vadd.f32 %v9634_v39, %v9697_v0  ;;  %v8847_v0 = vld [vmem:[#allocation9 + $0xb10] sm:$0xff] }
 0x46f   :  { %6227 = vmatpush.bf16.msra.mxu1 %v8860_v61  ;;  %v2028_v46 = vadd.f32 %v9692_v47, %v1774_v36  ;;  %v2671_v61 = vpop.f32.mrf.mxu0  ;;  %4579 = vmatpush.bf16.msrb.mxu2 %v8703_v12  ;;  %v2497_v47 = vpop.f32.mrf.mxu2  ;;  %v8854_v36 = vld [vmem:[#allocation9 + $0xb48] sm:$0xff] }
 0x470   :  { %4666 = vmatpush.bf16.msrb.mxu3 %v8711_v7  ;;  %v2031_v39 = vadd.f32 %v9700_v37, %v1777_v62  ;;  %v2584_v8 = vpop.f32.mrf.mxu3  ;;  %v8748_v37 = vld [vmem:[#allocation9 + $0x7f8] sm:$0xff]  ;;  %v8845_v7 = vld [vmem:[#allocation9 + $0xb00] sm:$0xff] }
 0x471   :  { %v2139_v14 = vmax.f32 %v2028_v46, 0.0 }
 0x472   :  { %6141 = vmatpush.bf16.msra.mxu0 %v8851_v18  ;;  %v9761_v18 = vpop.f32.mrf.mxu1  ;;  %v2140_v33 = vmax.f32 %v2031_v39, 0.0  ;;  %v8738_v39 = vld [vmem:[#allocation9 + $0x7a8] sm:$0xff] }
 0x473   :  { %6228 = vmatpush.bf16.msra.mxu1 %v8859_v16  ;;  %v2501_v16 = vadd.f32 %v2497_v47, %v2413_v24  ;;  %4580 = vmatpush.bf16.msrb.mxu2 %v8702_v4  ;;  %v6176_v24 = vunpack.c.l.b16 %v2239_v40  ;;  %v8735_v40 = vld [vmem:[#allocation9 + $0x790] sm:$0xff] }
 0x474   :  { %4667 = vmatpush.bf16.msrb.mxu3 %v8710_v50  ;;  %v2238_v12 = vpack.c.bf16 %v2140_v33, %v2140_v33 }
 0x475   :  { %v2588_v59 = vadd.f32 %v2584_v8, %v2501_v16  ;;  %v8883_v16 = vld [vmem:[#allocation9 + $0xc30] sm:$0xff] }
 0x476   :  { %6142 = vmatpush.bf16.msra.mxu0 %v8850_v28  ;;  %v8701_v28 = vld [vmem:[#allocation9 + $0x680] sm:$0xff]  ;;  %v6175_v47 = vunpack.c.l.b16 %v2238_v12 }
 0x477   :  { %6229 = vmatpush.bf16.msra.mxu1 %v8858_v5  ;;  %v8709_v5 = vld [vmem:[#allocation9 + $0x6c0] sm:$0xff]  ;;  %4581 = vmatpush.bf16.msrb.mxu2 %v8701_v28  ;;  %v3017_v56 = vpop.f32.mrf.mxu0  ;;  %v2843_v34 = vpop.f32.mrf.mxu2  ;;  %v2675_v49 = vadd.f32 %v2671_v61, %v2588_v59 }
 0x478   :  { %4668 = vmatpush.bf16.msrb.mxu3 %v8709_v5  ;;  %v2930_v46 = vpop.f32.mrf.mxu3  ;;  %v8745_v61 = vld [vmem:[#allocation9 + $0x7e0] sm:$0xff] }
 0x479   :  { %v2762_v8 = vadd.f32 %v9761_v18, %v2675_v49  ;;  %v9768_v18 = vld [vmem:[#allocation7] ss:$0 sm:$0xff]  ;;  %v8733_v49 = vld [vmem:[#allocation9 + $0x780] sm:$0xff] }
 0x47a   :  { %6143 = vmatpush.bf16.msra.mxu0 %v8849_v53  ;;  %v2237_v53 = vpack.c.bf16 %v2139_v14, %v2139_v14  ;;  %4582 = vmatmul.bf16.vlgmr.msrb.gmra.mxu2 %v9515_v55  ;;  %v3104_v4 = vpop.f32.mrf.mxu1  ;;  %v6177_v55 = vpack.c.b16 %v6176_v24, %v6175_v47  ;;  %v8741_v47 = vld [vmem:[#allocation9 + $0x7c0] sm:$0xff] }
 0x47b   :  { %6230 = vmatpush.bf16.msra.mxu1 %v8857_v44  ;;  %4922 = vmatpush.bf16.msra.mxu2 %v8740_v20  ;;  %v2761_v44 = vadd.f32 %v9745_v32, %v2674_v3  ;;  %v6088_v32 = vunpack.c.l.b16 %v2236_v22  ;;  %v8736_v20 = vld [vmem:[#allocation9 + $0x798] sm:$0xff]  ;;  %v1792_v22 = vadd.f32 %v9768_v18, %v9730_v41 }
 0x47c   :  { %5009 = vmatpush.bf16.msra.mxu3 %v8748_v37  ;;  %v6089_v62 = vunpack.c.l.b16 %v2237_v53  ;;  %v8744_v37 = vld [vmem:[#allocation9 + $0x7d8] sm:$0xff]  ;;  %v1794_v53 = vadd.f32 %v9768_v18, %v9740_v42  ;;  %v8734_v42 = vld [vmem:[#allocation9 + $0x788] sm:$0xff] }
 0x47d   :  { %4669 = vmatmul.bf16.vlgmr.msrb.gmra.mxu3 %v9526_v58 }
 0x47e   :  { %6144 = vmatpush.bf16.msra.mxu0 %v8848_v45  ;;  %v2848_v45 = vadd.f32 %v2843_v34, %v2761_v44  ;;  %v6090_v14 = vpack.c.b16 %v6089_v62, %v6088_v32  ;;  %v8880_v34 = vld [vmem:[#allocation9 + $0xc18] sm:$0xff] }
 0x47f   :  { %6231 = vmatpush.bf16.msra.mxu1 %v8856_v51  ;;  %v8853_v51 = vld [vmem:[#allocation9 + $0xb40] sm:$0xff]  ;;  %4923 = vmatpush.bf16.msra.mxu2 %v8739_v30  ;;  %v2845_v58 = vpop.f32.mrf.mxu2  ;;  %v3019_v3 = vpop.f32.mrf.mxu0  ;;  %v8743_v30 = vld [vmem:[#allocation9 + $0x7d0] sm:$0xff] }
 0x480   :  { %v2935_v50 = vadd.f32 %v2930_v46, %v2848_v45  ;;  %5010 = vmatpush.bf16.msra.mxu3 %v8747_v31  ;;  %v2849_v1 = vadd.f32 %v2845_v58, %v2762_v8  ;;  %v2932_v28 = vpop.f32.mrf.mxu3 }
 0x482   :  { %6145 = vmatpush.bf16.msra.mxu0 %v8847_v0  ;;  %v8746_v0 = vld [vmem:[#allocation9 + $0x7e8] sm:$0xff]  ;;  %v3022_v59 = vadd.f32 %v3017_v56, %v2935_v50  ;;  %v2936_v5 = vadd.f32 %v2932_v28, %v2849_v1  ;;  %v3106_v33 = vpop.f32.mrf.mxu1  ;;  %v8771_v1 = vld [vmem:[#allocation9 + $0x8b0] sm:$0xff] }
 0x483   :  { %6232 = vmatpush.bf16.msra.mxu1 %v8855_v27  ;;  %4924 = vmatpush.bf16.msra.mxu2 %v8738_v39  ;;  %v8737_v27 = vld [vmem:[#allocation9 + $0x7a0] sm:$0xff] }
 0x484   :  { %5011 = vmatpush.bf16.msra.mxu3 %v8746_v0  ;;  %v3023_v62 = vadd.f32 %v3019_v3, %v2936_v5  ;;  %v8772_v0 = vld [vmem:[#allocation9 + $0x8b8] sm:$0xff]  ;;  %v8877_v3 = vld [vmem:[#allocation9 + $0xc00] sm:$0xff] }
 0x486   :  { %6146 = vmatpush.bf16.msra.mxu0 %v8846_v17  ;;  %v8881_v17 = vld [vmem:[#allocation9 + $0xc20] sm:$0xff]  ;;  %v3110_v32 = vadd.f32 %v3106_v33, %v3023_v62  ;;  %v8774_v62 = vld [vmem:[#allocation9 + $0x8c8] sm:$0xff] }
 0x487   :  { %6233 = vmatpush.bf16.msra.mxu1 %v8854_v36  ;;  %4925 = vmatpush.bf16.msra.mxu2 %v8737_v27  ;;  %v3109_v36 = vadd.f32 %v3104_v4, %v3022_v59  ;;  %v3191_v44 = vpop.f32.mrf.mxu2  ;;  %v3365_v31 = vpop.f32.mrf.mxu0  ;;  %v8879_v4 = vld [vmem:[#allocation9 + $0xc10] sm:$0xff] }
 0x488   :  { %5012 = vmatpush.bf16.msra.mxu3 %v8745_v61  ;;  %v3278_v12 = vpop.f32.mrf.mxu3 }
 0x489   :  { %v3196_v56 = vadd.f32 %v3191_v44, %v3109_v36  ;;  %v8769_v36 = vld [vmem:[#allocation9 + $0x8a0] sm:$0xff]  ;;  %v8776_v44 = vld [vmem:[#allocation9 + $0x8d8] sm:$0xff] }
 0x48a   :  { %6147 = vmatpush.bf16.msra.mxu0 %v8845_v7  ;;  %v2048_v7 = vadd.f32 %v9742_v43, %v1794_v53  ;;  %v3452_v46 = vpop.f32.mrf.mxu1 }
 0x48b   :  { %6234 = vmatpush.bf16.msra.mxu1 %v8853_v51  ;;  %4926 = vmatpush.bf16.msra.mxu2 %v8736_v20  ;;  %v3283_v45 = vadd.f32 %v3278_v12, %v3196_v56  ;;  %v2046_v51 = vadd.f32 %v9732_v38, %v1792_v22  ;;  %v8768_v22 = vld [vmem:[#allocation9 + $0x898] sm:$0xff] }
 0x48c   :  { %5013 = vmatpush.bf16.msra.mxu3 %v8744_v37  ;;  %v2147_v24 = vmax.f32 %v2048_v7, 0.0  ;;  %v8770_v37 = vld [vmem:[#allocation9 + $0x8a8] sm:$0xff] }
 0x48d   :  { %6148 = vmatmul.bf16.vlgmr.msra.gmra.mxu0 %v6090_v14  ;;  %v3370_v41 = vadd.f32 %v3365_v31, %v3283_v45  ;;  %v2146_v39 = vmax.f32 %v2046_v51, 0.0  ;;  %v8766_v7 = vld [vmem:[#allocation9 + $0x888] sm:$0xff]  ;;  %v8773_v51 = vld [vmem:[#allocation9 + $0x8c0] sm:$0xff] }
 0x48e   :  { %6488 = vmatpush.bf16.msrb.mxu0 %v8884_v23  ;;  %6235 = vmatmul.bf16.vlgmr.msra.gmra.mxu1 %v6177_v55  ;;  %v8742_v23 = vld [vmem:[#allocation9 + $0x7c8] sm:$0xff]  ;;  %v2245_v38 = vpack.c.bf16 %v2147_v24, %v2147_v24 }
 0x48f   :  { %4927 = vmatpush.bf16.msra.mxu2 %v8735_v40  ;;  %v3457_v50 = vadd.f32 %v3452_v46, %v3370_v41  ;;  %v3193_v43 = vpop.f32.mrf.mxu2  ;;  %v8878_v55 = vld [vmem:[#allocation9 + $0xc08] sm:$0xff]  ;;  %v3367_v58 = vpop.f32.mrf.mxu0  ;;  %v2244_v61 = vpack.c.bf16 %v2146_v39, %v2146_v39  ;;  %v8777_v40 = vld [vmem:[#allocation9 + $0x8e0] sm:$0xff] }
 0x490   :  { %5014 = vmatpush.bf16.msra.mxu3 %v8743_v30  ;;  %v3197_v14 = vadd.f32 %v3193_v43, %v3110_v32  ;;  %v3280_v8 = vpop.f32.mrf.mxu3  ;;  %v6437_v5 = vunpack.c.l.b16 %v2245_v38  ;;  %v8775_v30 = vld [vmem:[#allocation9 + $0x8d0] sm:$0xff]  ;;  %v8808_v38 = vld [vmem:[#allocation9 + $0x9d8] sm:$0xff] }
 0x491   :  { %v6436_v33 = vunpack.c.l.b16 %v2244_v61  ;;  %v8811_v43 = vld [vmem:[#allocation9 + $0x9f0] sm:$0xff]  ;;  %v8805_v61 = vld [vmem:[#allocation9 + $0x9c0] sm:$0xff] }
 0x492   :  { %6489 = vmatpush.bf16.msrb.mxu0 %v8883_v16  ;;  %v8780_v16 = vld [vmem:[#allocation9 + $0x8f8] sm:$0xff]  ;;  %v3284_v27 = vadd.f32 %v3280_v8, %v3197_v14  ;;  %v3454_v59 = vpop.f32.mrf.mxu1  ;;  %v8801_v14 = vld [vmem:[#allocation9 + $0x9a0] sm:$0xff]  ;;  %v8799_v8 = vld [vmem:[#allocation9 + $0x990] sm:$0xff] }
 0x493   :  { %4928 = vmatpush.bf16.msra.mxu2 %v8734_v42  ;;  %v6438_v53 = vpack.c.b16 %v6437_v5, %v6436_v33  ;;  %v8765_v42 = vld [vmem:[#allocation9 + $0x880] sm:$0xff]  ;;  %v8842_v5 = vld [vmem:[#allocation9 + $0xae8] sm:$0xff]  ;;  %v1764_v33 = vadd.f32 %v9768_v18, %v9671_v26  ;;  %v2134_v26 = vmax.f32 %v9669_v19, 0.0 }
 0x494   :  { %5015 = vmatpush.bf16.msra.mxu3 %v8742_v23  ;;  %v3371_v28 = vadd.f32 %v3367_v58, %v3284_v27  ;;  %v8804_v23 = vld [vmem:[#allocation9 + $0x9b8] sm:$0xff]  ;;  %v8807_v27 = vld [vmem:[#allocation9 + $0x9d0] sm:$0xff]  ;;  %v8797_v58 = vld [vmem:[#allocation9 + $0x980] sm:$0xff] }
 0x496   :  { %6490 = vmatpush.bf16.msrb.mxu0 %v8882_v25  ;;  %v8779_v25 = vld [vmem:[#allocation9 + $0x8f0] sm:$0xff]  ;;  %v3458_v20 = vadd.f32 %v3454_v59, %v3371_v28  ;;  %v8844_v28 = vld [vmem:[#allocation9 + $0xaf8] sm:$0xff]  ;;  %v8834_v59 = vld [vmem:[#allocation9 + $0xaa8] sm:$0xff] }
 0x497   :  { %4929 = vmatpush.bf16.msra.mxu2 %v8733_v49 }
 0x498   :  { %5016 = vmatpush.bf16.msra.mxu3 %v8741_v47  ;;  %v8802_v47 = vld [vmem:[#allocation9 + $0x9a8] sm:$0xff] }
 0x49a   :  { %6491 = vmatpush.bf16.msrb.mxu0 %v8881_v17  ;;  %4930 = vmatmul.bf16.vlgmr.msra.gmra.mxu2 %v9561_v15  ;;  %v8778_v17 = vld [vmem:[#allocation9 + $0x8e8] sm:$0xff]  ;;  %v8767_v15 = vld [vmem:[#allocation9 + $0x890] sm:$0xff] }
 0x49b   :  { %5270 = vmatpush.bf16.msrb.mxu2 %v8772_v0  ;;  %5017 = vmatmul.bf16.vlgmr.msra.gmra.mxu3 %v9571_v21  ;;  %v8810_v0 = vld [vmem:[#allocation9 + $0x9e8] sm:$0xff] }
 0x49c   :  { %5357 = vmatpush.bf16.msrb.mxu3 %v8780_v16  ;;  %v8809_v16 = vld [vmem:[#allocation9 + $0x9e0] sm:$0xff] }
 0x49d   :  { %v3539_v21 = vpop.f32.mrf.mxu2 }
 0x49e   :  { %6492 = vmatpush.bf16.msrb.mxu0 %v8880_v34  ;;  %v3544_v56 = vadd.f32 %v3539_v21, %v3457_v50  ;;  %v3713_v34 = vpop.f32.mrf.mxu0  ;;  %v8803_v50 = vld [vmem:[#allocation9 + $0x9b0] sm:$0xff]  ;;  %v2136_v21 = vmax.f32 %v9678_v29, 0.0 }
 0x49f   :  { %5271 = vmatpush.bf16.msrb.mxu2 %v8771_v1  ;;  %v8836_v1 = vld [vmem:[#allocation9 + $0xab8] sm:$0xff] }
 0x4a0   :  { %5358 = vmatpush.bf16.msrb.mxu3 %v8779_v25  ;;  %v3626_v12 = vpop.f32.mrf.mxu3  ;;  %v8835_v25 = vld [vmem:[#allocation9 + $0xab0] sm:$0xff] }
 0x4a1   :  { %v3631_v31 = vadd.f32 %v3626_v12, %v3544_v56  ;;  %v8838_v56 = vld [vmem:[#allocation9 + $0xac8] sm:$0xff]  ;;  %v2232_v12 = vpack.c.bf16 %v2134_v26, %v2134_v26 }
 0x4a2   :  { %6493 = vmatpush.bf16.msrb.mxu0 %v8879_v4  ;;  %v8812_v4 = vld [vmem:[#allocation9 + $0x9f8] sm:$0xff] }
 0x4a3   :  { %5272 = vmatpush.bf16.msrb.mxu2 %v8770_v37  ;;  %v9778_v45 = vadd.f32 %v3713_v34, %v3631_v31  ;;  %v8841_v37 = vld [vmem:[#allocation9 + $0xae0] sm:$0xff]  ;;  %v2234_v34 = vpack.c.bf16 %v2136_v21, %v2136_v21 }
 0x4a4   :  { %5359 = vmatpush.bf16.msrb.mxu3 %v8778_v17  ;;  %v1769_v17 = vadd.f32 %v9768_v18, %v9682_v6  ;;  %v8830_v6 = vld [vmem:[#allocation9 + $0xa88] sm:$0xff] }
 0x4a5   :  { %v3541_v46 = vpop.f32.mrf.mxu2  ;;  %v6001_v19 = vunpack.c.l.b16 %v2234_v34 }
 0x4a6   :  { %6494 = vmatpush.bf16.msrb.mxu0 %v8878_v55  ;;  %v3545_v41 = vadd.f32 %v3541_v46, %v3458_v20  ;;  %v3715_v49 = vpop.f32.mrf.mxu0  ;;  %v8800_v55 = vld [vmem:[#allocation9 + $0x998] sm:$0xff]  ;;  %v8833_v20 = vld [vmem:[#allocation9 + $0xaa0] sm:$0xff] }
 0x4a7   :  { %5273 = vmatpush.bf16.msrb.mxu2 %v8769_v36  ;;  %v2023_v36 = vadd.f32 %v9684_v10, %v1769_v17  ;;  %v8829_v10 = vld [vmem:[#allocation9 + $0xa80] sm:$0xff]  ;;  %v8876_v46 = vld [vmem:[#allocation9 + $0xbf8] sm:$0xff] }
 0x4a8   :  { %5360 = vmatpush.bf16.msrb.mxu3 %v8777_v40  ;;  %v3628_v24 = vpop.f32.mrf.mxu3  ;;  %v8831_v40 = vld [vmem:[#allocation9 + $0xa90] sm:$0xff] }
 0x4a9   :  { %v3632_v32 = vadd.f32 %v3628_v24, %v3545_v41  ;;  %v8866_v24 = vld [vmem:[#allocation9 + $0xba8] sm:$0xff] }
 0x4aa   :  { %6495 = vmatpush.bf16.msrb.mxu0 %v8877_v3  ;;  %v8843_v3 = vld [vmem:[#allocation9 + $0xaf0] sm:$0xff] }
 0x4ab   :  { %5274 = vmatpush.bf16.msrb.mxu2 %v8768_v22  ;;  %v9780_v39 = vadd.f32 %v3715_v49, %v3632_v32  ;;  %v8874_v32 = vld [vmem:[#allocation9 + $0xbe8] sm:$0xff]  ;;  %v8865_v49 = vld [vmem:[#allocation9 + $0xba0] sm:$0xff] }
 0x4ac   :  { %5361 = vmatpush.bf16.msrb.mxu3 %v8776_v44  ;;  %v8839_v44 = vld [vmem:[#allocation9 + $0xad0] sm:$0xff] }
 0x4ad   :  { %6496 = vmatmul.bf16.vlgmr.msrb.gmra.mxu0 %v6438_v53  ;;  %v8832_v53 = vld [vmem:[#allocation9 + $0xa98] sm:$0xff] }
 0x4ae   :  { %v4061_v17 = vpop.f32.mrf.mxu0 }
 0x4af   :  { %5275 = vmatpush.bf16.msrb.mxu2 %v8767_v15  ;;  %v2137_v15 = vmax.f32 %v2023_v36, 0.0 }
 0x4b0   :  { %5362 = vmatpush.bf16.msrb.mxu3 %v8775_v30 }
 0x4b3   :  { %5276 = vmatpush.bf16.msrb.mxu2 %v8766_v7  ;;  %v8837_v7 = vld [vmem:[#allocation9 + $0xac0] sm:$0xff] }
 0x4b4   :  { %5363 = vmatpush.bf16.msrb.mxu3 %v8774_v62  ;;  %v8868_v62 = vld [vmem:[#allocation9 + $0xbb8] sm:$0xff] }
 0x4b6   :  { %v4063_v36 = vpop.f32.mrf.mxu0 }
 0x4b7   :  { %5277 = vmatpush.bf16.msrb.mxu2 %v8765_v42 }
 0x4b8   :  { %5364 = vmatpush.bf16.msrb.mxu3 %v8773_v51  ;;  %v5914_v51 = vunpack.c.l.b16 %v2232_v12 }
 0x4ba   :  { %5278 = vmatmul.bf16.vlgmr.msrb.gmra.mxu2 %v9599_v48  ;;  %v8798_v48 = vld [vmem:[#allocation9 + $0x988] sm:$0xff] }
 0x4bb   :  { %5618 = vmatpush.bf16.msra.mxu2 %v8804_v23  ;;  %5365 = vmatmul.bf16.vlgmr.msrb.gmra.mxu3 %v9609_v57  ;;  %v8806_v57 = vld [vmem:[#allocation9 + $0x9c8] sm:$0xff]  ;;  %v8867_v23 = vld [vmem:[#allocation9 + $0xbb0] sm:$0xff] }
 0x4bc   :  { %5705 = vmatpush.bf16.msra.mxu3 %v8812_v4  ;;  %v8875_v4 = vld [vmem:[#allocation9 + $0xbf0] sm:$0xff] }
 0x4bf   :  { %5619 = vmatpush.bf16.msra.mxu2 %v8803_v50  ;;  %v1784_v50 = vadd.f32 %v9768_v18, %v9711_v9  ;;  %v2142_v9 = vmax.f32 %v9707_v63, 0.0 }
 0x4c0   :  { %5706 = vmatpush.bf16.msra.mxu3 %v8811_v43  ;;  %v8873_v43 = vld [vmem:[#allocation9 + $0xbe0] sm:$0xff] }
 0x4c3   :  { %5620 = vmatpush.bf16.msra.mxu2 %v8802_v47  ;;  %v1789_v47 = vadd.f32 %v9768_v18, %v9724_v52  ;;  %v8862_v52 = vld [vmem:[#allocation9 + $0xb88] sm:$0xff] }
 0x4c4   :  { %5707 = vmatpush.bf16.msra.mxu3 %v8810_v0  ;;  %v8864_v0 = vld [vmem:[#allocation9 + $0xb98] sm:$0xff] }
 0x4c7   :  { %5621 = vmatpush.bf16.msra.mxu2 %v8801_v14  ;;  %v2038_v14 = vadd.f32 %v9713_v11, %v1784_v50 }
 0x4c8   :  { %5708 = vmatpush.bf16.msra.mxu3 %v8809_v16  ;;  %v8872_v16 = vld [vmem:[#allocation9 + $0xbd8] sm:$0xff] }
 0x4cb   :  { %5622 = vmatpush.bf16.msra.mxu2 %v8800_v55  ;;  %v2043_v55 = vadd.f32 %v9727_v2, %v1789_v47  ;;  %v8861_v2 = vld [vmem:[#allocation9 + $0xb80] sm:$0xff] }
 0x4cc   :  { %5709 = vmatpush.bf16.msra.mxu3 %v8808_v38  ;;  %v8863_v38 = vld [vmem:[#allocation9 + $0xb90] sm:$0xff] }
 0x4cf   :  { %5623 = vmatpush.bf16.msra.mxu2 %v8799_v8  ;;  %v2143_v8 = vmax.f32 %v2038_v14, 0.0 }
 0x4d0   :  { %5710 = vmatpush.bf16.msra.mxu3 %v8807_v27  ;;  %v8871_v27 = vld [vmem:[#allocation9 + $0xbd0] sm:$0xff] }
 0x4d1   :  { %v2241_v18 = vpack.c.bf16 %v2143_v8, %v2143_v8 }
 0x4d3   :  { %5624 = vmatpush.bf16.msra.mxu2 %v8798_v48  ;;  %v2145_v48 = vmax.f32 %v2043_v55, 0.0 }
 0x4d4   :  { %5711 = vmatpush.bf16.msra.mxu3 %v8806_v57  ;;  %v2144_v57 = vmax.f32 %v9718_v35, 0.0 }
 0x4d5   :  { %v2243_v11 = vpack.c.bf16 %v2145_v48, %v2145_v48 }
 0x4d7   :  { %5625 = vmatpush.bf16.msra.mxu2 %v8797_v58  ;;  %v8870_v58 = vld [vmem:[#allocation9 + $0xbc8] sm:$0xff] }
 0x4d8   :  { %5712 = vmatpush.bf16.msra.mxu3 %v8805_v61  ;;  %v2240_v61 = vpack.c.bf16 %v2142_v9, %v2142_v9 }
 0x4da   :  { %5626 = vmatmul.bf16.vlgmr.msra.gmra.mxu2 %v9637_v54  ;;  %v2018_v54 = vadd.f32 %v9673_v13, %v1764_v33  ;;  %v2235_v13 = vpack.c.bf16 %v2137_v15, %v2137_v15  ;;  %v3887_v33 = vpop.f32.mrf.mxu2  ;;  %v4409_v15 = vpop.f32.mrf.mxu0 }
 0x4db   :  { %5966 = vmatpush.bf16.msrb.mxu2 %v8836_v1  ;;  %5713 = vmatmul.bf16.vlgmr.msra.gmra.mxu3 %v9649_v60  ;;  %v8840_v60 = vld [vmem:[#allocation9 + $0xad8] sm:$0xff]  ;;  %v2242_v1 = vpack.c.bf16 %v2144_v57, %v2144_v57 }
 0x4dc   :  { %6053 = vmatpush.bf16.msrb.mxu3 %v8844_v28  ;;  %v2135_v22 = vmax.f32 %v2018_v54, 0.0  ;;  %v6002_v42 = vunpack.c.l.b16 %v2235_v13  ;;  %v6263_v28 = vunpack.c.l.b16 %v2241_v18 }
 0x4de   :  { %v2233_v30 = vpack.c.bf16 %v2135_v22, %v2135_v22  ;;  %v6003_v41 = vpack.c.b16 %v6002_v42, %v6001_v19 }
 0x4df   :  { %5967 = vmatpush.bf16.msrb.mxu2 %v8835_v25  ;;  %v8869_v25 = vld [vmem:[#allocation9 + $0xbc0] sm:$0xff] }
 0x4e0   :  { %6054 = vmatpush.bf16.msrb.mxu3 %v8843_v3  ;;  %v5915_v31 = vunpack.c.l.b16 %v2233_v30  ;;  %v6350_v3 = vunpack.c.l.b16 %v2243_v11 }
 0x4e2   :  { %v5916_v29 = vpack.c.b16 %v5915_v31, %v5914_v51  ;;  %v3889_v54 = vpop.f32.mrf.mxu2  ;;  %v4411_v13 = vpop.f32.mrf.mxu0 }
 0x4e3   :  { %5968 = vmatpush.bf16.msrb.mxu2 %v8834_v59  ;;  %v6262_v59 = vunpack.c.l.b16 %v2240_v61 }
 0x4e4   :  { %6055 = vmatpush.bf16.msrb.mxu3 %v8842_v5  ;;  %v6349_v5 = vunpack.c.l.b16 %v2242_v1 }
 0x4e5   :  { %v6264_v63 = vpack.c.b16 %v6263_v28, %v6262_v59 }
 0x4e6   :  { %v6351_v35 = vpack.c.b16 %v6350_v3, %v6349_v5 }
 0x4e7   :  { %5969 = vmatpush.bf16.msrb.mxu2 %v8833_v20  ;;  %v3800_v20 = vpop.f32.mrf.mxu1 }
 0x4e8   :  { %6056 = vmatpush.bf16.msrb.mxu3 %v8841_v37  ;;  %v3974_v37 = vpop.f32.mrf.mxu3  ;;  %v3805_v21 = vadd.f32 %v3800_v20, %v9778_v45 }
 0x4ea   :  { %v4235_v22 = vpop.f32.mrf.mxu2  ;;  %v3892_v30 = vadd.f32 %v3887_v33, %v3805_v21 }
 0x4eb   :  { %5970 = vmatpush.bf16.msrb.mxu2 %v8832_v53 }
 0x4ec   :  { %6057 = vmatpush.bf16.msrb.mxu3 %v8840_v60  ;;  %v3979_v34 = vadd.f32 %v3974_v37, %v3892_v30 }
 0x4ef   :  { %5971 = vmatpush.bf16.msrb.mxu2 %v8831_v40  ;;  %v3802_v53 = vpop.f32.mrf.mxu1 }
 0x4f0   :  { %6058 = vmatpush.bf16.msrb.mxu3 %v8839_v44  ;;  %v3976_v60 = vpop.f32.mrf.mxu3 }
 0x4f3   :  { %5972 = vmatpush.bf16.msrb.mxu2 %v8830_v6  ;;  %v4237_v6 = vpop.f32.mrf.mxu2 }
 0x4f4   :  { %6059 = vmatpush.bf16.msrb.mxu3 %v8838_v56 }
 0x4f7   :  { %5973 = vmatpush.bf16.msrb.mxu2 %v8829_v10  ;;  %v4148_v40 = vpop.f32.mrf.mxu1  ;;  %v3806_v10 = vadd.f32 %v3802_v53, %v9780_v39 }
 0x4f8   :  { %6060 = vmatpush.bf16.msrb.mxu3 %v8837_v7  ;;  %v4322_v44 = vpop.f32.mrf.mxu3  ;;  %v4066_v7 = vadd.f32 %v4061_v17, %v3979_v34 }
 0x4fa   :  { %5974 = vmatmul.bf16.vlgmr.msrb.gmra.mxu2 %v5916_v29  ;;  %v4153_v19 = vadd.f32 %v4148_v40, %v4066_v7 }
 0x4fb   :  { %6314 = vmatpush.bf16.msra.mxu2 %v8868_v62  ;;  %6061 = vmatmul.bf16.vlgmr.msrb.gmra.mxu3 %v6003_v41  ;;  %v3893_v62 = vadd.f32 %v3889_v54, %v3806_v10 }
 0x4fc   :  { %6401 = vmatpush.bf16.msra.mxu3 %v8876_v46  ;;  %v4757_v46 = vpop.f32.mrf.mxu0 }
 0x4fd   :  { %v4583_v31 = vpop.f32.mrf.mxu2  ;;  %v3980_v51 = vadd.f32 %v3976_v60, %v3893_v62 }
 0x4ff   :  { %6315 = vmatpush.bf16.msra.mxu2 %v8867_v23  ;;  %v4150_v26 = vpop.f32.mrf.mxu1  ;;  %v4240_v23 = vadd.f32 %v4235_v22, %v4153_v19  ;;  %v4067_v41 = vadd.f32 %v4063_v36, %v3980_v51 }
 0x500   :  { %6402 = vmatpush.bf16.msra.mxu3 %v8875_v4  ;;  %v4324_v56 = vpop.f32.mrf.mxu3 }
 0x501   :  { %v4327_v45 = vadd.f32 %v4322_v44, %v4240_v23 }
 0x503   :  { %6316 = vmatpush.bf16.msra.mxu2 %v8866_v24 }
 0x504   :  { %6403 = vmatpush.bf16.msra.mxu3 %v8874_v32  ;;  %v4759_v32 = vpop.f32.mrf.mxu0 }
 0x505   :  { %v4585_v4 = vpop.f32.mrf.mxu2 }
 0x507   :  { %6317 = vmatpush.bf16.msra.mxu2 %v8865_v49  ;;  %v4496_v12 = vpop.f32.mrf.mxu1  ;;  %v4154_v49 = vadd.f32 %v4150_v26, %v4067_v41 }
 0x508   :  { %6404 = vmatpush.bf16.msra.mxu3 %v8873_v43  ;;  %v4670_v42 = vpop.f32.mrf.mxu3  ;;  %v4414_v43 = vadd.f32 %v4409_v15, %v4327_v45 }
 0x509   :  { %v4241_v47 = vadd.f32 %v4237_v6, %v4154_v49 }
 0x50a   :  { %v4501_v14 = vadd.f32 %v4496_v12, %v4414_v43 }
 0x50b   :  { %6318 = vmatpush.bf16.msra.mxu2 %v8864_v0  ;;  %v4328_v39 = vadd.f32 %v4324_v56, %v4241_v47 }
 0x50c   :  { %6405 = vmatpush.bf16.msra.mxu3 %v8872_v16  ;;  %v5105_v55 = vpop.f32.mrf.mxu0 }
 0x50d   :  { %v4415_v8 = vadd.f32 %v4411_v13, %v4328_v39 }
 0x50f   :  { %6319 = vmatpush.bf16.msra.mxu2 %v8863_v38  ;;  %v4498_v29 = vpop.f32.mrf.mxu1  ;;  %v4588_v38 = vadd.f32 %v4583_v31, %v4501_v14 }
 0x510   :  { %6406 = vmatpush.bf16.msra.mxu3 %v8871_v27  ;;  %v4672_v24 = vpop.f32.mrf.mxu3  ;;  %v4502_v9 = vadd.f32 %v4498_v29, %v4415_v8 }
 0x511   :  { %v4675_v48 = vadd.f32 %v4670_v42, %v4588_v38 }
 0x512   :  { %v4589_v18 = vadd.f32 %v4585_v4, %v4502_v9 }
 0x513   :  { %6320 = vmatpush.bf16.msra.mxu2 %v8862_v52  ;;  %v4762_v52 = vadd.f32 %v4757_v46, %v4675_v48 }
 0x514   :  { %6407 = vmatpush.bf16.msra.mxu3 %v8870_v58  ;;  %v5107_v11 = vpop.f32.mrf.mxu0  ;;  %v4676_v1 = vadd.f32 %v4672_v24, %v4589_v18 }
 0x516   :  { %v4763_v3 = vadd.f32 %v4759_v32, %v4676_v1  ;;  %v8896_v1 = vld [vmem:[#allocation10] ss:$0 sm:$0xff] }
 0x517   :  { %6321 = vmatpush.bf16.msra.mxu2 %v8861_v2  ;;  %v4844_v50 = vpop.f32.mrf.mxu1 }
 0x518   :  { %6408 = vmatpush.bf16.msra.mxu3 %v8869_v25  ;;  %v4849_v2 = vadd.f32 %v4844_v50, %v4762_v52 }
 0x51a   :  { %6322 = vmatmul.bf16.vlgmr.msra.gmra.mxu2 %v6264_v63 }
 0x51b   :  { %6409 = vmatmul.bf16.vlgmr.msra.gmra.mxu3 %v6351_v35 }
 0x51c   :  { %v5453_v5 = vpop.f32.mrf.mxu0 }
 0x51d   :  { %v4931_v0 = vpop.f32.mrf.mxu2 }
 0x51e   :  { %v5018_v16 = vpop.f32.mrf.mxu3  ;;  %v4936_v28 = vadd.f32 %v4931_v0, %v4849_v2 }
 0x51f   :  { %v4846_v27 = vpop.f32.mrf.mxu1 }
 0x520   :  { %v5023_v63 = vadd.f32 %v5018_v16, %v4936_v28  ;;  %v4850_v35 = vadd.f32 %v4846_v27, %v4763_v3 }
 0x522   :  { %v5110_v33 = vadd.f32 %v5105_v55, %v5023_v63 }
 0x524   :  { %v5455_v36 = vpop.f32.mrf.mxu0 }
 0x525   :  { %v4933_v57 = vpop.f32.mrf.mxu2 }
 0x526   :  { %v5020_v58 = vpop.f32.mrf.mxu3  ;;  %v4937_v37 = vadd.f32 %v4933_v57, %v4850_v35 }
 0x527   :  { %v5192_v61 = vpop.f32.mrf.mxu1 }
 0x528   :  { %v5024_v53 = vadd.f32 %v5020_v58, %v4937_v37  ;;  %v5197_v54 = vadd.f32 %v5192_v61, %v5110_v33 }
 0x52a   :  { %v5111_v44 = vadd.f32 %v5107_v11, %v5024_v53 }
 0x52c   :  { %v5801_v30 = vpop.f32.mrf.mxu0 }
 0x52f   :  { %v5194_v20 = vpop.f32.mrf.mxu1 }
 0x530   :  { %v5198_v21 = vadd.f32 %v5194_v20, %v5111_v44 }
 0x534   :  { %v5803_v46 = vpop.f32.mrf.mxu0 }
 0x537   :  { %v5540_v22 = vpop.f32.mrf.mxu1 }
 0x53c   :  { %v6149_v24 = vpop.f32.mrf.mxu0 }
 0x53d   :  { %v5279_v25 = vpop.f32.mrf.mxu2 }
 0x53e   :  { %v5366_v59 = vpop.f32.mrf.mxu3  ;;  %v5284_v40 = vadd.f32 %v5279_v25, %v5197_v54 }
 0x53f   :  { %v5542_v12 = vpop.f32.mrf.mxu1 }
 0x540   :  { %v5371_v15 = vadd.f32 %v5366_v59, %v5284_v40 }
 0x542   :  { %v5458_v56 = vadd.f32 %v5453_v5, %v5371_v15 }
 0x544   :  { %v5545_v10 = vadd.f32 %v5540_v22, %v5458_v56  ;;  %v6151_v55 = vpop.f32.mrf.mxu0 }
 0x545   :  { %v5281_v17 = vpop.f32.mrf.mxu2 }
 0x546   :  { %v5368_v60 = vpop.f32.mrf.mxu3  ;;  %v5285_v13 = vadd.f32 %v5281_v17, %v5198_v21 }
 0x547   :  { %v5888_v19 = vpop.f32.mrf.mxu1 }
 0x548   :  { %v5372_v34 = vadd.f32 %v5368_v60, %v5285_v13 }
 0x54a   :  { %v5459_v62 = vadd.f32 %v5455_v36, %v5372_v34 }
 0x54c   :  { %v5546_v29 = vadd.f32 %v5542_v12, %v5459_v62  ;;  %v6497_v58 = vpop.f32.mrf.mxu0 }
 0x54f   :  { %v5890_v43 = vpop.f32.mrf.mxu1 }
 0x554   :  { %v6499_v20 = vpop.f32.mrf.mxu0 }
 0x557   :  { %v6236_v27 = vpop.f32.mrf.mxu1 }
 0x55d   :  { %v5627_v26 = vpop.f32.mrf.mxu2 }
 0x55e   :  { %v5714_v6 = vpop.f32.mrf.mxu3  ;;  %v5632_v31 = vadd.f32 %v5627_v26, %v5545_v10 }
 0x55f   :  { %v6238_v28 = vpop.f32.mrf.mxu1 }
 0x560   :  { %v5719_v51 = vadd.f32 %v5714_v6, %v5632_v31 }
 0x562   :  { %v5806_v23 = vadd.f32 %v5801_v30, %v5719_v51 }
 0x564   :  { %v5893_v49 = vadd.f32 %v5888_v19, %v5806_v23 }
 0x565   :  { %v5629_v7 = vpop.f32.mrf.mxu2 }
 0x566   :  { %v5716_v42 = vpop.f32.mrf.mxu3  ;;  %v5633_v41 = vadd.f32 %v5629_v7, %v5546_v29 }
 0x568   :  { %v5720_v32 = vadd.f32 %v5716_v42, %v5633_v41 }
 0x56a   :  { %v5807_v47 = vadd.f32 %v5803_v46, %v5720_v32 }
 0x56c   :  { %v5894_v14 = vadd.f32 %v5890_v43, %v5807_v47 }
 0x57d   :  { %v5975_v4 = vpop.f32.mrf.mxu2 }
 0x57e   :  { %v6062_v45 = vpop.f32.mrf.mxu3  ;;  %v5980_v50 = vadd.f32 %v5975_v4, %v5893_v49 }
 0x580   :  { %v6067_v0 = vadd.f32 %v6062_v45, %v5980_v50 }
 0x582   :  { %v6154_v38 = vadd.f32 %v6149_v24, %v6067_v0 }
 0x584   :  { %v6241_v9 = vadd.f32 %v6236_v27, %v6154_v38 }
 0x585   :  { %v5977_v39 = vpop.f32.mrf.mxu2 }
 0x586   :  { %v6064_v16 = vpop.f32.mrf.mxu3  ;;  %v5981_v8 = vadd.f32 %v5977_v39, %v5894_v14 }
 0x588   :  { %v6068_v48 = vadd.f32 %v6064_v16, %v5981_v8 }
 0x58a   :  { %v6155_v11 = vadd.f32 %v6151_v55, %v6068_v48 }
 0x58c   :  { %v6242_v3 = vadd.f32 %v6238_v28, %v6155_v11 }
 0x59d   :  { %v6323_v57 = vpop.f32.mrf.mxu2 }
 0x59e   :  { %v6328_v52 = vadd.f32 %v6323_v57, %v6241_v9  ;;  %v6410_v18 = vpop.f32.mrf.mxu3 }
 0x5a0   :  { %v6415_v61 = vadd.f32 %v6410_v18, %v6328_v52 }
 0x5a2   :  { %v6502_v2 = vadd.f32 %v6497_v58, %v6415_v61 }
 0x5a4   :  { %v6508_v25 = vadd.f32 %v8896_v1, %v6502_v2 }
 0x5a5   :  { %v6325_v59 = vpop.f32.mrf.mxu2 }
 0x5a6   :  { %6510 = vst [vmem:[%s9817_s7] sm:$0xff] %v6508_v25  ;;  %v6329_v5 = vadd.f32 %v6325_v59, %v6242_v3  ;;  %v6412_v63 = vpop.f32.mrf.mxu3 }
 0x5a8   :  { %v6416_v35 = vadd.f32 %v6412_v63, %v6329_v5 }
 0x5aa   :  { %v6503_v33 = vadd.f32 %v6499_v20, %v6416_v35 }
 0x5ac   :  { %v6509_v37 = vadd.f32 %v8896_v1, %v6503_v33 }
 0x5ae   :  { %6511 = vst [vmem:[%s9817_s7 + $0x8] sm:$0xff] %v6509_v37 }
 0x5af   :  { %6516 = vsyncpa [#allocation3], 1 }
 0x5b0   :  { %6517 = vsyncpa [#allocation5], 1 }
 0x5b1   :  { %6518 = vsyncpa [#allocation8], 1 }
 0x5b2   :  { %6519 = vsyncpa [#allocation11], 1 }

</bundles_post_ra>
